<compile_context>
chip_gen: v6e
topology: v6e:2x2x1
jax: 0.10.0
libtpu: 0.0.40
codegen_flags: <defaults>
</compile_context>

<pallas_src>
import functools

import jax
import jax.numpy as jnp
from jax.experimental import pallas as pl
from jax.experimental.pallas import tpu as pltpu

EPS = 1e-5          # torch.nn.LayerNorm default eps
LANE = 128
SUBLANE = 8
MXU_TILE = 256      # edge-tile granularity (2x256^2 MXU on v6e/v7x, fine on v5e)


def _round_up(x, m):
    return ((x + m - 1) // m) * m


def _layernorm_stats(x, true_count, pad_count):
    """Two-pass mean/inv_std over rows of `x` whose padded lanes are exactly zero.

    Padded lanes of (x - mean) equal -mean; their contribution to the squared sum
    is removed algebraically, so the statistics match an unpadded LayerNorm.
    """
    inv_d = 1.0 / float(true_count)
    mean = jnp.sum(x, axis=-1, keepdims=True) * inv_d
    centered = x - mean
    var = (jnp.sum(centered * centered, axis=-1, keepdims=True) * inv_d
           - (float(pad_count) * inv_d) * (mean * mean))
    inv_std = jax.lax.rsqrt(jnp.maximum(var, 0.0) + EPS)
    return mean, inv_std


def _node_block_kernel(idx_ref, edge_ref, node_ref, wnode_ref, wedge_ref, vec_ref,
                       out_ref, nodew_ref, *, dn, mxu_dtype):
    """One E-tile of message passing; accumulates the scatter-sum in out_ref."""
    step = pl.program_id(0)
    n_p, d_p = out_ref.shape           # padded node count, padded feature dim

    @pl.when(step == 0)
    def _():
        out_ref[...] = jnp.zeros_like(out_ref)
        # Fold the node-side linear into the gather: node_W = node @ [W_f | W_c].
        nodew_ref[...] = jnp.dot(
            node_ref[...].astype(mxu_dtype), wnode_ref[...],
            preferred_element_type=jnp.float32).astype(nodew_ref.dtype)

    idx = idx_ref[...]                                  # [tE, 1] int32 (-1 = padded edge)
    t_e = idx.shape[0]

    # One-hot assignment matrix onehot[e, n] = (i[e] == n).  Exact in bf16.
    onehot = (idx == jax.lax.broadcasted_iota(jnp.int32, (t_e, n_p), 1)).astype(mxu_dtype)

    # c = [c_filter | c_core]  (lane layout: filter half [0,Dp), core half [Dp,2Dp)).
    c = (jnp.dot(onehot, nodew_ref[...], preferred_element_type=jnp.float32)
         + jnp.dot(edge_ref[...], wedge_ref[...], preferred_element_type=jnp.float32)
         + vec_ref[0:1, :])                             # + bias           [tE, 2Dp] f32

    # LayerNorm over the 2*dn real features spanning both halves (two-pass, exact).
    mean1, inv_std1 = _layernorm_stats(c, 2 * dn, 2 * (d_p - dn))
    normed = (c - mean1) * inv_std1 * vec_ref[1:2, :] + vec_ref[2:3, :]

    nf = normed[:, :d_p]                                # filter half
    nc = normed[:, d_p:]                                # core half
    msg = jax.nn.sigmoid(nf) * jnp.tanh(nc)             # [tE, Dp] f32 (padded lanes -> 0)

    # Scatter-sum over i: contract the E axis of onehot and msg directly
    # (no onehot.T materialization before the MXU push).
    out_ref[...] += jax.lax.dot_general(
        onehot, msg.astype(mxu_dtype),
        dimension_numbers=(((0,), (0,)), ((), ())),
        preferred_element_type=jnp.float32)             # [Np, Dp]

    @pl.when(step == pl.num_programs(0) - 1)
    def _():
        agg = out_ref[...]
        mean2, inv_std2 = _layernorm_stats(agg, dn, d_p - dn)
        g2 = vec_ref[3:4, :d_p]
        b2 = vec_ref[3:4, d_p:]
        normed2 = (agg - mean2) * inv_std2 * g2 + b2
        out_ref[...] = jnp.tanh(node_ref[...] + normed2)


def prepare_node_block_params(params, *, mxu_dtype=jnp.bfloat16):
    """One-time weight padding / splitting / casting (hoist out of the forward)."""
    f32 = jnp.float32
    w_node = params["w_node"].astype(f32)          # [Dn, 2Dn]
    w_edge = params["w_edge"].astype(f32)          # [De, 2Dn]
    dn = w_node.shape[0]
    dp = _round_up(dn, LANE)

    def split_pad(w):
        # [rows, 2Dn] -> [rows, 2Dp]: filter cols -> lanes [0,Dn), core -> [Dp,Dp+Dn).
        out = jnp.zeros((w.shape[0], 2 * dp), f32)
        out = out.at[:, :dn].set(w[:, :dn])
        out = out.at[:, dp:dp + dn].set(w[:, dn:])
        return out

    w_node_fc = (jnp.zeros((dp, 2 * dp), f32)
                 .at[:dn, :].set(split_pad(w_node))).astype(mxu_dtype)   # [Dp, 2Dp]
    w_edge_fc = split_pad(w_edge).astype(mxu_dtype)                      # [De, 2Dp]

    def row2(v):                                   # [.., 2Dn] -> [1, 2Dp]
        return split_pad(jnp.reshape(v, (1, 2 * dn)).astype(f32))

    def row1(v):                                   # [.., Dn] -> [1, Dp]
        return jnp.zeros((1, dp), f32).at[:, :dn].set(jnp.reshape(v, (1, dn)).astype(f32))

    vec = jnp.zeros((8, 2 * dp), f32)
    vec = vec.at[0:1, :].set(row2(params["b"]))        # row 0: bias   (filter|core)
    vec = vec.at[1:2, :].set(row2(params["g1"]))       # row 1: gamma1 (filter|core)
    vec = vec.at[2:3, :].set(row2(params["b1"]))       # row 2: beta1  (filter|core)
    vec = vec.at[3:4, :dp].set(row1(params["g2"]))     # row 3, lanes [0,Dp):  gamma2
    vec = vec.at[3:4, dp:].set(row1(params["b2"]))     # row 3, lanes [Dp,2Dp): beta2

    return {"w_node_fc": w_node_fc, "w_edge_fc": w_edge_fc, "vec": vec,
            "dn": dn, "dp": dp, "mxu_dtype": mxu_dtype}


def node_block_forward(node_embedding, edge_embedding, i, prepared, *, tile_e=1024):
    """Pallas wrapper: pads activations to lane-dense layout, tiles over edges."""
    N, Dn = node_embedding.shape
    E, De = edge_embedding.shape
    dp = prepared["dp"]
    mxu_dtype = prepared["mxu_dtype"]
    assert Dn == prepared["dn"]

    Np = _round_up(N, SUBLANE)
    tE = min(_round_up(max(tile_e, MXU_TILE), MXU_TILE), _round_up(E, MXU_TILE))
    Ep = _round_up(E, tE)
    n_steps = Ep // tE

    f32 = jnp.float32
    node_p = jnp.zeros((Np, dp), f32).at[:N, :Dn].set(node_embedding.astype(f32))
    edge_p = (jnp.zeros((Ep, De), mxu_dtype)
              .at[:E, :].set(edge_embedding.astype(mxu_dtype)))
    idx_p = jnp.full((Ep, 1), -1, jnp.int32).at[:E, 0].set(i.astype(jnp.int32))

    w_node_fc = prepared["w_node_fc"]
    w_edge_fc = prepared["w_edge_fc"]
    vec = prepared["vec"]

    # --- advisory cost estimate ---
    flops = int(2 * Np * dp * 2 * dp
                + n_steps * (2 * tE * Np * 2 * dp      # gather (node path)
                             + 2 * tE * De * 2 * dp    # edge path
                             + 2 * tE * Np * dp        # scatter
                             + 24 * tE * dp)           # LN1 + gating elementwise
                + 16 * Np * dp)                        # final LN + residual + tanh
    transcendentals = int(n_steps * (2 * tE * dp + 2 * tE) + Np * dp + Np)
    operands = (idx_p, edge_p, node_p, w_node_fc, w_edge_fc, vec)
    bytes_accessed = int(sum(a.size * a.dtype.itemsize for a in operands) + Np * dp * 4)

    # --- VMEM budget (residents scale with Np; keep under v7x's 64 MiB) ---
    msz = jnp.dtype(mxu_dtype).itemsize
    resident = (2 * Np * dp * 4                       # node (double-buffered) 
                + 2 * Np * dp * 4                     # out
                + Np * 2 * dp * msz                   # node_W scratch
                + 2 * (dp * 2 * dp + De * 2 * dp) * msz
                + 2 * 8 * 2 * dp * 4)
    per_step = 2 * (tE * 4 + tE * De * msz)
    vmem_limit = int(min(max(resident + per_step + (8 << 20), 32 << 20), 56 << 20))

    grid_spec = pltpu.PrefetchScalarGridSpec(
        num_scalar_prefetch=0,
        grid=(n_steps,),
        in_specs=[
            pl.BlockSpec((tE, 1), lambda e: (e, 0)),            # idx tile
            pl.BlockSpec((tE, De), lambda e: (e, 0)),           # edge tile
            pl.BlockSpec((Np, dp), lambda e: (0, 0)),           # node (resident)
            pl.BlockSpec((dp, 2 * dp), lambda e: (0, 0)),       # W_node (filter|core)
            pl.BlockSpec((De, 2 * dp), lambda e: (0, 0)),       # W_edge (filter|core)
            pl.BlockSpec((8, 2 * dp), lambda e: (0, 0)),        # packed bias/gamma/beta
        ],
        out_specs=pl.BlockSpec((Np, dp), lambda e: (0, 0)),     # resident accumulator
        scratch_shapes=[pltpu.VMEM((Np, 2 * dp), mxu_dtype)],   # node_W = node @ W
    )

    out_padded = pl.pallas_call(
        functools.partial(_node_block_kernel, dn=Dn, mxu_dtype=mxu_dtype),
        out_shape=jax.ShapeDtypeStruct((Np, dp), jnp.float32),
        grid_spec=grid_spec,
        compiler_params=pltpu.CompilerParams(
            dimension_semantics=("arbitrary",),     # reduction over E into out_ref
            vmem_limit_bytes=vmem_limit),
        cost_estimate=pl.CostEstimate(flops=flops,
                                      transcendentals=transcendentals,
                                      bytes_accessed=bytes_accessed),
    )(*operands)

    return out_padded[:N, :Dn]


def _reference(node_embedding, edge_embedding, i, params):
    """Pure-JAX reference mirroring the PyTorch forward."""
    N, Dn = node_embedding.shape
    c1_in = jnp.concatenate([node_embedding[i], edge_embedding], axis=1)
    w_full = jnp.concatenate([params["w_node"], params["w_edge"]], axis=0)
    c1 = c1_in @ w_full + params["b"]
    mean = jnp.mean(c1, axis=-1, keepdims=True)
    var = jnp.mean((c1 - mean) ** 2, axis=-1, keepdims=True)
    c1 = (c1 - mean) / jnp.sqrt(var + EPS) * params["g1"] + params["b1"]
    c1_filter, c1_core = jnp.split(c1, 2, axis=1)
    msg = jax.nn.sigmoid(c1_filter) * jnp.tanh(c1_core)
    agg = jax.ops.segment_sum(msg, i, num_segments=N)
    mean2 = jnp.mean(agg, axis=-1, keepdims=True)
    var2 = jnp.mean((agg - mean2) ** 2, axis=-1, keepdims=True)
    agg = (agg - mean2) / jnp.sqrt(var2 + EPS) * params["g2"] + params["b2"]
    return jnp.tanh(node_embedding + agg)


def _make_case(key, N, E, Dn, De):
    k_node, k_edge, k_idx, k_w, k_b = jax.random.split(key, 5)
    node_embedding = jax.random.normal(k_node, (N, Dn), dtype=jnp.float32)
    edge_embedding = jax.random.normal(k_edge, (E, De), dtype=jnp.float32)
    i = jax.random.randint(k_idx, (E,), 0, N, dtype=jnp.int32)
    # torch Linear init: uniform(-1/sqrt(fan_in), +); LayerNorm reset: gamma=1, beta=0.
    fan_in = Dn + De
    bound = 1.0 / float(jnp.sqrt(jnp.float32(fan_in)))
    w_full = jax.random.uniform(k_w, (fan_in, 2 * Dn), jnp.float32, -bound, bound)
    params = {
        "w_node": w_full[:Dn, :],
        "w_edge": w_full[Dn:, :],
        "b": jax.random.uniform(k_b, (1, 2 * Dn), jnp.float32, -bound, bound),
        "g1": jnp.ones((1, 2 * Dn), jnp.float32),
        "b1": jnp.zeros((1, 2 * Dn), jnp.float32),
        "g2": jnp.ones((1, Dn), jnp.float32),
        "b2": jnp.zeros((1, Dn), jnp.float32),
    }
    return node_embedding, edge_embedding, i, params


def _check_case(key, N, E, Dn, De, tile_e):
    node_embedding, edge_embedding, i, params = _make_case(key, N, E, Dn, De)
    ref = _reference(node_embedding, edge_embedding, i, params)

    # f32 MXU path: tight validation against the reference.
    prep_f32 = prepare_node_block_params(params, mxu_dtype=jnp.float32)
    out_f32 = node_block_forward(node_embedding, edge_embedding, i, prep_f32,
                                 tile_e=tile_e)
    out_f32 = jax.block_until_ready(out_f32)
    assert out_f32.shape == (N, Dn)
    assert jnp.allclose(out_f32, ref, atol=1e-4, rtol=1e-4), "f32 mismatch vs reference"

    # bf16 MXU fast path (default on all generations): MXU operands rounded to bf16,
    # all normalization / gating math and accumulation stay f32 -> looser tolerance.
    prep_bf16 = prepare_node_block_params(params, mxu_dtype=jnp.bfloat16)
    out_bf16 = node_block_forward(node_embedding, edge_embedding, i, prep_bf16,
                                  tile_e=tile_e)
    out_bf16 = jax.block_until_ready(out_bf16)
    assert out_bf16.shape == (N, Dn)
    assert jnp.allclose(out_bf16, ref, atol=1e-1, rtol=1e-1), "bf16 mismatch vs reference"


if __name__ == "__main__":
    # Small shapes consistent with the module (single grid step).
    _check_case(jax.random.PRNGKey(0), N=8, E=24, Dn=32, De=16, tile_e=1024)
    # Multi-step grid (3 edge tiles of 256) to exercise the resident accumulator.
    _check_case(jax.random.PRNGKey(1), N=16, E=700, Dn=32, De=16, tile_e=256)
    print("KERNEL_OK")
</pallas_src>

<mosaic_0001>
module attributes {stable_mosaic.version = 11 : i64} {
  func.func @_node_block_kernel(%arg0: i32, %arg1: memref<256x1xi32, #tpu.memory_space<vmem>>, %arg2: memref<256x16xf32, #tpu.memory_space<vmem>>, %arg3: memref<8x128xf32, #tpu.memory_space<vmem>>, %arg4: memref<128x256xf32, #tpu.memory_space<vmem>>, %arg5: memref<16x256xf32, #tpu.memory_space<vmem>>, %arg6: memref<8x256xf32, #tpu.memory_space<vmem>>, %arg7: memref<8x128xf32, #tpu.memory_space<vmem>>, %arg8: memref<8x256xf32, #tpu.memory_space<vmem>>) attributes {dimension_semantics = [#tpu.dimension_semantics<arbitrary>], iteration_bounds = array<i64: 1>, scalar_prefetch = 0 : i64, scratch_operands = 1 : i64, tpu.core_type = #tpu.core_type<tc>, window_params = [{transform_indices = @transform_0, window_bounds = array<i64: 256, 1>}, {transform_indices = @transform_1, window_bounds = array<i64: 256, 16>}, {pipeline_mode = #tpu.pipeline_mode<synchronous>, transform_indices = @transform_2, window_bounds = array<i64: 8, 128>}, {pipeline_mode = #tpu.pipeline_mode<synchronous>, transform_indices = @transform_3, window_bounds = array<i64: 128, 256>}, {pipeline_mode = #tpu.pipeline_mode<synchronous>, transform_indices = @transform_4, window_bounds = array<i64: 16, 256>}, {pipeline_mode = #tpu.pipeline_mode<synchronous>, transform_indices = @transform_5, window_bounds = array<i64: 8, 256>}, {pipeline_mode = #tpu.pipeline_mode<synchronous>, transform_indices = @transform_6, window_bounds = array<i64: 8, 128>}]} {
    %c0_i32 = arith.constant 0 : i32
    %0 = arith.cmpi eq, %arg0, %c0_i32 : i32
    %1 = arith.extui %0 : i1 to i32
    %c0_i32_0 = arith.constant 0 : i32
    %2 = arith.cmpi ne, %1, %c0_i32_0 : i32
    scf.if %2 {
      %cst_28 = arith.constant 0.000000e+00 : f32
      %64 = vector.broadcast %cst_28 : f32 to vector<8x128xf32>
      %c0_29 = arith.constant 0 : index
      %c0_30 = arith.constant 0 : index
      %65 = vector.load %arg7[%c0_29, %c0_30] : memref<8x128xf32, #tpu.memory_space<vmem>>, vector<8x128xf32>
      tpu.vector_store %arg7[%c0_29, %c0_30], %64 {strides = array<i32>} : memref<8x128xf32, #tpu.memory_space<vmem>>, vector<8x128xf32>,
      %c0_31 = arith.constant 0 : index
      %c0_32 = arith.constant 0 : index
      %66 = vector.load %arg3[%c0_31, %c0_32] : memref<8x128xf32, #tpu.memory_space<vmem>>, vector<8x128xf32>
      %c0_33 = arith.constant 0 : index
      %c0_34 = arith.constant 0 : index
      %67 = vector.load %arg4[%c0_33, %c0_34] : memref<128x256xf32, #tpu.memory_space<vmem>>, vector<128x256xf32>
      %cst_35 = arith.constant dense<0.000000e+00> : vector<8x256xf32>
      %68 = tpu.matmul %66, %67, %cst_35 {dimension_numbers = #tpu.dot_dimension_numbers<[1], [0], [0], [1], [0, 0, 1, 1], [], []>} : vector<8x128xf32>, vector<128x256xf32>, vector<8x256xf32> -> vector<8x256xf32>
      %c0_36 = arith.constant 0 : index
      %c0_37 = arith.constant 0 : index
      %69 = vector.load %arg8[%c0_36, %c0_37] : memref<8x256xf32, #tpu.memory_space<vmem>>, vector<8x256xf32>
      tpu.vector_store %arg8[%c0_36, %c0_37], %68 {strides = array<i32>} : memref<8x256xf32, #tpu.memory_space<vmem>>, vector<8x256xf32>,
    } else {
    }
    %c0 = arith.constant 0 : index
    %c0_1 = arith.constant 0 : index
    %3 = vector.load %arg1[%c0, %c0_1] : memref<256x1xi32, #tpu.memory_space<vmem>>, vector<256x1xi32>
    %4 = tpu.iota {dimensions = array<i32: 1>} : vector<256x8xi32>
    %5 = vector.broadcast %3 : vector<256x1xi32> to vector<256x8xi32>
    %6 = arith.cmpi eq, %5, %4 : vector<256x8xi32>
    %7 = arith.extui %6 : vector<256x8xi1> to vector<256x8xi32>
    %8 = arith.sitofp %7 : vector<256x8xi32> to vector<256x8xf32>
    %c0_2 = arith.constant 0 : index
    %c0_3 = arith.constant 0 : index
    %9 = vector.load %arg8[%c0_2, %c0_3] : memref<8x256xf32, #tpu.memory_space<vmem>>, vector<8x256xf32>
    %cst = arith.constant dense<0.000000e+00> : vector<256x256xf32>
    %10 = tpu.matmul %8, %9, %cst {dimension_numbers = #tpu.dot_dimension_numbers<[1], [0], [0], [1], [0, 0, 1, 1], [], []>} : vector<256x8xf32>, vector<8x256xf32>, vector<256x256xf32> -> vector<256x256xf32>
    %c0_4 = arith.constant 0 : index
    %c0_5 = arith.constant 0 : index
    %11 = vector.load %arg2[%c0_4, %c0_5] : memref<256x16xf32, #tpu.memory_space<vmem>>, vector<256x16xf32>
    %c0_6 = arith.constant 0 : index
    %c0_7 = arith.constant 0 : index
    %12 = vector.load %arg5[%c0_6, %c0_7] : memref<16x256xf32, #tpu.memory_space<vmem>>, vector<16x256xf32>
    %cst_8 = arith.constant dense<0.000000e+00> : vector<256x256xf32>
    %13 = tpu.matmul %11, %12, %cst_8 {dimension_numbers = #tpu.dot_dimension_numbers<[1], [0], [0], [1], [0, 0, 1, 1], [], []>} : vector<256x16xf32>, vector<16x256xf32>, vector<256x256xf32> -> vector<256x256xf32>
    %14 = arith.addf %10, %13 : vector<256x256xf32>
    %c0_9 = arith.constant 0 : index
    %c0_10 = arith.constant 0 : index
    %15 = vector.load %arg6[%c0_9, %c0_10] : memref<8x256xf32, #tpu.memory_space<vmem>>, vector<1x256xf32>
    %16 = vector.broadcast %15 : vector<1x256xf32> to vector<256x256xf32>
    %17 = arith.addf %14, %16 : vector<256x256xf32>
    %cst_11 = arith.constant dense<0.000000e+00> : vector<256xf32>
    %18 = vector.multi_reduction <add>, %17, %cst_11 [1] : vector<256x256xf32> to vector<256xf32>
    %19 = vector.shape_cast %18 : vector<256xf32> to vector<256x1xf32>
    %cst_12 = arith.constant 1.562500e-02 : f32
    %20 = vector.broadcast %cst_12 : f32 to vector<256x1xf32>
    %21 = arith.mulf %19, %20 : vector<256x1xf32>
    %22 = vector.broadcast %21 : vector<256x1xf32> to vector<256x256xf32>
    %23 = arith.subf %17, %22 : vector<256x256xf32>
    %24 = arith.mulf %23, %23 : vector<256x256xf32>
    %cst_13 = arith.constant dense<0.000000e+00> : vector<256xf32>
    %25 = vector.multi_reduction <add>, %24, %cst_13 [1] : vector<256x256xf32> to vector<256xf32>
    %26 = vector.shape_cast %25 : vector<256xf32> to vector<256x1xf32>
    %cst_14 = arith.constant 1.562500e-02 : f32
    %27 = vector.broadcast %cst_14 : f32 to vector<256x1xf32>
    %28 = arith.mulf %26, %27 : vector<256x1xf32>
    %29 = arith.mulf %21, %21 : vector<256x1xf32>
    %cst_15 = arith.constant 3.000000e+00 : f32
    %30 = vector.broadcast %cst_15 : f32 to vector<256x1xf32>
    %31 = arith.mulf %30, %29 : vector<256x1xf32>
    %32 = arith.subf %28, %31 : vector<256x1xf32>
    %cst_16 = arith.constant 0.000000e+00 : f32
    %33 = vector.broadcast %cst_16 : f32 to vector<256x1xf32>
    %34 = arith.maximumf %32, %33 : vector<256x1xf32>
    %cst_17 = arith.constant 9.99999974E-6 : f32
    %35 = vector.broadcast %cst_17 : f32 to vector<256x1xf32>
    %36 = arith.addf %34, %35 : vector<256x1xf32>
    %37 = math.rsqrt %36 : vector<256x1xf32>
    %38 = vector.broadcast %21 : vector<256x1xf32> to vector<256x256xf32>
    %39 = arith.subf %17, %38 : vector<256x256xf32>
    %40 = vector.broadcast %37 : vector<256x1xf32> to vector<256x256xf32>
    %41 = arith.mulf %39, %40 : vector<256x256xf32>
    %c1 = arith.constant 1 : index
    %c0_18 = arith.constant 0 : index
    %42 = vector.load %arg6[%c1, %c0_18] : memref<8x256xf32, #tpu.memory_space<vmem>>, vector<1x256xf32>
    %43 = vector.broadcast %42 : vector<1x256xf32> to vector<256x256xf32>
    %44 = arith.mulf %41, %43 : vector<256x256xf32>
    %c2 = arith.constant 2 : index
    %c0_19 = arith.constant 0 : index
    %45 = vector.load %arg6[%c2, %c0_19] : memref<8x256xf32, #tpu.memory_space<vmem>>, vector<1x256xf32>
    %46 = vector.broadcast %45 : vector<1x256xf32> to vector<256x256xf32>
    %47 = arith.addf %44, %46 : vector<256x256xf32>
    %48 = vector.extract_strided_slice %47 {offsets = [0, 0], sizes = [256, 128], strides = [1, 1]} : vector<256x256xf32> to vector<256x128xf32>
    %49 = vector.extract_strided_slice %47 {offsets = [0, 128], sizes = [256, 128], strides = [1, 1]} : vector<256x256xf32> to vector<256x128xf32>
    %50 = arith.negf %48 : vector<256x128xf32>
    %51 = math.exp %50 : vector<256x128xf32>
    %cst_20 = arith.constant 1.000000e+00 : f32
    %52 = vector.broadcast %cst_20 : f32 to vector<256x128xf32>
    %53 = arith.addf %52, %51 : vector<256x128xf32>
    %54 = arith.divf %52, %53 : vector<256x128xf32>
    %55 = math.tanh %49 : vector<256x128xf32>
    %56 = arith.mulf %54, %55 : vector<256x128xf32>
    %c0_21 = arith.constant 0 : index
    %c0_22 = arith.constant 0 : index
    %57 = vector.load %arg7[%c0_21, %c0_22] : memref<8x128xf32, #tpu.memory_space<vmem>>, vector<8x128xf32>
    %cst_23 = arith.constant dense<0.000000e+00> : vector<8x128xf32>
    %58 = tpu.matmul %8, %56, %cst_23 {dimension_numbers = #tpu.dot_dimension_numbers<[0], [0], [1], [1], [0, 1, 1, 1], [], []>} : vector<256x8xf32>, vector<256x128xf32>, vector<8x128xf32> -> vector<8x128xf32>
    %59 = arith.addf %57, %58 : vector<8x128xf32>
    %c0_24 = arith.constant 0 : index
    %c0_25 = arith.constant 0 : index
    %60 = vector.load %arg7[%c0_24, %c0_25] : memref<8x128xf32, #tpu.memory_space<vmem>>, vector<8x128xf32>
    tpu.vector_store %arg7[%c0_24, %c0_25], %59 {strides = array<i32>} : memref<8x128xf32, #tpu.memory_space<vmem>>, vector<8x128xf32>,
    %c0_i32_26 = arith.constant 0 : i32
    %61 = arith.cmpi eq, %arg0, %c0_i32_26 : i32
    %62 = arith.extui %61 : i1 to i32
    %c0_i32_27 = arith.constant 0 : i32
    %63 = arith.cmpi ne, %62, %c0_i32_27 : i32
    scf.if %63 {
      %c0_28 = arith.constant 0 : index
      %c0_29 = arith.constant 0 : index
      %64 = vector.load %arg7[%c0_28, %c0_29] : memref<8x128xf32, #tpu.memory_space<vmem>>, vector<8x128xf32>
      %cst_30 = arith.constant dense<0.000000e+00> : vector<8xf32>
      %65 = vector.multi_reduction <add>, %64, %cst_30 [1] : vector<8x128xf32> to vector<8xf32>
      %66 = vector.shape_cast %65 : vector<8xf32> to vector<8x1xf32>
      %cst_31 = arith.constant 3.125000e-02 : f32
      %67 = vector.broadcast %cst_31 : f32 to vector<8x1xf32>
      %68 = arith.mulf %66, %67 : vector<8x1xf32>
      %69 = vector.broadcast %68 : vector<8x1xf32> to vector<8x128xf32>
      %70 = arith.subf %64, %69 : vector<8x128xf32>
      %71 = arith.mulf %70, %70 : vector<8x128xf32>
      %cst_32 = arith.constant dense<0.000000e+00> : vector<8xf32>
      %72 = vector.multi_reduction <add>, %71, %cst_32 [1] : vector<8x128xf32> to vector<8xf32>
      %73 = vector.shape_cast %72 : vector<8xf32> to vector<8x1xf32>
      %cst_33 = arith.constant 3.125000e-02 : f32
      %74 = vector.broadcast %cst_33 : f32 to vector<8x1xf32>
      %75 = arith.mulf %73, %74 : vector<8x1xf32>
      %76 = arith.mulf %68, %68 : vector<8x1xf32>
      %cst_34 = arith.constant 3.000000e+00 : f32
      %77 = vector.broadcast %cst_34 : f32 to vector<8x1xf32>
      %78 = arith.mulf %77, %76 : vector<8x1xf32>
      %79 = arith.subf %75, %78 : vector<8x1xf32>
      %cst_35 = arith.constant 0.000000e+00 : f32
      %80 = vector.broadcast %cst_35 : f32 to vector<8x1xf32>
      %81 = arith.maximumf %79, %80 : vector<8x1xf32>
      %cst_36 = arith.constant 9.99999974E-6 : f32
      %82 = vector.broadcast %cst_36 : f32 to vector<8x1xf32>
      %83 = arith.addf %81, %82 : vector<8x1xf32>
      %84 = math.rsqrt %83 : vector<8x1xf32>
      %c3 = arith.constant 3 : index
      %c0_37 = arith.constant 0 : index
      %85 = vector.load %arg6[%c3, %c0_37] : memref<8x256xf32, #tpu.memory_space<vmem>>, vector<1x128xf32>
      %c3_38 = arith.constant 3 : index
      %c128 = arith.constant 128 : index
      %86 = vector.load %arg6[%c3_38, %c128] : memref<8x256xf32, #tpu.memory_space<vmem>>, vector<1x128xf32>
      %87 = vector.broadcast %68 : vector<8x1xf32> to vector<8x128xf32>
      %88 = arith.subf %64, %87 : vector<8x128xf32>
      %89 = vector.broadcast %84 : vector<8x1xf32> to vector<8x128xf32>
      %90 = arith.mulf %88, %89 : vector<8x128xf32>
      %91 = vector.broadcast %85 : vector<1x128xf32> to vector<8x128xf32>
      %92 = arith.mulf %90, %91 : vector<8x128xf32>
      %93 = vector.broadcast %86 : vector<1x128xf32> to vector<8x128xf32>
      %94 = arith.addf %92, %93 : vector<8x128xf32>
      %c0_39 = arith.constant 0 : index
      %c0_40 = arith.constant 0 : index
      %95 = vector.load %arg3[%c0_39, %c0_40] : memref<8x128xf32, #tpu.memory_space<vmem>>, vector<8x128xf32>
      %96 = arith.addf %95, %94 : vector<8x128xf32>
      %97 = math.tanh %96 : vector<8x128xf32>
      %c0_41 = arith.constant 0 : index
      %c0_42 = arith.constant 0 : index
      %98 = vector.load %arg7[%c0_41, %c0_42] : memref<8x128xf32, #tpu.memory_space<vmem>>, vector<8x128xf32>
      tpu.vector_store %arg7[%c0_41, %c0_42], %97 {strides = array<i32>} : memref<8x128xf32, #tpu.memory_space<vmem>>, vector<8x128xf32>,
    } else {
    }
    return
  }
  func.func @transform_0(%arg0: i32) -> (i32, i32) {
    %c0_i32 = arith.constant 0 : i32
    %c0_i32_0 = arith.constant 0 : i32
    return %arg0, %c0_i32 : i32, i32
  }
  func.func @transform_1(%arg0: i32) -> (i32, i32) {
    %c0_i32 = arith.constant 0 : i32
    %c0_i32_0 = arith.constant 0 : i32
    return %arg0, %c0_i32 : i32, i32
  }
  func.func @transform_2(%arg0: i32) -> (i32, i32) {
    %c0_i32 = arith.constant 0 : i32
    %c0_i32_0 = arith.constant 0 : i32
    %c0_i32_1 = arith.constant 0 : i32
    return %c0_i32, %c0_i32_0 : i32, i32
  }
  func.func @transform_3(%arg0: i32) -> (i32, i32) {
    %c0_i32 = arith.constant 0 : i32
    %c0_i32_0 = arith.constant 0 : i32
    %c0_i32_1 = arith.constant 0 : i32
    return %c0_i32, %c0_i32_0 : i32, i32
  }
  func.func @transform_4(%arg0: i32) -> (i32, i32) {
    %c0_i32 = arith.constant 0 : i32
    %c0_i32_0 = arith.constant 0 : i32
    %c0_i32_1 = arith.constant 0 : i32
    return %c0_i32, %c0_i32_0 : i32, i32
  }
  func.func @transform_5(%arg0: i32) -> (i32, i32) {
    %c0_i32 = arith.constant 0 : i32
    %c0_i32_0 = arith.constant 0 : i32
    %c0_i32_1 = arith.constant 0 : i32
    return %c0_i32, %c0_i32_0 : i32, i32
  }
  func.func @transform_6(%arg0: i32) -> (i32, i32) {
    %c0_i32 = arith.constant 0 : i32
    %c0_i32_0 = arith.constant 0 : i32
    %c0_i32_1 = arith.constant 0 : i32
    return %c0_i32, %c0_i32_0 : i32, i32
  }
}

</mosaic_0001>

<bundles_post_ra>
// kernel: tpu_custom_call.1
= control target key start
LH: loop header
LB: loop body
LE: loop exit
PB: predicated region body
PF: predicated region fallthrough
CT: control target
= control target key end

     0   :  { %v2900_v4 = vmov 0.0   ;;  %v2901_v6 = vmov 0   ;;  %s5050_s0 = inlined_call_operand.vmem [shape: s32[256,1], index: 0, kind: input, shape index: {}]   ;;  %s5051_s1 = inlined_call_operand.vmem [shape: f32[256,16], index: 1, kind: input, shape index: {}]   ;;  %s5052_s2 = inlined_call_operand.vmem [shape: f32[8,128], index: 2, kind: input, shape index: {}]   ;;  %s5053_s3 = inlined_call_operand.vmem [shape: f32[128,256], index: 3, kind: input, shape index: {}]   ;;  %s5054_s4 = inlined_call_operand.vmem [shape: f32[16,256], index: 4, kind: input, shape index: {}]   ;;  %s5055_s5 = inlined_call_operand.vmem [shape: f32[8,256], index: 5, kind: input, shape index: {}]   ;;  %s5056_s6 = inlined_call_operand.hbm [shape: f32[8,128], index: 6, kind: output, shape index: {}]  }
   0x1   :  { %v61_v0 = vld [vmem:[%s5053_s3 + $0xf8] sm:$0xff]  ;;  %v60_v1 = vld [vmem:[%s5053_s3 + $0xf0] sm:$0xff]  ;;  %v59_v2 = vld [vmem:[%s5053_s3 + $0xe8] sm:$0xff]  ;;  %126 = vmatprep.mubr.f32.mxu0 %v2900_v4  ;;  %2579 = vset.pattern.permute.xlu0 %v2901_v6 }
   0x2   :  { %62 = vmatprep.subr.mxu0 %v61_v0  ;;  %v58_v3 = vld [vmem:[%s5053_s3 + $0xe0] sm:$0xff]  ;;  %v57_v5 = vld [vmem:[%s5053_s3 + $0xd8] sm:$0xff]  ;;  %v56_v7 = vld [vmem:[%s5053_s3 + $0xd0] sm:$0xff]  ;;  %2580 = vset.pattern.permute.xlu1 %v2901_v6 }
   0x3   :  { %63 = vmatpush1.msra.mxu0 %v60_v1  ;;  %v55_v8 = vld [vmem:[%s5053_s3 + $0xc8] sm:$0xff]  ;;  %560 = vmatprep.mubr.f32.mxu1 %v2900_v4  ;;  %v54_v9 = vld [vmem:[%s5053_s3 + $0xc0] sm:$0xff]  ;;  %v53_v10 = vld [vmem:[%s5053_s3 + $0xb8] sm:$0xff] }
   0x4   :  { %64 = vmatprep.subr.mxu0 %v59_v2  ;;  %v52_v11 = vld [vmem:[%s5053_s3 + $0xb0] sm:$0xff]  ;;  %v51_v12 = vld [vmem:[%s5053_s3 + $0xa8] sm:$0xff]  ;;  %v50_v13 = vld [vmem:[%s5053_s3 + $0xa0] sm:$0xff] }
   0x5   :  { %65 = vmatpush1.msra.mxu0 %v58_v3  ;;  %v49_v14 = vld [vmem:[%s5053_s3 + $0x98] sm:$0xff]  ;;  %v48_v15 = vld [vmem:[%s5053_s3 + $0x90] sm:$0xff]  ;;  %v135_v16 = vld [vmem:[%s5050_s0] sm:$0xff] }
   0x6   :  { %66 = vmatprep.subr.mxu0 %v57_v5  ;;  %v137_v17 = vld [vmem:[%s5050_s0 + $0x10] sm:$0xff]  ;;  %v47_v18 = vld [vmem:[%s5053_s3 + $0x88] sm:$0xff]  ;;  %170 = vperm.xlu0 %2579, %v135_v16   ;;  %v46_v19 = vld [vmem:[%s5053_s3 + $0x80] sm:$0xff] }
   0x7   :  { %67 = vmatpush1.msra.mxu0 %v56_v7  ;;  %v136_v20 = vld [vmem:[%s5050_s0 + $0x8] sm:$0xff]  ;;  %176 = vperm.xlu1 %2580, %v137_v17   ;;  %v45_v21 = vld [vmem:[%s5053_s3 + $0x78] sm:$0xff]  ;;  %v44_v23 = vld [vmem:[%s5053_s3 + $0x70] sm:$0xff] }
   0x8   :  { %68 = vmatprep.subr.mxu0 %v55_v8  ;;  %v138_v22 = vld [vmem:[%s5050_s0 + $0x18] sm:$0xff]  ;;  %v43_v24 = vld [vmem:[%s5053_s3 + $0x68] sm:$0xff]  ;;  %v42_v25 = vld [vmem:[%s5053_s3 + $0x60] sm:$0xff] }
   0x9   :  { %69 = vmatpush1.msra.mxu0 %v54_v9  ;;  %v139_v26 = vld [vmem:[%s5050_s0 + $0x20] sm:$0xff]  ;;  %v41_v27 = vld [vmem:[%s5053_s3 + $0x58] sm:$0xff]  ;;  %v140_v28 = vld [vmem:[%s5050_s0 + $0x28] sm:$0xff] }
   0xa   :  { %70 = vmatprep.subr.mxu0 %v53_v10  ;;  %173 = vperm.xlu0 %2579, %v136_v20   ;;  %v40_v29 = vld [vmem:[%s5053_s3 + $0x50] sm:$0xff]  ;;  %v39_v30 = vld [vmem:[%s5053_s3 + $0x48] sm:$0xff]  ;;  %v38_v31 = vld [vmem:[%s5053_s3 + $0x40] sm:$0xff] }
   0xb   :  { %71 = vmatpush1.msra.mxu0 %v52_v11  ;;  %179 = vperm.xlu1 %2580, %v138_v22   ;;  %v141_v32 = vld [vmem:[%s5050_s0 + $0x30] sm:$0xff] }
   0xc   :  { %72 = vmatprep.subr.mxu0 %v51_v12 }
   0xd   :  { %73 = vmatpush1.msra.mxu0 %v50_v13 }
   0xe   :  { %74 = vmatprep.subr.mxu0 %v49_v14  ;;  %182 = vperm.xlu0 %2579, %v139_v26  }
   0xf   :  { %75 = vmatpush1.msra.mxu0 %v48_v15  ;;  %185 = vperm.xlu1 %2580, %v140_v28  }
  0x10   :  { %76 = vmatprep.subr.mxu0 %v47_v18 }
  0x11   :  { %77 = vmatpush1.msra.mxu0 %v46_v19 }
  0x12   :  { %78 = vmatprep.subr.mxu0 %v45_v21 }
  0x13   :  { %79 = vmatpush1.msra.mxu0 %v44_v23 }
  0x14   :  { %80 = vmatprep.subr.mxu0 %v43_v24 }
  0x15   :  { %81 = vmatpush1.msra.mxu0 %v42_v25 }
  0x16   :  { %82 = vmatprep.subr.mxu0 %v41_v27 }
  0x17   :  { %11 = vsyncpa [#allocation4], 0  ;;  %83 = vmatpush1.msra.mxu0 %v40_v29  ;;  %v37_v33 = vld [vmem:[%s5053_s3 + $0x38] sm:$0xff]  ;;  %v36_v35 = vld [vmem:[%s5053_s3 + $0x30] sm:$0xff]  ;;  %188 = vperm.xlu0 %2579, %v141_v32   ;;  %vm399_vm0 = vcmask 130048   ;;  %vm753_vm2 = vcmask 64512  }
  0x18   :  { %v142_v34 = vld [vmem:[%s5050_s0 + $0x38] sm:$0xff]  ;;  %84 = vmatprep.subr.mxu0 %v39_v30  ;;  %v35_v36 = vld [vmem:[%s5053_s3 + $0x28] sm:$0xff]  ;;  %v34_v37 = vld [vmem:[%s5053_s3 + $0x20] sm:$0xff]  ;;  %s2902_s7 = smov [#allocation3]  }
  0x19   :  { %85 = vmatpush1.msra.mxu0 %v38_v31  ;;  %v143_v38 = vld [vmem:[%s5050_s0 + $0x40] sm:$0xff]  ;;  %191 = vperm.xlu1 %2580, %v142_v34   ;;  %v33_v39 = vld [vmem:[%s5053_s3 + $0x18] sm:$0xff]  ;;  %v144_v40 = vld [vmem:[%s5050_s0 + $0x48] sm:$0xff]  ;;  %s2403_s8 = sshll.u32 %s2902_s7, 4  ;;  %s2404_s8 = int_to_ptr.vmem [resolvable:$true] %s2403_s8 }
  0x1a   :  { %86 = vmatprep.subr.mxu0 %v37_v33  ;;  %v32_v41 = vld [vmem:[%s5053_s3 + $0x10] sm:$0xff]  ;;  %v31_v42 = vld [vmem:[%s5053_s3 + $0x8] sm:$0xff]  ;;  %v30_v43 = vld [vmem:[%s5053_s3] sm:$0xff]  ;;  %s2878_s9 = scalar_lea.vmem %s2404_s8, 128  ;;  %p2883_p1 = scmp.lt.s32.totalorder %s2404_s8, %s2404_s8 }
  0x1b   :  { %87 = vmatpush1.msra.mxu0 %v36_v35  ;;  %194 = vperm.xlu0 %2579, %v143_v38   ;;  %v145_v44 = vld [vmem:[%s5050_s0 + $0x50] sm:$0xff]  ;;  %v29_v45 = vld [vmem:[%s5052_s2] sm:$0xff]  ;;  %v146_v46 = vld [vmem:[%s5050_s0 + $0x58] sm:$0xff]  ;;  %v5057_v38 = vlaneseq  ;;  %p2879_p0 = scmp.ne.s32.totalorder %s2404_s8, %s2878_s9  ;;  %p2884_p2 = scmp.lt.s32.totalorder %s2878_s9, %s2878_s9 }
  0x1c   :  { %88 = vmatprep.subr.mxu0 %v35_v36  ;;  %v147_v47 = vld [vmem:[%s5050_s0 + $0x60] sm:$0xff]  ;;  %v148_v48 = vld [vmem:[%s5050_s0 + $0x68] sm:$0xff]  ;;  %v149_v49 = vld [vmem:[%s5050_s0 + $0x70] sm:$0xff] }
  0x1d   :  { %89 = vmatpush1.msra.mxu0 %v34_v37  ;;  %197 = vperm.xlu1 %2580, %v144_v40   ;;  %v150_v50 = vld [vmem:[%s5050_s0 + $0x78] sm:$0xff]  ;;  %v151_v51 = vld [vmem:[%s5050_s0 + $0x80] sm:$0xff]  ;;  %v152_v52 = vld [vmem:[%s5050_s0 + $0x88] sm:$0xff]  ;;  %v3302_v40 = vand.u32 127, %v5057_v38  ;;  %p2885_p3 = por %p2884_p2, %p2883_p1 }
  0x1e   :  { %90 = vmatprep.subr.mxu0 %v33_v39  ;;  %v153_v53 = vld [vmem:[%s5050_s0 + $0x90] sm:$0xff]  ;;  %v154_v54 = vld [vmem:[%s5050_s0 + $0x98] sm:$0xff]  ;;  %v155_v55 = vld [vmem:[%s5050_s0 + $0xa0] sm:$0xff] }
  0x1f   :  { %91 = vmatpush1.msra.mxu0 %v32_v41  ;;  %200 = vperm.xlu0 %2579, %v145_v44   ;;  %v156_v56 = vld [vmem:[%s5050_s0 + $0xa8] sm:$0xff]  ;;  %v157_v57 = vld [vmem:[%s5050_s0 + $0xb0] sm:$0xff]  ;;  %v158_v58 = vld [vmem:[%s5050_s0 + $0xb8] sm:$0xff]  ;;  %p2886_p4 = pnand %p2885_p3, %p2879_p0 }
  0x20   :  { %92 = vmatprep.subr.mxu0 %v31_v42  ;;  %v159_v59 = vld [vmem:[%s5050_s0 + $0xc0] sm:$0xff]  ;;  %v160_v60 = vld [vmem:[%s5050_s0 + $0xc8] sm:$0xff]  ;;  %v161_v61 = vld [vmem:[%s5050_s0 + $0xd0] sm:$0xff] }
  0x21   :  { %93 = vmatpush1.msra.mxu0 %v30_v43  ;;  %203 = vperm.xlu1 %2580, %v146_v46   ;;  %v162_v62 = vld [vmem:[%s5050_s0 + $0xd8] sm:$0xff]  ;;  %v163_v63 = vld [vmem:[%s5050_s0 + $0xe0] sm:$0xff]  ;;  %v164_v0 = vld [vmem:[%s5050_s0 + $0xe8] sm:$0xff] }
  0x22   :  { %127 = vmatmul.mubr.f32.vlgmr.msra.gmra.mxu0 %v29_v45  ;;  %v398_v1 = vld [vmem:[%s5054_s4 + $0x18] sm:$0xff]  ;;  %v165_v2 = vld [vmem:[%s5050_s0 + $0xf0] sm:$0xff]  ;;  %v396_v6 = vld [vmem:[%s5054_s4 + $0x8] sm:$0xff] }
  0x23   :  { %914 = vmatprep.mubr.f32.mxu0 %v2900_v4  ;;  %206 = vperm.xlu0 %2579, %v147_v47   ;;  %v166_v3 = vld [vmem:[%s5050_s0 + $0xf8] sm:$0xff]  ;;  %v397_v5 = vld [vmem:[%s5054_s4 + $0x10] sm:$0xff]  ;;  %v395_v7 = vld [vmem:[%s5054_s4] sm:$0xff] }
  0x24   :  { %524 = vmatprep.subr.mxu1 %v398_v1  ;;  %v363_v8 = vld [vmem:[%s5051_s1] sm:$0xff]  ;;  %v364_v9 = vld [vmem:[%s5051_s1 + $0x8] sm:$0xff]  ;;  %v365_v10 = vld [vmem:[%s5051_s1 + $0x10] sm:$0xff] }
  0x25   :  { %209 = vperm.xlu1 %2580, %v148_v48   ;;  %525 = vmatpush1.msra.mxu1 %v397_v5  ;;  %v366_v11 = vld [vmem:[%s5051_s1 + $0x18] sm:$0xff]  ;;  %v367_v12 = vld [vmem:[%s5051_s1 + $0x20] sm:$0xff]  ;;  %v368_v13 = vld [vmem:[%s5051_s1 + $0x28] sm:$0xff] }
  0x26   :  { %526 = vmatprep.subr.mxu1 %v396_v6  ;;  %v369_v14 = vld [vmem:[%s5051_s1 + $0x30] sm:$0xff]  ;;  %v370_v15 = vld [vmem:[%s5051_s1 + $0x38] sm:$0xff]  ;;  %v371_v16 = vld [vmem:[%s5051_s1 + $0x40] sm:$0xff] }
  0x27   :  { %212 = vperm.xlu0 %2579, %v149_v49   ;;  %527 = vmatpush1.msra.mxu1 %v395_v7  ;;  %v372_v17 = vld [vmem:[%s5051_s1 + $0x48] sm:$0xff]  ;;  %v373_v18 = vld [vmem:[%s5051_s1 + $0x50] sm:$0xff]  ;;  %v374_v19 = vld [vmem:[%s5051_s1 + $0x58] sm:$0xff] }
  0x28   :  { %2443 = vmatmul.mubr.msk.f32.vlgmr.msra.gmra.mxu1 %vm399_vm0, %v363_v8  ;;  %v375_v20 = vld [vmem:[%s5051_s1 + $0x60] sm:$0xff]  ;;  %v376_v21 = vld [vmem:[%s5051_s1 + $0x68] sm:$0xff]  ;;  %v377_v22 = vld [vmem:[%s5051_s1 + $0x70] sm:$0xff] }
  0x29   :  { %215 = vperm.xlu1 %2580, %v150_v50   ;;  %566 = vmatprep.mubr.f32.mxu1 %v2900_v4  ;;  %v378_v23 = vld [vmem:[%s5051_s1 + $0x78] sm:$0xff]  ;;  %v379_v24 = vld [vmem:[%s5051_s1 + $0x80] sm:$0xff]  ;;  %v380_v25 = vld [vmem:[%s5051_s1 + $0x88] sm:$0xff] }
  0x2a   :  { %v381_v26 = vld [vmem:[%s5051_s1 + $0x90] sm:$0xff]  ;;  %v382_v27 = vld [vmem:[%s5051_s1 + $0x98] sm:$0xff]  ;;  %v383_v28 = vld [vmem:[%s5051_s1 + $0xa0] sm:$0xff] }
  0x2b   :  { %218 = vperm.xlu0 %2579, %v151_v51   ;;  %v384_v29 = vld [vmem:[%s5051_s1 + $0xa8] sm:$0xff]  ;;  %v385_v30 = vld [vmem:[%s5051_s1 + $0xb0] sm:$0xff]  ;;  %v386_v31 = vld [vmem:[%s5051_s1 + $0xb8] sm:$0xff] }
  0x2c   :  { %2444 = vmatmul.mubr.msk.f32.gmra.mxu1 %vm399_vm0, %v364_v9  ;;  %v387_v32 = vld [vmem:[%s5051_s1 + $0xc0] sm:$0xff]  ;;  %v388_v33 = vld [vmem:[%s5051_s1 + $0xc8] sm:$0xff]  ;;  %v389_v34 = vld [vmem:[%s5051_s1 + $0xd0] sm:$0xff] }
  0x2d   :  { %221 = vperm.xlu1 %2580, %v152_v52   ;;  %572 = vmatprep.mubr.f32.mxu1 %v2900_v4  ;;  %v390_v35 = vld [vmem:[%s5051_s1 + $0xd8] sm:$0xff]  ;;  %v391_v36 = vld [vmem:[%s5051_s1 + $0xe0] sm:$0xff]  ;;  %v392_v37 = vld [vmem:[%s5051_s1 + $0xe8] sm:$0xff] }
  0x2e   :  { %v393_v39 = vld [vmem:[%s5051_s1 + $0xf0] sm:$0xff]  ;;  %v394_v42 = vld [vmem:[%s5051_s1 + $0xf8] sm:$0xff] }
  0x2f   :  { %224 = vperm.xlu0 %2579, %v153_v53  }
  0x30   :  { %2445 = vmatmul.mubr.msk.f32.gmra.mxu1 %vm399_vm0, %v365_v10 }
  0x31   :  { %227 = vperm.xlu1 %2580, %v154_v54   ;;  %578 = vmatprep.mubr.f32.mxu1 %v2900_v4 }
  0x33   :  { %230 = vperm.xlu0 %2579, %v155_v55  }
  0x34   :  { %2446 = vmatmul.mubr.msk.f32.gmra.mxu1 %vm399_vm0, %v366_v11 }
  0x35   :  { %233 = vperm.xlu1 %2580, %v156_v56   ;;  %584 = vmatprep.mubr.f32.mxu1 %v2900_v4 }
  0x37   :  { %236 = vperm.xlu0 %2579, %v157_v57  }
  0x38   :  { %2447 = vmatmul.mubr.msk.f32.gmra.mxu1 %vm399_vm0, %v367_v12 }
  0x39   :  { %239 = vperm.xlu1 %2580, %v158_v58   ;;  %590 = vmatprep.mubr.f32.mxu1 %v2900_v4 }
  0x3b   :  { %242 = vperm.xlu0 %2579, %v159_v59  }
  0x3c   :  { %2448 = vmatmul.mubr.msk.f32.gmra.mxu1 %vm399_vm0, %v368_v13 }
  0x3d   :  { %245 = vperm.xlu1 %2580, %v160_v60   ;;  %596 = vmatprep.mubr.f32.mxu1 %v2900_v4 }
  0x3f   :  { %248 = vperm.xlu0 %2579, %v161_v61  }
  0x40   :  { %2449 = vmatmul.mubr.msk.f32.gmra.mxu1 %vm399_vm0, %v369_v14 }
  0x41   :  { %251 = vperm.xlu1 %2580, %v162_v62   ;;  %602 = vmatprep.mubr.f32.mxu1 %v2900_v4 }
  0x43   :  { %254 = vperm.xlu0 %2579, %v163_v63  }
  0x44   :  { %2450 = vmatmul.mubr.msk.f32.gmra.mxu1 %vm399_vm0, %v370_v15 }
  0x45   :  { %257 = vperm.xlu1 %2580, %v164_v0   ;;  %608 = vmatprep.mubr.f32.mxu1 %v2900_v4 }
  0x47   :  { %260 = vperm.xlu0 %2579, %v165_v2  }
  0x48   :  { %2451 = vmatmul.mubr.msk.f32.gmra.mxu1 %vm399_vm0, %v371_v16 }
  0x49   :  { %263 = vperm.xlu1 %2580, %v166_v3   ;;  %614 = vmatprep.mubr.f32.mxu1 %v2900_v4 }
  0x4c   :  { %2452 = vmatmul.mubr.msk.f32.gmra.mxu1 %vm399_vm0, %v372_v17 }
  0x4d   :  { %620 = vmatprep.mubr.f32.mxu1 %v2900_v4 }
  0x50   :  { %2453 = vmatmul.mubr.msk.f32.gmra.mxu1 %vm399_vm0, %v373_v18 }
  0x51   :  { %626 = vmatprep.mubr.f32.mxu1 %v2900_v4 }
  0x54   :  { %2454 = vmatmul.mubr.msk.f32.gmra.mxu1 %vm399_vm0, %v374_v19 }
  0x55   :  { %632 = vmatprep.mubr.f32.mxu1 %v2900_v4 }
  0x58   :  { %2455 = vmatmul.mubr.msk.f32.gmra.mxu1 %vm399_vm0, %v375_v20 }
  0x59   :  { %638 = vmatprep.mubr.f32.mxu1 %v2900_v4 }
  0x5c   :  { %2456 = vmatmul.mubr.msk.f32.gmra.mxu1 %vm399_vm0, %v376_v21 }
  0x5d   :  { %644 = vmatprep.mubr.f32.mxu1 %v2900_v4 }
  0x60   :  { %2457 = vmatmul.mubr.msk.f32.gmra.mxu1 %vm399_vm0, %v377_v22 }
  0x61   :  { %650 = vmatprep.mubr.f32.mxu1 %v2900_v4 }
  0x64   :  { %2458 = vmatmul.mubr.msk.f32.gmra.mxu1 %vm399_vm0, %v378_v23 }
  0x65   :  { %656 = vmatprep.mubr.f32.mxu1 %v2900_v4 }
  0x68   :  { %2459 = vmatmul.mubr.msk.f32.gmra.mxu1 %vm399_vm0, %v379_v24 }
  0x69   :  { %662 = vmatprep.mubr.f32.mxu1 %v2900_v4 }
  0x6c   :  { %2460 = vmatmul.mubr.msk.f32.gmra.mxu1 %vm399_vm0, %v380_v25 }
  0x6d   :  { %668 = vmatprep.mubr.f32.mxu1 %v2900_v4 }
  0x70   :  { %2461 = vmatmul.mubr.msk.f32.gmra.mxu1 %vm399_vm0, %v381_v26 }
  0x71   :  { %674 = vmatprep.mubr.f32.mxu1 %v2900_v4 }
  0x74   :  { %2462 = vmatmul.mubr.msk.f32.gmra.mxu1 %vm399_vm0, %v382_v27 }
  0x75   :  { %680 = vmatprep.mubr.f32.mxu1 %v2900_v4 }
  0x78   :  { %2463 = vmatmul.mubr.msk.f32.gmra.mxu1 %vm399_vm0, %v383_v28 }
  0x79   :  { %686 = vmatprep.mubr.f32.mxu1 %v2900_v4 }
  0x7c   :  { %2464 = vmatmul.mubr.msk.f32.gmra.mxu1 %vm399_vm0, %v384_v29 }
  0x7d   :  { %692 = vmatprep.mubr.f32.mxu1 %v2900_v4 }
  0x80   :  { %2465 = vmatmul.mubr.msk.f32.gmra.mxu1 %vm399_vm0, %v385_v30 }
  0x81   :  { %698 = vmatprep.mubr.f32.mxu1 %v2900_v4  ;;  %v171_v41 = vpop.permute.xlu0 %170 }
  0x82   :  { %vm265_vm1 = vcmp.eq.s32.totalorder %v171_v41, %v3302_v40  ;;  %v177_v47 = vpop.permute.xlu1 %176 }
  0x83   :  { %v3312_v44 = vsel %vm265_vm1, 1.0, %v2900_v4  ;;  %vm267_vm4 = vcmp.eq.s32.totalorder %v177_v47, %v3302_v40 }
  0x84   :  { %2466 = vmatmul.mubr.msk.f32.gmra.mxu1 %vm399_vm0, %v386_v31  ;;  %5195 = vst [vmem:[#allocation6_spill] sm:$0xff] %v3312_v44  ;;  %v3326_v49 = vsel %vm267_vm4, 1.0, %v2900_v4 }
  0x85   :  { %704 = vmatprep.mubr.f32.mxu1 %v2900_v4  ;;  %v174_v46 = vpop.permute.xlu0 %173  ;;  %5197 = vst [vmem:[#allocation8_spill] sm:$0xff] %v3326_v49 }
  0x86   :  { %vm266_vm3 = vcmp.eq.s32.totalorder %v174_v46, %v3302_v40  ;;  %v180_v50 = vpop.permute.xlu1 %179 }
  0x87   :  { %v3319_v48 = vsel %vm266_vm3, 1.0, %v2900_v4  ;;  %vm268_vm5 = vcmp.eq.s32.totalorder %v180_v50, %v3302_v40 }
  0x88   :  { %2467 = vmatmul.mubr.msk.f32.gmra.mxu1 %vm399_vm0, %v387_v32  ;;  %5196 = vst [vmem:[#allocation7_spill] sm:$0xff] %v3319_v48  ;;  %v3333_v52 = vsel %vm268_vm5, 1.0, %v2900_v4 }
  0x89   :  { %710 = vmatprep.mubr.f32.mxu1 %v2900_v4  ;;  %v183_v51 = vpop.permute.xlu0 %182  ;;  %5198 = vst [vmem:[#allocation9_spill] sm:$0xff] %v3333_v52 }
  0x8a   :  { %vm269_vm6 = vcmp.eq.s32.totalorder %v183_v51, %v3302_v40  ;;  %v186_v54 = vpop.permute.xlu1 %185 }
  0x8b   :  { %v3340_v53 = vsel %vm269_vm6, 1.0, %v2900_v4  ;;  %vm270_vm7 = vcmp.eq.s32.totalorder %v186_v54, %v3302_v40 }
  0x8c   :  { %2468 = vmatmul.mubr.msk.f32.gmra.mxu1 %vm399_vm0, %v388_v33  ;;  %5199 = vst [vmem:[#allocation10_spill] sm:$0xff] %v3340_v53  ;;  %v3347_v56 = vsel %vm270_vm7, 1.0, %v2900_v4 }
  0x8d   :  { %716 = vmatprep.mubr.f32.mxu1 %v2900_v4  ;;  %5200 = vst [vmem:[#allocation11_spill] sm:$0xff] %v3347_v56 }
  0x90   :  { %2469 = vmatmul.mubr.msk.f32.gmra.mxu1 %vm399_vm0, %v389_v34 }
  0x91   :  { %722 = vmatprep.mubr.f32.mxu1 %v2900_v4 }
  0x92   :  { %v189_v55 = vpop.permute.xlu0 %188 }
  0x93   :  { %vm271_vm8 = vcmp.eq.s32.totalorder %v189_v55, %v3302_v40 }
  0x94   :  { %2470 = vmatmul.mubr.msk.f32.gmra.mxu1 %vm399_vm0, %v390_v35  ;;  %v3354_v57 = vsel %vm271_vm8, 1.0, %v2900_v4  ;;  %v192_v58 = vpop.permute.xlu1 %191 }
  0x95   :  { %728 = vmatprep.mubr.f32.mxu1 %v2900_v4  ;;  %5201 = vst [vmem:[#allocation12_spill] sm:$0xff] %v3354_v57  ;;  %vm272_vm9 = vcmp.eq.s32.totalorder %v192_v58, %v3302_v40 }
  0x96   :  { %v195_v59 = vpop.permute.xlu0 %194  ;;  %v3361_v60 = vsel %vm272_vm9, 1.0, %v2900_v4 }
  0x97   :  { %5202 = vst [vmem:[#allocation13_spill] sm:$0xff] %v3361_v60  ;;  %vm273_vm10 = vcmp.eq.s32.totalorder %v195_v59, %v3302_v40 }
  0x98   :  { %2471 = vmatmul.mubr.msk.f32.gmra.mxu1 %vm399_vm0, %v391_v36  ;;  %v3368_v61 = vsel %vm273_vm10, 1.0, %v2900_v4  ;;  %v198_v62 = vpop.permute.xlu1 %197 }
  0x99   :  { %734 = vmatprep.mubr.f32.mxu1 %v2900_v4  ;;  %5203 = vst [vmem:[#allocation14_spill] sm:$0xff] %v3368_v61  ;;  %vm274_vm11 = vcmp.eq.s32.totalorder %v198_v62, %v3302_v40 }
  0x9a   :  { %v201_v63 = vpop.permute.xlu0 %200  ;;  %v3375_v0 = vsel %vm274_vm11, 1.0, %v2900_v4 }
  0x9b   :  { %5204 = vst [vmem:[#allocation15_spill] sm:$0xff] %v3375_v0  ;;  %vm275_vm12 = vcmp.eq.s32.totalorder %v201_v63, %v3302_v40 }
  0x9c   :  { %2472 = vmatmul.mubr.msk.f32.gmra.mxu1 %vm399_vm0, %v392_v37  ;;  %v3382_v1 = vsel %vm275_vm12, 1.0, %v2900_v4  ;;  %v204_v2 = vpop.permute.xlu1 %203 }
  0x9d   :  { %740 = vmatprep.mubr.f32.mxu1 %v2900_v4  ;;  %5205 = vst [vmem:[#allocation16_spill] sm:$0xff] %v3382_v1  ;;  %vm276_vm13 = vcmp.eq.s32.totalorder %v204_v2, %v3302_v40 }
  0x9e   :  { %v207_v3 = vpop.permute.xlu0 %206  ;;  %v3389_v5 = vsel %vm276_vm13, 1.0, %v2900_v4 }
  0x9f   :  { %5206 = vst [vmem:[#allocation17_spill] sm:$0xff] %v3389_v5  ;;  %vm277_vm14 = vcmp.eq.s32.totalorder %v207_v3, %v3302_v40 }
  0xa0   :  { %2473 = vmatmul.mubr.msk.f32.gmra.mxu1 %vm399_vm0, %v393_v39  ;;  %v3396_v6 = vsel %vm277_vm14, 1.0, %v2900_v4  ;;  %v210_v7 = vpop.permute.xlu1 %209 }
  0xa1   :  { %746 = vmatprep.mubr.f32.mxu1 %v2900_v4  ;;  %5207 = vst [vmem:[#allocation18_spill] sm:$0xff] %v3396_v6  ;;  %vm278_vm15 = vcmp.eq.s32.totalorder %v210_v7, %v3302_v40 }
  0xa2   :  { %v213_v8 = vpop.permute.xlu0 %212  ;;  %v3403_v9 = vsel %vm278_vm15, 1.0, %v2900_v4 }
  0xa3   :  { %5208 = vst [vmem:[#allocation19_spill] sm:$0xff] %v3403_v9 }
  0xa4   :  { %2474 = vmatmul.mubr.msk.f32.gmra.mxu1 %vm399_vm0, %v394_v42  ;;  %vm279_vm0 = vcmp.eq.s32.totalorder %v213_v8, %v3302_v40  ;;  %v216_v11 = vpop.permute.xlu1 %215 }
  0xa5   :  { %v3410_v10 = vsel %vm279_vm0, 1.0, %v2900_v4  ;;  %vm280_vm1 = vcmp.eq.s32.totalorder %v216_v11, %v3302_v40 }
  0xa6   :  { %5209 = vst [vmem:[#allocation20_spill] sm:$0xff] %v3410_v10  ;;  %v219_v12 = vpop.permute.xlu0 %218  ;;  %v3417_v13 = vsel %vm280_vm1, 1.0, %v2900_v4 }
  0xa7   :  { %5210 = vst [vmem:[#allocation21_spill] sm:$0xff] %v3417_v13  ;;  %vm281_vm3 = vcmp.eq.s32.totalorder %v219_v12, %v3302_v40 }
  0xa8   :  { %v3424_v14 = vsel %vm281_vm3, 1.0, %v2900_v4  ;;  %v222_v15 = vpop.permute.xlu1 %221 }
  0xa9   :  { %5211 = vst [vmem:[#allocation22_spill] sm:$0xff] %v3424_v14  ;;  %vm282_vm4 = vcmp.eq.s32.totalorder %v222_v15, %v3302_v40 }
  0xaa   :  { %v225_v17 = vpop.permute.xlu0 %224  ;;  %v3433_v18 = vsel %vm282_vm4, 1.0, %v2900_v4 }
  0xab   :  { %5213 = vst [vmem:[#allocation24_spill] sm:$0xff] %v3433_v18  ;;  %vm283_vm5 = vcmp.eq.s32.totalorder %v225_v17, %v3302_v40 }
  0xac   :  { %v3442_v20 = vsel %vm283_vm5, 1.0, %v2900_v4  ;;  %v228_v21 = vpop.permute.xlu1 %227 }
  0xad   :  { %5215 = vst [vmem:[#allocation26_spill] sm:$0xff] %v3442_v20  ;;  %vm284_vm6 = vcmp.eq.s32.totalorder %v228_v21, %v3302_v40 }
  0xae   :  { %v231_v23 = vpop.permute.xlu0 %230  ;;  %v3451_v24 = vsel %vm284_vm6, 1.0, %v2900_v4 }
  0xaf   :  { %5217 = vst [vmem:[#allocation28_spill] sm:$0xff] %v3451_v24  ;;  %vm285_vm7 = vcmp.eq.s32.totalorder %v231_v23, %v3302_v40 }
  0xb0   :  { %v3460_v26 = vsel %vm285_vm7, 1.0, %v2900_v4  ;;  %v234_v27 = vpop.permute.xlu1 %233 }
  0xb1   :  { %5219 = vst [vmem:[#allocation30_spill] sm:$0xff] %v3460_v26  ;;  %vm286_vm8 = vcmp.eq.s32.totalorder %v234_v27, %v3302_v40 }
  0xb2   :  { %v237_v29 = vpop.permute.xlu0 %236  ;;  %v3469_v30 = vsel %vm286_vm8, 1.0, %v2900_v4 }
  0xb3   :  { %5221 = vst [vmem:[#allocation32_spill] sm:$0xff] %v3469_v30  ;;  %vm287_vm9 = vcmp.eq.s32.totalorder %v237_v29, %v3302_v40 }
  0xb4   :  { %v3478_v32 = vsel %vm287_vm9, 1.0, %v2900_v4  ;;  %v240_v33 = vpop.permute.xlu1 %239 }
  0xb5   :  { %5223 = vst [vmem:[#allocation34_spill] sm:$0xff] %v3478_v32  ;;  %vm288_vm10 = vcmp.eq.s32.totalorder %v240_v33, %v3302_v40 }
  0xb6   :  { %v243_v35 = vpop.permute.xlu0 %242  ;;  %v3487_v36 = vsel %vm288_vm10, 1.0, %v2900_v4 }
  0xb7   :  { %5225 = vst [vmem:[#allocation36_spill] sm:$0xff] %v3487_v36  ;;  %vm289_vm11 = vcmp.eq.s32.totalorder %v243_v35, %v3302_v40 }
  0xb8   :  { %v3496_v39 = vsel %vm289_vm11, 1.0, %v2900_v4  ;;  %v246_v41 = vpop.permute.xlu1 %245 }
  0xb9   :  { %5227 = vst [vmem:[#allocation38_spill] sm:$0xff] %v3496_v39  ;;  %vm290_vm12 = vcmp.eq.s32.totalorder %v246_v41, %v3302_v40 }
  0xbc   :  { %v252_v50 = vpop.permute.xlu1 %251 }
  0xbd   :  { %vm292_vm14 = vcmp.eq.s32.totalorder %v252_v50, %v3302_v40 }
  0xbe   :  { %v3523_v55 = vsel %vm292_vm14, 1.0, %v2900_v4 }
  0xbf   :  { %5230 = vst [vmem:[#allocation41_spill] sm:$0xff] %v3523_v55 }
  0xc0   :  { %v258_v62 = vpop.permute.xlu1 %257 }
  0xc1   :  { %vm294_vm0 = vcmp.eq.s32.totalorder %v258_v62, %v3302_v40 }
  0xc2   :  { %v3541_v3 = vsel %vm294_vm0, 1.0, %v2900_v4 }
  0xc3   :  { %5232 = vst [vmem:[#allocation43_spill] sm:$0xff] %v3541_v3 }
  0xc4   :  { %v264_v7 = vpop.permute.xlu1 %263 }
  0xc5   :  { %vm296_vm3 = vcmp.eq.s32.totalorder %v264_v7, %v3302_v40 }
  0xc6   :  { %v3559_v15 = vsel %vm296_vm3, 1.0, %v2900_v4 }
  0xc7   :  { %5234 = vst [vmem:[#allocation45_spill] sm:$0xff] %v3559_v15 }
  0xe2   :  { %v128_v43 = vpop.f32.mrf.mxu0 }
  0xe4   :  { %v130_v45 = vpop.f32.mrf.mxu0 }
  0xe5   :  { %880 = vmatprep.subr.mxu0 %v130_v45  ;;  %v3505_v45 = vsel %vm290_vm12, 1.0, %v2900_v4 }
  0xe6   :  { %881 = vmatpush1.msra.mxu0 %v128_v43  ;;  %v249_v43 = vpop.permute.xlu0 %248  ;;  %5228 = vst [vmem:[#allocation39_spill] sm:$0xff] %v3505_v45 }
  0xe7   :  { %2475 = vmatmul.mubr.msk.f32.vlgmr.msra.gmra.mxu0 %vm753_vm2, %v3312_v44  ;;  %vm291_vm13 = vcmp.eq.s32.totalorder %v249_v43, %v3302_v40 }
  0xe8   :  { %920 = vmatprep.mubr.f32.mxu0 %v2900_v4  ;;  %v3430_v16 = vpop.f32.mrf.mxu1  ;;  %v3514_v47 = vsel %vm291_vm13, 1.0, %v2900_v4 }
  0xe9   :  { %5212 = vst [vmem:[#allocation23_spill] sm:$0xff] %v3430_v16  ;;  %5229 = vst [vmem:[#allocation40_spill] sm:$0xff] %v3514_v47 }
  0xea   :  { %v3439_v19 = vpop.f32.mrf.mxu1  ;;  %v255_v54 = vpop.permute.xlu0 %254 }
  0xeb   :  { %2476 = vmatmul.mubr.msk.f32.gmra.mxu0 %vm753_vm2, %v3319_v48  ;;  %5214 = vst [vmem:[#allocation25_spill] sm:$0xff] %v3439_v19  ;;  %vm293_vm15 = vcmp.eq.s32.totalorder %v255_v54, %v3302_v40  ;;  %v1107_v48 = vld [vmem:[%s5055_s5] ss:$8 sm:$0x3] }
  0xec   :  { %926 = vmatprep.mubr.f32.mxu0 %v2900_v4  ;;  %v3448_v22 = vpop.f32.mrf.mxu1  ;;  %v3532_v59 = vsel %vm293_vm15, 1.0, %v2900_v4 }
  0xed   :  { %5216 = vst [vmem:[#allocation27_spill] sm:$0xff] %v3448_v22  ;;  %5231 = vst [vmem:[#allocation42_spill] sm:$0xff] %v3532_v59 }
  0xee   :  { %v3457_v25 = vpop.f32.mrf.mxu1  ;;  %v261_v63 = vpop.permute.xlu0 %260 }
  0xef   :  { %2477 = vmatmul.mubr.msk.f32.gmra.mxu0 %vm753_vm2, %v3326_v49  ;;  %5218 = vst [vmem:[#allocation29_spill] sm:$0xff] %v3457_v25  ;;  %vm295_vm1 = vcmp.eq.s32.totalorder %v261_v63, %v3302_v40 }
  0xf0   :  { %932 = vmatprep.mubr.f32.mxu0 %v2900_v4  ;;  %v3466_v28 = vpop.f32.mrf.mxu1  ;;  %v3550_v11 = vsel %vm295_vm1, 1.0, %v2900_v4 }
  0xf1   :  { %5220 = vst [vmem:[#allocation31_spill] sm:$0xff] %v3466_v28  ;;  %5233 = vst [vmem:[#allocation44_spill] sm:$0xff] %v3550_v11 }
  0xf2   :  { %v3475_v31 = vpop.f32.mrf.mxu1 }
  0xf3   :  { %2478 = vmatmul.mubr.msk.f32.gmra.mxu0 %vm753_vm2, %v3333_v52  ;;  %5222 = vst [vmem:[#allocation33_spill] sm:$0xff] %v3475_v31 }
  0xf4   :  { %938 = vmatprep.mubr.f32.mxu0 %v2900_v4  ;;  %v3484_v34 = vpop.f32.mrf.mxu1 }
  0xf5   :  { %5224 = vst [vmem:[#allocation35_spill] sm:$0xff] %v3484_v34 }
  0xf6   :  { %v3493_v37 = vpop.f32.mrf.mxu1 }
  0xf7   :  { %2479 = vmatmul.mubr.msk.f32.gmra.mxu0 %vm753_vm2, %v3340_v53  ;;  %5226 = vst [vmem:[#allocation37_spill] sm:$0xff] %v3493_v37 }
  0xf8   :  { %944 = vmatprep.mubr.f32.mxu0 %v2900_v4  ;;  %v3502_v42 = vpop.f32.mrf.mxu1 }
  0xfa   :  { %v3511_v46 = vpop.f32.mrf.mxu1 }
  0xfb   :  { %2480 = vmatmul.mubr.msk.f32.gmra.mxu0 %vm753_vm2, %v3347_v56 }
  0xfc   :  { %950 = vmatprep.mubr.f32.mxu0 %v2900_v4  ;;  %v3520_v51 = vpop.f32.mrf.mxu1 }
  0xfe   :  { %v3529_v58 = vpop.f32.mrf.mxu1 }
  0xff   :  { %2481 = vmatmul.mubr.msk.f32.gmra.mxu0 %vm753_vm2, %v3354_v57 }
 0x100   :  { %956 = vmatprep.mubr.f32.mxu0 %v2900_v4  ;;  %v3538_v2 = vpop.f32.mrf.mxu1 }
 0x102   :  { %v3547_v8 = vpop.f32.mrf.mxu1 }
 0x103   :  { %2482 = vmatmul.mubr.msk.f32.gmra.mxu0 %vm753_vm2, %v3361_v60 }
 0x104   :  { %962 = vmatprep.mubr.f32.mxu0 %v2900_v4  ;;  %v3556_v12 = vpop.f32.mrf.mxu1 }
 0x106   :  { %v3563_v17 = vpop.f32.mrf.mxu1 }
 0x107   :  { %2483 = vmatmul.mubr.msk.f32.gmra.mxu0 %vm753_vm2, %v3368_v61 }
 0x108   :  { %968 = vmatprep.mubr.f32.mxu0 %v2900_v4  ;;  %v610_v21 = vpop.f32.mrf.mxu1 }
 0x10a   :  { %v612_v23 = vpop.f32.mrf.mxu1 }
 0x10b   :  { %2484 = vmatmul.mubr.msk.f32.gmra.mxu0 %vm753_vm2, %v3375_v0 }
 0x10c   :  { %974 = vmatprep.mubr.f32.mxu0 %v2900_v4  ;;  %v616_v27 = vpop.f32.mrf.mxu1 }
 0x10e   :  { %v618_v29 = vpop.f32.mrf.mxu1 }
 0x10f   :  { %2485 = vmatmul.mubr.msk.f32.gmra.mxu0 %vm753_vm2, %v3382_v1 }
 0x110   :  { %980 = vmatprep.mubr.f32.mxu0 %v2900_v4  ;;  %v622_v40 = vpop.f32.mrf.mxu1 }
 0x112   :  { %v624_v33 = vpop.f32.mrf.mxu1 }
 0x113   :  { %2486 = vmatmul.mubr.msk.f32.gmra.mxu0 %vm753_vm2, %v3389_v5 }
 0x114   :  { %986 = vmatprep.mubr.f32.mxu0 %v2900_v4  ;;  %v3565_v35 = vpop.f32.mrf.mxu1 }
 0x116   :  { %v3567_v41 = vpop.f32.mrf.mxu1 }
 0x117   :  { %2487 = vmatmul.mubr.msk.f32.gmra.mxu0 %vm753_vm2, %v3396_v6 }
 0x118   :  { %992 = vmatprep.mubr.f32.mxu0 %v2900_v4  ;;  %v3569_v43 = vpop.f32.mrf.mxu1 }
 0x11a   :  { %v3571_v50 = vpop.f32.mrf.mxu1 }
 0x11b   :  { %2488 = vmatmul.mubr.msk.f32.gmra.mxu0 %vm753_vm2, %v3403_v9 }
 0x11c   :  { %998 = vmatprep.mubr.f32.mxu0 %v2900_v4 }
 0x11f   :  { %2489 = vmatmul.mubr.msk.f32.gmra.mxu0 %vm753_vm2, %v3410_v10 }
 0x120   :  { %1004 = vmatprep.mubr.f32.mxu0 %v2900_v4 }
 0x123   :  { %2490 = vmatmul.mubr.msk.f32.gmra.mxu0 %vm753_vm2, %v3417_v13 }
 0x124   :  { %1010 = vmatprep.mubr.f32.mxu0 %v2900_v4 }
 0x127   :  { %2491 = vmatmul.mubr.msk.f32.gmra.mxu0 %vm753_vm2, %v3424_v14 }
 0x128   :  { %1016 = vmatprep.mubr.f32.mxu0 %v2900_v4 }
 0x12b   :  { %2492 = vmatmul.mubr.msk.f32.gmra.mxu0 %vm753_vm2, %v3433_v18 }
 0x12c   :  { %1022 = vmatprep.mubr.f32.mxu0 %v2900_v4 }
 0x12f   :  { %2493 = vmatmul.mubr.msk.f32.gmra.mxu0 %vm753_vm2, %v3442_v20 }
 0x130   :  { %1028 = vmatprep.mubr.f32.mxu0 %v2900_v4 }
 0x133   :  { %2494 = vmatmul.mubr.msk.f32.gmra.mxu0 %vm753_vm2, %v3451_v24 }
 0x134   :  { %1034 = vmatprep.mubr.f32.mxu0 %v2900_v4 }
 0x137   :  { %2495 = vmatmul.mubr.msk.f32.gmra.mxu0 %vm753_vm2, %v3460_v26 }
 0x138   :  { %1040 = vmatprep.mubr.f32.mxu0 %v2900_v4 }
 0x13b   :  { %2496 = vmatmul.mubr.msk.f32.gmra.mxu0 %vm753_vm2, %v3469_v30  ;;  %v5245_v30 = vlaneseq }
 0x13c   :  { %1046 = vmatprep.mubr.f32.mxu0 %v2900_v4 }
 0x13d   :  { %v1110_v53 = vshrl.u32 %v5245_v30, 7 }
 0x13f   :  { %2497 = vmatmul.mubr.msk.f32.gmra.mxu0 %vm753_vm2, %v3478_v32  ;;  %v3634_v49 = vsub.s32 0, %v1110_v53  ;;  %v3636_v20 = vsub.s32 1, %v1110_v53 }
 0x140   :  { %1052 = vmatprep.mubr.f32.mxu0 %v2900_v4 }
 0x141   :  { %5246 = vst [vmem:[#allocation56_spill] sm:$0xff] %v3634_v49  ;;  %5247 = vst [vmem:[#allocation57_spill] sm:$0xff] %v3636_v20  ;;  %v3644_v30 = vrot.slane %v1107_v48, %v3634_v49  ;;  %v3647_v16 = vrot.slane %v1107_v48, %v3636_v20 }
 0x143   :  { %2498 = vmatmul.mubr.msk.f32.gmra.mxu0 %vm753_vm2, %v3487_v36 }
 0x144   :  { %1058 = vmatprep.mubr.f32.mxu0 %v2900_v4 }
 0x147   :  { %2499 = vmatmul.mubr.msk.f32.gmra.mxu0 %vm753_vm2, %v3496_v39 }
 0x148   :  { %1064 = vmatprep.mubr.f32.mxu0 %v2900_v4 }
 0x14b   :  { %2500 = vmatmul.mubr.msk.f32.gmra.mxu0 %vm753_vm2, %v3505_v45 }
 0x14c   :  { %1070 = vmatprep.mubr.f32.mxu0 %v2900_v4 }
 0x14f   :  { %2501 = vmatmul.mubr.msk.f32.gmra.mxu0 %vm753_vm2, %v3514_v47 }
 0x150   :  { %1076 = vmatprep.mubr.f32.mxu0 %v2900_v4 }
 0x153   :  { %2502 = vmatmul.mubr.msk.f32.gmra.mxu0 %vm753_vm2, %v3523_v55 }
 0x154   :  { %1082 = vmatprep.mubr.f32.mxu0 %v2900_v4 }
 0x157   :  { %2503 = vmatmul.mubr.msk.f32.gmra.mxu0 %vm753_vm2, %v3532_v59 }
 0x158   :  { %1088 = vmatprep.mubr.f32.mxu0 %v2900_v4 }
 0x15b   :  { %2504 = vmatmul.mubr.msk.f32.gmra.mxu0 %vm753_vm2, %v3541_v3 }
 0x15c   :  { %1094 = vmatprep.mubr.f32.mxu0 %v2900_v4 }
 0x15f   :  { %2505 = vmatmul.mubr.msk.f32.gmra.mxu0 %vm753_vm2, %v3550_v11 }
 0x160   :  { %1100 = vmatprep.mubr.f32.mxu0 %v2900_v4  ;;  %v3573_v4 = vpop.f32.mrf.mxu1 }
 0x162   :  { %v3575_v54 = vpop.f32.mrf.mxu1 }
 0x163   :  { %2506 = vmatmul.mubr.msk.f32.gmra.mxu0 %vm753_vm2, %v3559_v15 }
 0x164   :  { %v3577_v62 = vpop.f32.mrf.mxu1 }
 0x166   :  { %v3579_v63 = vpop.f32.mrf.mxu1 }
 0x168   :  { %v3581_v7 = vpop.f32.mrf.mxu1 }
 0x16a   :  { %v3583_v38 = vpop.f32.mrf.mxu1 }
 0x16c   :  { %v3589_v10 = vpop.f32.mrf.mxu1 }
 0x16d   :  { %5237 = vst [vmem:[#allocation48_spill] sm:$0xff] %v3589_v10 }
 0x16e   :  { %v3595_v3 = vpop.f32.mrf.mxu1 }
 0x16f   :  { %5240 = vst [vmem:[#allocation51_spill] sm:$0xff] %v3595_v3 }
 0x170   :  { %v3601_v5 = vpop.f32.mrf.mxu1 }
 0x172   :  { %v3607_v45 = vpop.f32.mrf.mxu1 }
 0x174   :  { %v3613_v61 = vpop.f32.mrf.mxu1 }
 0x176   :  { %v3619_v36 = vpop.f32.mrf.mxu1 }
 0x178   :  { %v3625_v56 = vpop.f32.mrf.mxu1 }
 0x17a   :  { %v3632_v24 = vpop.f32.mrf.mxu1 }
 0x1a7   :  { %v3585_v13 = vpop.f32.mrf.mxu0 }
 0x1a8   :  { %5235 = vst [vmem:[#allocation46_spill] sm:$0xff] %v3585_v13  ;;  %v3641_v13 = vpop.f32.mrf.mxu1 }
 0x1a9   :  { %v3587_v15 = vpop.f32.mrf.mxu0 }
 0x1aa   :  { %5236 = vst [vmem:[#allocation47_spill] sm:$0xff] %v3587_v15 }
 0x1ab   :  { %v3591_v11 = vpop.f32.mrf.mxu0 }
 0x1ac   :  { %5238 = vst [vmem:[#allocation49_spill] sm:$0xff] %v3591_v11 }
 0x1ad   :  { %v3593_v9 = vpop.f32.mrf.mxu0 }
 0x1ae   :  { %5239 = vst [vmem:[#allocation50_spill] sm:$0xff] %v3593_v9 }
 0x1af   :  { %v3597_v6 = vpop.f32.mrf.mxu0 }
 0x1b0   :  { %5241 = vst [vmem:[#allocation52_spill] sm:$0xff] %v3597_v6 }
 0x1b1   :  { %v3599_v59 = vpop.f32.mrf.mxu0 }
 0x1b2   :  { %5242 = vst [vmem:[#allocation53_spill] sm:$0xff] %v3599_v59 }
 0x1b3   :  { %v3603_v55 = vpop.f32.mrf.mxu0 }
 0x1b4   :  { %5243 = vst [vmem:[#allocation54_spill] sm:$0xff] %v3603_v55 }
 0x1b5   :  { %v3605_v0 = vpop.f32.mrf.mxu0 }
 0x1b6   :  { %5244 = vst [vmem:[#allocation55_spill] sm:$0xff] %v3605_v0 }
 0x1b7   :  { %v3609_v1 = vpop.f32.mrf.mxu0 }
 0x1b9   :  { %v3611_v47 = vpop.f32.mrf.mxu0 }
 0x1bb   :  { %v3615_v39 = vpop.f32.mrf.mxu0 }
 0x1bd   :  { %v3617_v60 = vpop.f32.mrf.mxu0 }
 0x1bf   :  { %v3621_v57 = vpop.f32.mrf.mxu0 }
 0x1c1   :  { %v3623_v32 = vpop.f32.mrf.mxu0 }
 0x1c3   :  { %v3628_v26 = vpop.f32.mrf.mxu0 }
 0x1c5   :  { %v3630_v52 = vpop.f32.mrf.mxu0 }
 0x1c7   :  { %v964_v18 = vpop.f32.mrf.mxu0 }
 0x1c8   :  { %v965_v44 = vadd.f32 %v964_v18, %v610_v21  ;;  %v3655_v18 = vpop.f32.mrf.mxu1 }
 0x1c9   :  { %v966_v14 = vpop.f32.mrf.mxu0 }
 0x1ca   :  { %v967_v15 = vadd.f32 %v966_v14, %v612_v23  ;;  %v3650_v53 = vadd.f32 %v3644_v30, %v965_v44 }
 0x1cb   :  { %v970_v19 = vpop.f32.mrf.mxu0 }
 0x1cc   :  { %5248 = vst [vmem:[#allocation58_spill] sm:$0xff] %v3650_v53  ;;  %v3653_v11 = vadd.f32 %v3647_v16, %v967_v15  ;;  %v971_v22 = vadd.f32 %v970_v19, %v616_v27  ;;  %v3665_v15 = vpop.f32.mrf.mxu1 }
 0x1cd   :  { %v972_v9 = vpop.f32.mrf.mxu0 }
 0x1ce   :  { %5249 = vst [vmem:[#allocation59_spill] sm:$0xff] %v3653_v11  ;;  %v973_v21 = vadd.f32 %v972_v9, %v618_v29  ;;  %v1207_v49 = vadd.f32 %v3653_v11, %v3650_v53  ;;  %v3660_v48 = vadd.f32 %v3644_v30, %v971_v22 }
 0x1cf   :  { %v976_v25 = vpop.f32.mrf.mxu0 }
 0x1d0   :  { %5250 = vst [vmem:[#allocation60_spill] sm:$0xff] %v3660_v48  ;;  %v3663_v14 = vadd.f32 %v3647_v16, %v973_v21  ;;  %v977_v44 = vadd.f32 %v976_v25, %v622_v40  ;;  %1208 = vadd.xlane.f32.xlu0 %v1207_v49  ;;  %v3676_v25 = vpop.f32.mrf.mxu1 }
 0x1d1   :  { %v978_v23 = vpop.f32.mrf.mxu0 }
 0x1d2   :  { %5251 = vst [vmem:[#allocation61_spill] sm:$0xff] %v3663_v14  ;;  %v979_v19 = vadd.f32 %v978_v23, %v624_v33  ;;  %v1210_v27 = vadd.f32 %v3663_v14, %v3660_v48  ;;  %v3670_v29 = vadd.f32 %v3644_v30, %v977_v44 }
 0x1d3   :  { %v982_v9 = vpop.f32.mrf.mxu0 }
 0x1d4   :  { %5252 = vst [vmem:[#allocation62_spill] sm:$0xff] %v3670_v29  ;;  %v3673_v20 = vadd.f32 %v3647_v16, %v979_v19  ;;  %v983_v22 = vadd.f32 %v982_v9, %v3565_v35  ;;  %1211 = vadd.xlane.f32.xlu0 %v1210_v27  ;;  %v3688_v27 = vpop.f32.mrf.mxu1 }
 0x1d5   :  { %v984_v21 = vpop.f32.mrf.mxu0 }
 0x1d6   :  { %5253 = vst [vmem:[#allocation63_spill] sm:$0xff] %v3673_v20  ;;  %v985_v49 = vadd.f32 %v984_v21, %v3567_v41  ;;  %v1213_v40 = vadd.f32 %v3673_v20, %v3670_v29  ;;  %v3682_v23 = vadd.f32 %v3644_v30, %v983_v22 }
 0x1d7   :  { %v988_v33 = vpop.f32.mrf.mxu0 }
 0x1d8   :  { %5254 = vst [vmem:[#allocation64_spill] sm:$0xff] %v3682_v23  ;;  %v3685_v44 = vadd.f32 %v3647_v16, %v985_v49  ;;  %v989_v19 = vadd.f32 %v988_v33, %v3569_v43  ;;  %1214 = vadd.xlane.f32.xlu0 %v1213_v40  ;;  %v3700_v40 = vpop.f32.mrf.mxu1 }
 0x1d9   :  { %v990_v35 = vpop.f32.mrf.mxu0 }
 0x1da   :  { %5255 = vst [vmem:[#allocation65_spill] sm:$0xff] %v3685_v44  ;;  %v991_v9 = vadd.f32 %v990_v35, %v3571_v50  ;;  %v1216_v41 = vadd.f32 %v3685_v44, %v3682_v23  ;;  %v3694_v20 = vadd.f32 %v3644_v30, %v989_v19 }
 0x1db   :  { %v994_v21 = vpop.f32.mrf.mxu0 }
 0x1dc   :  { %5256 = vst [vmem:[#allocation66_spill] sm:$0xff] %v3694_v20  ;;  %v3697_v22 = vadd.f32 %v3647_v16, %v991_v9  ;;  %v995_v49 = vadd.f32 %v994_v21, %v3573_v4  ;;  %1217 = vadd.xlane.f32.xlu0 %v1216_v41  ;;  %v700_v41 = vpop.f32.mrf.mxu1 }
 0x1dd   :  { %v996_v43 = vpop.f32.mrf.mxu0 }
 0x1de   :  { %5257 = vst [vmem:[#allocation67_spill] sm:$0xff] %v3697_v22  ;;  %v997_v33 = vadd.f32 %v996_v43, %v3575_v54  ;;  %v1219_v50 = vadd.f32 %v3697_v22, %v3694_v20  ;;  %v3706_v44 = vadd.f32 %v3644_v30, %v995_v49 }
 0x1df   :  { %v1000_v35 = vpop.f32.mrf.mxu0 }
 0x1e0   :  { %5258 = vst [vmem:[#allocation68_spill] sm:$0xff] %v3706_v44  ;;  %v3709_v19 = vadd.f32 %v3647_v16, %v997_v33  ;;  %v1001_v9 = vadd.f32 %v1000_v35, %v3577_v62  ;;  %1220 = vadd.xlane.f32.xlu0 %v1219_v50  ;;  %v702_v62 = vpop.f32.mrf.mxu1 }
 0x1e1   :  { %v1002_v4 = vpop.f32.mrf.mxu0 }
 0x1e2   :  { %5259 = vst [vmem:[#allocation69_spill] sm:$0xff] %v3709_v19  ;;  %v1003_v21 = vadd.f32 %v1002_v4, %v3579_v63  ;;  %v1222_v54 = vadd.f32 %v3709_v19, %v3706_v44  ;;  %v3716_v22 = vadd.f32 %v3644_v30, %v1001_v9 }
 0x1e3   :  { %v1006_v43 = vpop.f32.mrf.mxu0 }
 0x1e4   :  { %5260 = vst [vmem:[#allocation70_spill] sm:$0xff] %v3716_v22  ;;  %v3719_v49 = vadd.f32 %v3647_v16, %v1003_v21  ;;  %v1007_v33 = vadd.f32 %v1006_v43, %v3581_v7  ;;  %1223 = vadd.xlane.f32.xlu0 %v1222_v54  ;;  %v706_v7 = vpop.f32.mrf.mxu1 }
 0x1e5   :  { %v1008_v20 = vpop.f32.mrf.mxu0 }
 0x1e6   :  { %5261 = vst [vmem:[#allocation71_spill] sm:$0xff] %v3719_v49  ;;  %v1009_v50 = vadd.f32 %v1008_v20, %v3583_v38  ;;  %v1225_v63 = vadd.f32 %v3719_v49, %v3716_v22  ;;  %v3728_v4 = vadd.f32 %v3644_v30, %v1007_v33  ;;  %v708_v20 = vpop.f32.mrf.mxu1 }
 0x1e7   :  { %v3725_v35 = vpop.f32.mrf.mxu0 }
 0x1e8   :  { %5262 = vst [vmem:[#allocation72_spill] sm:$0xff] %v3725_v35  ;;  %5263 = vst [vmem:[#allocation73_spill] sm:$0xff] %v3728_v4  ;;  %v3731_v9 = vadd.f32 %v3647_v16, %v1009_v50  ;;  %1226 = vadd.xlane.f32.xlu0 %v1225_v63  ;;  %v712_v22 = vpop.f32.mrf.mxu1 }
 0x1e9   :  { %v3733_v21 = vpop.f32.mrf.mxu0 }
 0x1ea   :  { %5264 = vst [vmem:[#allocation74_spill] sm:$0xff] %v3731_v9  ;;  %5265 = vst [vmem:[#allocation75_spill] sm:$0xff] %v3733_v21  ;;  %v1228_v54 = vadd.f32 %v3731_v9, %v3728_v4  ;;  %v714_v44 = vpop.f32.mrf.mxu1 }
 0x1eb   :  { %v3737_v43 = vpop.f32.mrf.mxu0 }
 0x1ec   :  { %1229 = vadd.xlane.f32.xlu1 %v1228_v54  ;;  %v718_v54 = vpop.f32.mrf.mxu1 }
 0x1ed   :  { %v3739_v38 = vpop.f32.mrf.mxu0 }
 0x1ee   :  { %v720_v14 = vpop.f32.mrf.mxu1 }
 0x1ef   :  { %v3741_v49 = vpop.f32.mrf.mxu0 }
 0x1f1   :  { %v1026_v33 = vpop.f32.mrf.mxu0 }
 0x1f2   :  { %v3744_v50 = vadd.f32 %v1026_v33, %v3619_v36  ;;  %v724_v36 = vpop.f32.mrf.mxu1 }
 0x1f3   :  { %v3746_v63 = vpop.f32.mrf.mxu0 }
 0x1f4   :  { %v726_v28 = vpop.f32.mrf.mxu1 }
 0x1f5   :  { %v3748_v19 = vpop.f32.mrf.mxu0 }
 0x1f6   :  { %v730_v21 = vpop.f32.mrf.mxu1 }
 0x1f7   :  { %v3750_v23 = vpop.f32.mrf.mxu0 }
 0x1f9   :  { %v3752_v9 = vpop.f32.mrf.mxu0 }
 0x1fb   :  { %v3754_v4 = vpop.f32.mrf.mxu0 }
 0x1fd   :  { %v3756_v29 = vpop.f32.mrf.mxu0 }
 0x1ff   :  { %v3758_v48 = vpop.f32.mrf.mxu0 }
 0x201   :  { %v1050_v11 = vpop.f32.mrf.mxu0 }
 0x203   :  { %v1054_v33 = vpop.f32.mrf.mxu0 }
 0x204   :  { %v1055_v53 = vadd.f32 %v1054_v33, %v700_v41  ;;  %v732_v33 = vpop.f32.mrf.mxu1 }
 0x205   :  { %v1056_v6 = vpop.f32.mrf.mxu0 }
 0x206   :  { %v1057_v59 = vadd.f32 %v1056_v6, %v702_v62  ;;  %v3761_v35 = vadd.f32 %v3644_v30, %v1055_v53 }
 0x207   :  { %v1060_v31 = vpop.f32.mrf.mxu0 }
 0x208   :  { %5266 = vst [vmem:[#allocation76_spill] sm:$0xff] %v3761_v35  ;;  %v3764_v10 = vadd.f32 %v3647_v16, %v1057_v59  ;;  %v1061_v55 = vadd.f32 %v1060_v31, %v706_v7 }
 0x209   :  { %v1062_v34 = vpop.f32.mrf.mxu0 }
 0x20a   :  { %5267 = vst [vmem:[#allocation77_spill] sm:$0xff] %v3764_v10  ;;  %v1063_v3 = vadd.f32 %v1062_v34, %v708_v20  ;;  %v1252_v0 = vadd.f32 %v3764_v10, %v3761_v35  ;;  %v3769_v41 = vadd.f32 %v3644_v30, %v1061_v55 }
 0x20b   :  { %v1066_v37 = vpop.f32.mrf.mxu0 }
 0x20c   :  { %v3772_v6 = vadd.f32 %v3647_v16, %v1063_v3  ;;  %v1067_v62 = vadd.f32 %v1066_v37, %v712_v22  ;;  %1253 = vadd.xlane.f32.xlu1 %v1252_v0  ;;  %v736_v3 = vpop.f32.mrf.mxu1 }
 0x20d   :  { %v1068_v53 = vpop.f32.mrf.mxu0 }
 0x20e   :  { %5268 = vst [vmem:[#allocation78_spill] sm:$0xff] %v3772_v6  ;;  %v1069_v59 = vadd.f32 %v1068_v53, %v714_v44  ;;  %v1255_v31 = vadd.f32 %v3772_v6, %v3769_v41  ;;  %v3777_v34 = vadd.f32 %v3644_v30, %v1067_v62 }
 0x20f   :  { %v1072_v7 = vpop.f32.mrf.mxu0 }
 0x210   :  { %v3780_v20 = vadd.f32 %v3647_v16, %v1069_v59  ;;  %v1073_v55 = vadd.f32 %v1072_v7, %v718_v54  ;;  %1256 = vadd.xlane.f32.xlu1 %v1255_v31  ;;  %v738_v59 = vpop.f32.mrf.mxu1 }
 0x211   :  { %v1074_v10 = vpop.f32.mrf.mxu0 }
 0x212   :  { %5269 = vst [vmem:[#allocation79_spill] sm:$0xff] %v3780_v20  ;;  %v1075_v35 = vadd.f32 %v1074_v10, %v720_v14  ;;  %v1258_v0 = vadd.f32 %v3780_v20, %v3777_v34  ;;  %v3785_v44 = vadd.f32 %v3644_v30, %v1073_v55  ;;  %v742_v10 = vpop.f32.mrf.mxu1 }
 0x213   :  { %v1078_v37 = vpop.f32.mrf.mxu0 }
 0x214   :  { %v3788_v22 = vadd.f32 %v3647_v16, %v1075_v35  ;;  %v1079_v62 = vadd.f32 %v1078_v37, %v724_v36  ;;  %1259 = vadd.xlane.f32.xlu1 %v1258_v0 }
 0x215   :  { %v1080_v53 = vpop.f32.mrf.mxu0 }
 0x216   :  { %5270 = vst [vmem:[#allocation80_spill] sm:$0xff] %v3788_v22  ;;  %v1081_v6 = vadd.f32 %v1080_v53, %v726_v28  ;;  %v1261_v54 = vadd.f32 %v3788_v22, %v3785_v44  ;;  %v3793_v14 = vadd.f32 %v3644_v30, %v1079_v62  ;;  %v744_v28 = vpop.f32.mrf.mxu1 }
 0x217   :  { %v1084_v31 = vpop.f32.mrf.mxu0 }
 0x218   :  { %v3796_v7 = vadd.f32 %v3647_v16, %v1081_v6  ;;  %v1085_v55 = vadd.f32 %v1084_v31, %v730_v21  ;;  %1262 = vadd.xlane.f32.xlu1 %v1261_v54  ;;  %v1051_v6 = vadd.f32 %v1050_v11, %v3700_v40  ;;  %v748_v31 = vpop.f32.mrf.mxu1  ;;  %v1045_v11 = vadd.f32 %v3756_v29, %v3676_v25 }
 0x219   :  { %v1086_v35 = vpop.f32.mrf.mxu0 }
 0x21a   :  { %v1087_v20 = vadd.f32 %v1086_v35, %v732_v33  ;;  %v1264_v36 = vadd.f32 %v3796_v7, %v3793_v14  ;;  %v3801_v37 = vadd.f32 %v3644_v30, %v1085_v55  ;;  %v1049_v35 = vadd.f32 %v3758_v48, %v3688_v27 }
 0x21b   :  { %v1090_v0 = vpop.f32.mrf.mxu0  ;;  %v3820_v40 = vadd.f32 %v3647_v16, %v1051_v6  ;;  %v1043_v48 = vadd.f32 %v3754_v4, %v3665_v15  ;;  %v1039_v6 = vadd.f32 %v3752_v9, %v3655_v18  ;;  %v3840_v4 = vadd.f32 %v3647_v16, %v1045_v11 }
 0x21c   :  { %v3804_v53 = vadd.f32 %v3647_v16, %v1087_v20  ;;  %v1091_v62 = vadd.f32 %v1090_v0, %v736_v3  ;;  %1265 = vadd.xlane.f32.xlu1 %v1264_v36  ;;  %v750_v0 = vpop.f32.mrf.mxu1 }
 0x21d   :  { %v1092_v22 = vpop.f32.mrf.mxu0 }
 0x21e   :  { %v1093_v21 = vadd.f32 %v1092_v22, %v738_v59  ;;  %v1267_v33 = vadd.f32 %v3804_v53, %v3801_v37  ;;  %v3812_v55 = vadd.f32 %v3644_v30, %v1091_v62  ;;  %v3827_v62 = vadd.f32 %v3644_v30, %v1049_v35 }
 0x21f   :  { %v1096_v54 = vpop.f32.mrf.mxu0  ;;  %v955_v35 = vadd.f32 %v3623_v32, %v3547_v8  ;;  %v1031_v8 = vadd.f32 %v3746_v63, %v3625_v56 }
 0x220   :  { %v3815_v20 = vadd.f32 %v3647_v16, %v1093_v21  ;;  %v1097_v3 = vadd.f32 %v1096_v54, %v742_v10  ;;  %1268 = vadd.xlane.f32.xlu1 %v1267_v33  ;;  %v1249_v33 = vadd.f32 %v3820_v40, %v3827_v62 }
 0x221   :  { %v1098_v36 = vpop.f32.mrf.mxu0  ;;  %v3886_v11 = vadd.f32 %v3647_v16, %v955_v35 }
 0x222   :  { %v1099_v22 = vadd.f32 %v1098_v36, %v744_v28  ;;  %v1270_v59 = vadd.f32 %v3815_v20, %v3812_v55  ;;  %v3830_v10 = vadd.f32 %v3644_v30, %v1097_v3  ;;  %v961_v28 = vadd.f32 %v3630_v52, %v3563_v17 }
 0x223   :  { %v1102_v27 = vpop.f32.mrf.mxu0  ;;  %v1037_v52 = vadd.f32 %v3750_v23, %v3641_v13  ;;  %v3851_v17 = vadd.f32 %v3644_v30, %v1043_v48  ;;  %v1033_v13 = vadd.f32 %v3748_v19, %v3632_v24  ;;  %v953_v36 = vadd.f32 %v3621_v57, %v3538_v2 }
 0x224   :  { %v3833_v29 = vadd.f32 %v3647_v16, %v1099_v22  ;;  %v1103_v25 = vadd.f32 %v1102_v27, %v748_v31  ;;  %1271 = vadd.xlane.f32.xlu1 %v1270_v59  ;;  %v959_v31 = vadd.f32 %v3628_v26, %v3556_v12  ;;  %v3862_v3 = vadd.f32 %v3647_v16, %v961_v28  ;;  %v5273_v28 = vld [vmem:[#allocation51_spill] sm:$0xff] }
 0x225   :  { %v1104_v15 = vpop.f32.mrf.mxu0  ;;  %v3867_v26 = vadd.f32 %v3647_v16, %v1039_v6  ;;  %v1246_v12 = vadd.f32 %v3840_v4, %v3851_v17  ;;  %v3881_v24 = vadd.f32 %v3644_v30, %v1037_v52  ;;  %v949_v19 = vadd.f32 %v3617_v60, %v3529_v58  ;;  %v5274_v6 = vld [vmem:[#allocation75_spill] sm:$0xff]  ;;  %v5278_v52 = vld [vmem:[#allocation72_spill] sm:$0xff] }
 0x226   :  { %v1105_v21 = vadd.f32 %v1104_v15, %v750_v0  ;;  %v1273_v54 = vadd.f32 %v3833_v29, %v3830_v10  ;;  %v3854_v18 = vadd.f32 %v3644_v30, %v1103_v25  ;;  %v3876_v32 = vadd.f32 %v3644_v30, %v959_v31  ;;  %v5275_v15 = vld [vmem:[#allocation35_spill] sm:$0xff]  ;;  %v5277_v31 = vld [vmem:[#allocation48_spill] sm:$0xff] }
 0x227   :  { %v3889_v22 = vadd.f32 %v3647_v16, %v1033_v13  ;;  %v1243_v57 = vadd.f32 %v3867_v26, %v3881_v24  ;;  %v947_v2 = vadd.f32 %v3615_v39, %v3520_v51  ;;  %v3898_v63 = vadd.f32 %v3644_v30, %v953_v36 }
 0x228   :  { %v3857_v9 = vadd.f32 %v3647_v16, %v1105_v21  ;;  %1250 = vadd.xlane.f32.xlu1 %v1249_v33  ;;  %1274 = vadd.xlane.f32.xlu0 %v1273_v54  ;;  %v1204_v56 = vadd.f32 %v3862_v3, %v3876_v32  ;;  %v1025_v60 = vadd.f32 %v3741_v49, %v3613_v61  ;;  %v5276_v21 = vld [vmem:[#allocation54_spill] sm:$0xff] }
 0x229   :  { %v3903_v58 = vadd.f32 %v3644_v30, %v1031_v8  ;;  %v943_v59 = vadd.f32 %v3611_v47, %v3511_v46  ;;  %v3908_v48 = vadd.f32 %v3647_v16, %v949_v19  ;;  %v1021_v39 = vadd.f32 %v3739_v38, %v3607_v45  ;;  %v5271_v38 = vld [vmem:[#allocation37_spill] sm:$0xff] }
 0x22a   :  { %v1276_v23 = vadd.f32 %v3857_v9, %v3854_v18  ;;  %v3914_v51 = vadd.f32 %v3647_v16, %v3744_v50  ;;  %v1201_v49 = vadd.f32 %v3886_v11, %v3898_v63  ;;  %v941_v27 = vadd.f32 %v3609_v1, %v3502_v42  ;;  %v5272_v50 = vld [vmem:[#allocation55_spill] sm:$0xff] }
 0x22b   :  { %v1240_v61 = vadd.f32 %v3889_v22, %v3903_v58  ;;  %v3923_v46 = vadd.f32 %v3644_v30, %v947_v2  ;;  %v1019_v47 = vadd.f32 %v3737_v43, %v3601_v5  ;;  %v3928_v45 = vadd.f32 %v3644_v30, %v1025_v60  ;;  %v5282_v2 = vld [vmem:[#allocation31_spill] sm:$0xff]  ;;  %v5283_v60 = vld [vmem:[#allocation52_spill] sm:$0xff] }
 0x22c   :  { %1247 = vadd.xlane.f32.xlu1 %v1246_v12  ;;  %1277 = vadd.xlane.f32.xlu0 %v1276_v23  ;;  %v937_v0 = vadd.f32 %v5272_v50, %v5271_v38  ;;  %v3933_v25 = vadd.f32 %v3647_v16, %v943_v59  ;;  %v1015_v1 = vadd.f32 %v5274_v6, %v5273_v28  ;;  %v5279_v12 = vld [vmem:[#allocation33_spill] sm:$0xff]  ;;  %v5287_v28 = vld [vmem:[#allocation27_spill] sm:$0xff] }
 0x22d   :  { %v3938_v42 = vadd.f32 %v3647_v16, %v1021_v39  ;;  %v1237_v5 = vadd.f32 %v3914_v51, %v3928_v45  ;;  %v1198_v43 = vadd.f32 %v3908_v48, %v3923_v46  ;;  %v935_v33 = vadd.f32 %v5276_v21, %v5275_v15  ;;  %v5280_v23 = vld [vmem:[#allocation53_spill] sm:$0xff]  ;;  %v5290_v15 = vld [vmem:[#allocation47_spill] sm:$0xff] }
 0x22e   :  { %v3947_v54 = vadd.f32 %v3644_v30, %v941_v27  ;;  %v1013_v35 = vadd.f32 %v5278_v52, %v5277_v31  ;;  %v3952_v13 = vadd.f32 %v3644_v30, %v1019_v47  ;;  %v931_v36 = vadd.f32 %v5280_v23, %v5279_v12  ;;  %v5286_v27 = vld [vmem:[#allocation50_spill] sm:$0xff]  ;;  %v5288_v6 = vld [vmem:[#allocation49_spill] sm:$0xff]  ;;  %v5291_v52 = vld [vmem:[#allocation23_spill] sm:$0xff] }
 0x22f   :  { %v3957_v8 = vadd.f32 %v3647_v16, %v937_v0  ;;  %v3960_v19 = vadd.f32 %v3647_v16, %v1015_v1  ;;  %v929_v59 = vadd.f32 %v5283_v60, %v5282_v2  ;;  %v3969_v39 = vadd.f32 %v3644_v30, %v935_v33 }
 0x230   :  { %1244 = vadd.xlane.f32.xlu1 %v1243_v57  ;;  %1205 = vadd.xlane.f32.xlu0 %v1204_v56  ;;  %v1234_v57 = vadd.f32 %v3938_v42, %v3952_v13  ;;  %v1195_v56 = vadd.f32 %v3933_v25, %v3947_v54  ;;  %v3977_v38 = vadd.f32 %v3647_v16, %v931_v36 }
 0x231   :  { %5281 = vst [vmem:[#allocation37_spill] sm:$0xff] %v3960_v19  ;;  %v1192_v0 = vadd.f32 %v3957_v8, %v3969_v39  ;;  %v923_v1 = vadd.f32 %v5288_v6, %v5287_v28  ;;  %v5297_v6 = vld [vmem:[#allocation60_spill] sm:$0xff] }
 0x233   :  { %v3998_v23 = vadd.f32 %v3644_v30, %v923_v1 }
 0x234   :  { %1241 = vadd.xlane.f32.xlu1 %v1240_v61  ;;  %1202 = vadd.xlane.f32.xlu0 %v1201_v49  ;;  %v3972_v61 = vadd.f32 %v3644_v30, %v1013_v35  ;;  %v5285_v49 = vld [vmem:[#allocation29_spill] sm:$0xff]  ;;  %v5292_v35 = vld [vmem:[#allocation46_spill] sm:$0xff] }
 0x235   :  { %v925_v47 = vadd.f32 %v5286_v27, %v5285_v49  ;;  %v917_v12 = vadd.f32 %v5292_v35, %v5291_v52  ;;  %v5293_v49 = vld [vmem:[#allocation58_spill] sm:$0xff] }
 0x236   :  { %5284 = vst [vmem:[#allocation55_spill] sm:$0xff] %v3972_v61  ;;  %v1231_v50 = vadd.f32 %v3960_v19, %v3972_v61 }
 0x237   :  { %v3991_v33 = vadd.f32 %v3647_v16, %v925_v47 }
 0x238   :  { %1238 = vadd.xlane.f32.xlu1 %v1237_v5  ;;  %1199 = vadd.xlane.f32.xlu0 %v1198_v43  ;;  %v3986_v5 = vadd.f32 %v3644_v30, %v929_v59  ;;  %v5289_v43 = vld [vmem:[#allocation25_spill] sm:$0xff] }
 0x239   :  { %v919_v21 = vadd.f32 %v5290_v15, %v5289_v43  ;;  %v5299_v43 = vld [vmem:[#allocation61_spill] sm:$0xff] }
 0x23a   :  { %v1189_v31 = vadd.f32 %v3977_v38, %v3986_v5 }
 0x23b   :  { %v4001_v36 = vadd.f32 %v3647_v16, %v919_v21  ;;  %v5295_v16 = vld [vmem:[#allocation59_spill] sm:$0xff] }
 0x23c   :  { %1235 = vadd.xlane.f32.xlu1 %v1234_v57  ;;  %1196 = vadd.xlane.f32.xlu0 %v1195_v56  ;;  %v1186_v57 = vadd.f32 %v3991_v33, %v3998_v23  ;;  %v4006_v56 = vadd.f32 %v3644_v30, %v917_v12 }
 0x23e   :  { %v1183_v2 = vadd.f32 %v4001_v36, %v4006_v56 }
 0x240   :  { %1232 = vadd.xlane.f32.xlu1 %v1231_v50  ;;  %1193 = vadd.xlane.f32.xlu0 %v1192_v0 }
 0x244   :  { %1190 = vadd.xlane.f32.xlu0 %v1189_v31 }
 0x248   :  { %1187 = vadd.xlane.f32.xlu0 %v1186_v57  ;;  %v5301_v57 = vld [vmem:[#allocation62_spill] sm:$0xff] }
 0x24c   :  { %1184 = vadd.xlane.f32.xlu0 %v1183_v2 }
 0x259   :  { %v1209_v60 = vpop.xlane.xlu0 %1208 }
 0x25a   :  { %v4010_v59 = vmul.f32 0.015625, %v1209_v60  ;;  %v5303_v60 = vld [vmem:[#allocation63_spill] sm:$0xff] }
 0x25c   :  { %v4014_v27 = vsub.f32 %v5293_v49, %v4010_v59  ;;  %v4018_v47 = vsub.f32 %v5295_v16, %v4010_v59 }
 0x25d   :  { %v1212_v50 = vpop.xlane.xlu0 %1211 }
 0x25e   :  { %5294 = vst [vmem:[#allocation51_spill] sm:$0xff] %v4014_v27  ;;  %5296 = vst [vmem:[#allocation75_spill] sm:$0xff] %v4018_v47  ;;  %v4020_v0 = vmul.f32 0.015625, %v1212_v50  ;;  %v1391_v30 = vmul.f32 %v4014_v27, %v4014_v27  ;;  %v1392_v28 = vmul.f32 %v4018_v47, %v4018_v47 }
 0x260   :  { %v4028_v1 = vsub.f32 %v5297_v6, %v4020_v0  ;;  %v4032_v15 = vsub.f32 %v5299_v43, %v4020_v0  ;;  %v1463_v21 = vadd.f32 %v1392_v28, %v1391_v30  ;;  %v5306_v43 = vld [vmem:[#allocation64_spill] sm:$0xff] }
 0x261   :  { %v1215_v31 = vpop.xlane.xlu0 %1214 }
 0x262   :  { %5298 = vst [vmem:[#allocation35_spill] sm:$0xff] %v4028_v1  ;;  %5300 = vst [vmem:[#allocation54_spill] sm:$0xff] %v4032_v15  ;;  %v4034_v52 = vmul.f32 0.015625, %v1215_v31  ;;  %1464 = vadd.xlane.f32.xlu0 %v1463_v21  ;;  %v1393_v35 = vmul.f32 %v4028_v1, %v4028_v1  ;;  %v1394_v12 = vmul.f32 %v4032_v15, %v4032_v15  ;;  %v5308_v31 = vld [vmem:[#allocation65_spill] sm:$0xff] }
 0x264   :  { %v4042_v2 = vsub.f32 %v5301_v57, %v4034_v52  ;;  %v4046_v49 = vsub.f32 %v5303_v60, %v4034_v52  ;;  %v1466_v16 = vadd.f32 %v1394_v12, %v1393_v35 }
 0x265   :  { %v1218_v50 = vpop.xlane.xlu0 %1217 }
 0x266   :  { %5302 = vst [vmem:[#allocation48_spill] sm:$0xff] %v4042_v2  ;;  %5304 = vst [vmem:[#allocation72_spill] sm:$0xff] %v4046_v49  ;;  %v4048_v30 = vmul.f32 0.015625, %v1218_v50  ;;  %1467 = vadd.xlane.f32.xlu0 %v1466_v16  ;;  %v1395_v28 = vmul.f32 %v4042_v2, %v4042_v2  ;;  %v1396_v6 = vmul.f32 %v4046_v49, %v4046_v49  ;;  %v5311_v49 = vld [vmem:[#allocation66_spill] sm:$0xff] }
 0x268   :  { %5305 = vst [vmem:[#allocation33_spill] sm:$0xff] %v4048_v30  ;;  %v4056_v21 = vsub.f32 %v5306_v43, %v4048_v30  ;;  %v4060_v57 = vsub.f32 %v5308_v31, %v4048_v30  ;;  %v1469_v60 = vadd.f32 %v1396_v6, %v1395_v28  ;;  %v5313_v43 = vld [vmem:[#allocation67_spill] sm:$0xff] }
 0x269   :  { %v1221_v35 = vpop.xlane.xlu0 %1220 }
 0x26a   :  { %5307 = vst [vmem:[#allocation53_spill] sm:$0xff] %v4056_v21  ;;  %5309 = vst [vmem:[#allocation31_spill] sm:$0xff] %v4060_v57  ;;  %v4062_v12 = vmul.f32 0.015625, %v1221_v35  ;;  %1470 = vadd.xlane.f32.xlu0 %v1469_v60  ;;  %v1397_v16 = vmul.f32 %v4056_v21, %v4056_v21  ;;  %v1398_v50 = vmul.f32 %v4060_v57, %v4060_v57  ;;  %v5316_v57 = vld [vmem:[#allocation68_spill] sm:$0xff] }
 0x26c   :  { %5310 = vst [vmem:[#allocation52_spill] sm:$0xff] %v4062_v12  ;;  %v4070_v2 = vsub.f32 %v5311_v49, %v4062_v12  ;;  %v4074_v15 = vsub.f32 %v5313_v43, %v4062_v12  ;;  %v1472_v31 = vadd.f32 %v1398_v50, %v1397_v16  ;;  %v5318_v49 = vld [vmem:[#allocation69_spill] sm:$0xff] }
 0x26d   :  { %v1224_v28 = vpop.xlane.xlu0 %1223 }
 0x26e   :  { %5312 = vst [vmem:[#allocation29_spill] sm:$0xff] %v4070_v2  ;;  %5314 = vst [vmem:[#allocation50_spill] sm:$0xff] %v4074_v15  ;;  %v4076_v6 = vmul.f32 0.015625, %v1224_v28  ;;  %1473 = vadd.xlane.f32.xlu0 %v1472_v31  ;;  %v1399_v60 = vmul.f32 %v4070_v2, %v4070_v2  ;;  %v1400_v35 = vmul.f32 %v4074_v15, %v4074_v15  ;;  %v5321_v15 = vld [vmem:[#allocation70_spill] sm:$0xff] }
 0x270   :  { %5315 = vst [vmem:[#allocation27_spill] sm:$0xff] %v4076_v6  ;;  %v4084_v21 = vsub.f32 %v5316_v57, %v4076_v6  ;;  %v4088_v1 = vsub.f32 %v5318_v49, %v4076_v6  ;;  %v1475_v43 = vadd.f32 %v1400_v35, %v1399_v60  ;;  %v5323_v57 = vld [vmem:[#allocation71_spill] sm:$0xff] }
 0x271   :  { %v1227_v16 = vpop.xlane.xlu0 %1226 }
 0x272   :  { %5317 = vst [vmem:[#allocation49_spill] sm:$0xff] %v4084_v21  ;;  %5319 = vst [vmem:[#allocation25_spill] sm:$0xff] %v4088_v1  ;;  %v4090_v50 = vmul.f32 0.015625, %v1227_v16  ;;  %1476 = vadd.xlane.f32.xlu0 %v1475_v43  ;;  %v1401_v31 = vmul.f32 %v4084_v21, %v4084_v21  ;;  %v1402_v28 = vmul.f32 %v4088_v1, %v4088_v1  ;;  %v5326_v1 = vld [vmem:[#allocation73_spill] sm:$0xff] }
 0x274   :  { %5320 = vst [vmem:[#allocation47_spill] sm:$0xff] %v4090_v50  ;;  %v4098_v2 = vsub.f32 %v5321_v15, %v4090_v50  ;;  %v4102_v47 = vsub.f32 %v5323_v57, %v4090_v50  ;;  %v1478_v49 = vadd.f32 %v1402_v28, %v1401_v31  ;;  %v5328_v15 = vld [vmem:[#allocation74_spill] sm:$0xff] }
 0x275   :  { %v1230_v60 = vpop.xlane.xlu1 %1229 }
 0x276   :  { %5322 = vst [vmem:[#allocation23_spill] sm:$0xff] %v4098_v2  ;;  %5324 = vst [vmem:[#allocation46_spill] sm:$0xff] %v4102_v47  ;;  %v4104_v35 = vmul.f32 0.015625, %v1230_v60  ;;  %1479 = vadd.xlane.f32.xlu0 %v1478_v49  ;;  %v1403_v43 = vmul.f32 %v4098_v2, %v4098_v2  ;;  %v1404_v16 = vmul.f32 %v4102_v47, %v4102_v47 }
 0x278   :  { %5325 = vst [vmem:[#allocation58_spill] sm:$0xff] %v4104_v35  ;;  %v4112_v21 = vsub.f32 %v5326_v1, %v4104_v35  ;;  %v4116_v27 = vsub.f32 %v5328_v15, %v4104_v35  ;;  %v1481_v57 = vadd.f32 %v1404_v16, %v1403_v43 }
 0x27a   :  { %5327 = vst [vmem:[#allocation59_spill] sm:$0xff] %v4112_v21  ;;  %5329 = vst [vmem:[#allocation60_spill] sm:$0xff] %v4116_v27  ;;  %1482 = vadd.xlane.f32.xlu0 %v1481_v57  ;;  %v1405_v31 = vmul.f32 %v4112_v21, %v4112_v21  ;;  %v1406_v28 = vmul.f32 %v4116_v27, %v4116_v27 }
 0x27c   :  { %v1484_v49 = vadd.f32 %v1406_v28, %v1405_v31 }
 0x27e   :  { %1485 = vadd.xlane.f32.xlu0 %v1484_v49 }
 0x295   :  { %v1254_v60 = vpop.xlane.xlu1 %1253 }
 0x296   :  { %v4136_v28 = vmul.f32 0.015625, %v1254_v60 }
 0x298   :  { %5332 = vst [vmem:[#allocation63_spill] sm:$0xff] %v4136_v28 }
 0x299   :  { %v1257_v47 = vpop.xlane.xlu1 %1256 }
 0x29d   :  { %v1260_v2 = vpop.xlane.xlu1 %1259 }
 0x2a1   :  { %v1263_v50 = vpop.xlane.xlu1 %1262 }
 0x2a5   :  { %v4122_v1 = vpop.xlane.xlu1 %1265 }
 0x2a9   :  { %v4124_v6 = vpop.xlane.xlu1 %1268 }
 0x2ad   :  { %v4126_v15 = vpop.xlane.xlu1 %1271 }
 0x2b1   :  { %v1251_v43 = vpop.xlane.xlu1 %1250  ;;  %v4128_v16 = vpop.xlane.xlu0 %1274 }
 0x2b2   :  { %v4130_v57 = vmul.f32 0.015625, %v1251_v43 }
 0x2b4   :  { %5330 = vst [vmem:[#allocation61_spill] sm:$0xff] %v4130_v57  ;;  %v4148_v12 = vsub.f32 %v3827_v62, %v4130_v57  ;;  %v4152_v43 = vsub.f32 %v3820_v40, %v4130_v57  ;;  %v5339_v62 = vld [vmem:[#allocation77_spill] sm:$0xff] }
 0x2b5   :  { %v1248_v21 = vpop.xlane.xlu1 %1247  ;;  %v4132_v35 = vpop.xlane.xlu0 %1277  ;;  %v4166_v19 = vsub.f32 %v5339_v62, %v4136_v28 }
 0x2b6   :  { %v4134_v31 = vmul.f32 0.015625, %v1248_v21  ;;  %5335 = vst [vmem:[#allocation66_spill] sm:$0xff] %v4148_v12  ;;  %5336 = vst [vmem:[#allocation67_spill] sm:$0xff] %v4152_v43  ;;  %v1420_v61 = vmul.f32 %v4152_v43, %v4152_v43 }
 0x2b7   :  { %5340 = vst [vmem:[#allocation69_spill] sm:$0xff] %v4166_v19 }
 0x2b8   :  { %5331 = vst [vmem:[#allocation62_spill] sm:$0xff] %v4134_v31  ;;  %v4140_v49 = vsub.f32 %v3851_v17, %v4134_v31  ;;  %v4144_v27 = vsub.f32 %v3840_v4, %v4134_v31  ;;  %v5337_v4 = vld [vmem:[#allocation76_spill] sm:$0xff] }
 0x2b9   :  { %v1206_v21 = vpop.xlane.xlu0 %1205  ;;  %v4162_v31 = vsub.f32 %v5337_v4, %v4136_v28  ;;  %v1419_v4 = vmul.f32 %v4148_v12, %v4148_v12 }
 0x2ba   :  { %5333 = vst [vmem:[#allocation64_spill] sm:$0xff] %v4140_v49  ;;  %5334 = vst [vmem:[#allocation65_spill] sm:$0xff] %v4144_v27  ;;  %v4154_v30 = vmul.f32 0.015625, %v1206_v21  ;;  %v1417_v60 = vmul.f32 %v4140_v49, %v4140_v49  ;;  %v1418_v17 = vmul.f32 %v4144_v27, %v4144_v27  ;;  %v4176_v49 = vmul.f32 0.015625, %v1257_v47 }
 0x2bb   :  { %5338 = vst [vmem:[#allocation68_spill] sm:$0xff] %v4162_v31 }
 0x2bc   :  { %v4170_v40 = vsub.f32 %v3876_v32, %v4154_v30  ;;  %v4174_v21 = vsub.f32 %v3862_v3, %v4154_v30  ;;  %v1502_v27 = vadd.f32 %v1418_v17, %v1417_v60  ;;  %v4188_v3 = vmul.f32 0.015625, %v1260_v2 }
 0x2bd   :  { %v1203_v57 = vpop.xlane.xlu0 %1202  ;;  %v1422_v17 = vmul.f32 %v4166_v19, %v4166_v19 }
 0x2be   :  { %5341 = vst [vmem:[#allocation70_spill] sm:$0xff] %v4170_v40  ;;  %5342 = vst [vmem:[#allocation71_spill] sm:$0xff] %v4174_v21  ;;  %v4182_v62 = vmul.f32 0.015625, %v1203_v57  ;;  %v1389_v32 = vmul.f32 %v4170_v40, %v4170_v40  ;;  %v1390_v28 = vmul.f32 %v4174_v21, %v4174_v21  ;;  %1503 = vadd.xlane.f32.xlu1 %v1502_v27  ;;  %v5343_v27 = vld [vmem:[#allocation78_spill] sm:$0xff] }
 0x2bf   :  { %v1421_v57 = vmul.f32 %v4162_v31, %v4162_v31  ;;  %v4204_v21 = vsub.f32 %v3769_v41, %v4176_v49  ;;  %v4208_v2 = vsub.f32 %v5343_v27, %v4176_v49  ;;  %v1505_v40 = vadd.f32 %v1420_v61, %v1419_v4  ;;  %v5345_v41 = vld [vmem:[#allocation79_spill] sm:$0xff] }
 0x2c0   :  { %v4192_v47 = vsub.f32 %v3898_v63, %v4182_v62  ;;  %v4196_v60 = vsub.f32 %v3886_v11, %v4182_v62  ;;  %v1460_v43 = vadd.f32 %v1390_v28, %v1389_v32  ;;  %v4218_v19 = vsub.f32 %v3777_v34, %v4188_v3 }
 0x2c1   :  { %v1200_v63 = vpop.xlane.xlu0 %1199  ;;  %v4222_v27 = vsub.f32 %v5345_v41, %v4188_v3  ;;  %v4224_v61 = vmul.f32 0.015625, %v1263_v50 }
 0x2c2   :  { %v4210_v12 = vmul.f32 0.015625, %v1200_v63  ;;  %v1387_v11 = vmul.f32 %v4192_v47, %v4192_v47  ;;  %v1388_v31 = vmul.f32 %v4196_v60, %v4196_v60  ;;  %5344 = vst [vmem:[#allocation73_spill] sm:$0xff] %v4218_v19  ;;  %1506 = vadd.xlane.f32.xlu1 %v1505_v40  ;;  %1461 = vadd.xlane.f32.xlu0 %v1460_v43 }
 0x2c3   :  { %5346 = vst [vmem:[#allocation74_spill] sm:$0xff] %v4222_v27  ;;  %v1508_v63 = vadd.f32 %v1422_v17, %v1421_v57  ;;  %v1423_v43 = vmul.f32 %v4204_v21, %v4204_v21  ;;  %v1424_v40 = vmul.f32 %v4208_v2, %v4208_v2 }
 0x2c4   :  { %v4228_v28 = vsub.f32 %v3923_v46, %v4210_v12  ;;  %v4232_v4 = vsub.f32 %v3908_v48, %v4210_v12  ;;  %v1457_v34 = vadd.f32 %v1388_v31, %v1387_v11  ;;  %v1425_v48 = vmul.f32 %v4218_v19, %v4218_v19 }
 0x2c5   :  { %v1197_v32 = vpop.xlane.xlu0 %1196  ;;  %v4248_v31 = vsub.f32 %v3785_v44, %v4224_v61  ;;  %v1426_v11 = vmul.f32 %v4222_v27, %v4222_v27  ;;  %v1511_v19 = vadd.f32 %v1424_v40, %v1423_v43  ;;  %v4274_v27 = vmul.f32 0.015625, %v4124_v6 }
 0x2c6   :  { %5347 = vst [vmem:[#allocation76_spill] sm:$0xff] %v4228_v28  ;;  %5348 = vst [vmem:[#allocation77_spill] sm:$0xff] %v4232_v4  ;;  %v4238_v41 = vmul.f32 0.015625, %v1197_v32  ;;  %v1385_v50 = vmul.f32 %v4228_v28, %v4228_v28  ;;  %v1386_v46 = vmul.f32 %v4232_v4, %v4232_v4  ;;  %1509 = vadd.xlane.f32.xlu1 %v1508_v63  ;;  %1458 = vadd.xlane.f32.xlu0 %v1457_v34  ;;  %v5349_v32 = vld [vmem:[#allocation80_spill] sm:$0xff] }
 0x2c7   :  { %v4262_v63 = vsub.f32 %v5349_v32, %v4224_v61  ;;  %v4265_v34 = vmul.f32 0.015625, %v4122_v1  ;;  %v1514_v40 = vadd.f32 %v1426_v11, %v1425_v48 }
 0x2c8   :  { %v4252_v57 = vsub.f32 %v3947_v54, %v4238_v41  ;;  %v4256_v17 = vsub.f32 %v3933_v25, %v4238_v41  ;;  %v1454_v4 = vadd.f32 %v1386_v46, %v1385_v50  ;;  %v1427_v50 = vmul.f32 %v4248_v31, %v4248_v31 }
 0x2c9   :  { %v1194_v44 = vpop.xlane.xlu0 %1193  ;;  %v4288_v46 = vsub.f32 %v3793_v14, %v4265_v34  ;;  %v4304_v14 = vsub.f32 %v3801_v37, %v4274_v27 }
 0x2ca   :  { %v4267_v28 = vmul.f32 0.015625, %v1194_v44  ;;  %v1383_v54 = vmul.f32 %v4252_v57, %v4252_v57  ;;  %v1384_v25 = vmul.f32 %v4256_v17, %v4256_v17  ;;  %1512 = vadd.xlane.f32.xlu1 %v1511_v19  ;;  %1455 = vadd.xlane.f32.xlu0 %v1454_v4  ;;  %v4292_v19 = vsub.f32 %v3796_v7, %v4265_v34 }
 0x2cb   :  { %5352 = vst [vmem:[#allocation80_spill] sm:$0xff] %v4288_v46  ;;  %5354 = vst [vmem:[#allocation82_spill] sm:$0xff] %v4304_v14  ;;  %v4308_v7 = vsub.f32 %v3804_v53, %v4274_v27  ;;  %v1429_v53 = vmul.f32 %v4288_v46, %v4288_v46 }
 0x2cc   :  { %v4278_v1 = vsub.f32 %v3969_v39, %v4267_v28  ;;  %v4282_v43 = vsub.f32 %v3957_v8, %v4267_v28  ;;  %5353 = vst [vmem:[#allocation81_spill] sm:$0xff] %v4292_v19  ;;  %v1451_v4 = vadd.f32 %v1384_v25, %v1383_v54  ;;  %v1428_v39 = vmul.f32 %v4262_v63, %v4262_v63 }
 0x2cd   :  { %v1191_v6 = vpop.xlane.xlu0 %1190  ;;  %5355 = vst [vmem:[#allocation83_spill] sm:$0xff] %v4308_v7  ;;  %v4319_v25 = vmul.f32 0.015625, %v4126_v15  ;;  %v1431_v15 = vmul.f32 %v4304_v14, %v4304_v14 }
 0x2ce   :  { %5350 = vst [vmem:[#allocation78_spill] sm:$0xff] %v4278_v1  ;;  %5351 = vst [vmem:[#allocation79_spill] sm:$0xff] %v4282_v43  ;;  %v4296_v32 = vmul.f32 0.015625, %v1191_v6  ;;  %v1381_v8 = vmul.f32 %v4278_v1, %v4278_v1  ;;  %v1382_v48 = vmul.f32 %v4282_v43, %v4282_v43  ;;  %1515 = vadd.xlane.f32.xlu1 %v1514_v40  ;;  %1452 = vadd.xlane.f32.xlu0 %v1451_v4  ;;  %v1245_v4 = vpop.xlane.xlu1 %1244 }
 0x2cf   :  { %v1517_v6 = vadd.f32 %v1428_v39, %v1427_v50  ;;  %v1430_v40 = vmul.f32 %v4292_v19, %v4292_v19  ;;  %v1432_v50 = vmul.f32 %v4308_v7, %v4308_v7 }
 0x2d0   :  { %v4312_v11 = vsub.f32 %v3986_v5, %v4296_v32  ;;  %v4316_v44 = vsub.f32 %v3977_v38, %v4296_v32  ;;  %v1448_v54 = vadd.f32 %v1382_v48, %v1381_v8 }
 0x2d1   :  { %v1188_v37 = vpop.xlane.xlu0 %1187  ;;  %v1520_v14 = vadd.f32 %v1430_v40, %v1429_v53 }
 0x2d2   :  { %5356 = vst [vmem:[#allocation84_spill] sm:$0xff] %v4312_v11  ;;  %5357 = vst [vmem:[#allocation85_spill] sm:$0xff] %v4316_v44  ;;  %v4325_v43 = vmul.f32 0.015625, %v1188_v37  ;;  %v1379_v5 = vmul.f32 %v4312_v11, %v4312_v11  ;;  %v1380_v38 = vmul.f32 %v4316_v44, %v4316_v44  ;;  %1518 = vadd.xlane.f32.xlu1 %v1517_v6  ;;  %1449 = vadd.xlane.f32.xlu0 %v1448_v54 }
 0x2d3   :  { %v4345_v37 = vsub.f32 %v3812_v55, %v4319_v25  ;;  %v4349_v54 = vsub.f32 %v3815_v20, %v4319_v25  ;;  %v4352_v6 = vmul.f32 0.015625, %v4128_v16  ;;  %v1523_v55 = vadd.f32 %v1432_v50, %v1431_v15  ;;  %v1242_v20 = vpop.xlane.xlu1 %1241 }
 0x2d4   :  { %v4337_v39 = vsub.f32 %v3998_v23, %v4325_v43  ;;  %v4341_v8 = vsub.f32 %v3991_v33, %v4325_v43  ;;  %v1445_v48 = vadd.f32 %v1380_v38, %v1379_v5  ;;  %v4361_v38 = vmul.f32 0.015625, %v4132_v35 }
 0x2d5   :  { %5360 = vst [vmem:[#allocation88_spill] sm:$0xff] %v4345_v37  ;;  %5361 = vst [vmem:[#allocation89_spill] sm:$0xff] %v4349_v54  ;;  %v1185_v7 = vpop.xlane.xlu0 %1184  ;;  %v4373_v40 = vsub.f32 %v3830_v10, %v4352_v6  ;;  %v1433_v35 = vmul.f32 %v4345_v37, %v4345_v37 }
 0x2d6   :  { %5358 = vst [vmem:[#allocation86_spill] sm:$0xff] %v4337_v39  ;;  %5359 = vst [vmem:[#allocation87_spill] sm:$0xff] %v4341_v8  ;;  %v4354_v23 = vmul.f32 0.015625, %v1185_v7  ;;  %v1377_v33 = vmul.f32 %v4337_v39, %v4337_v39  ;;  %v1378_v5 = vmul.f32 %v4341_v8, %v4341_v8  ;;  %1521 = vadd.xlane.f32.xlu1 %v1520_v14  ;;  %1446 = vadd.xlane.f32.xlu0 %v1445_v48  ;;  %v5446_v8 = vld [vmem:[#allocation21_spill] sm:$0xff] }
 0x2d7   :  { %5364 = vst [vmem:[#allocation92_spill] sm:$0xff] %v4373_v40  ;;  %v4377_v14 = vsub.f32 %v3833_v29, %v4352_v6  ;;  %v4389_v10 = vsub.f32 %v3854_v18, %v4361_v38  ;;  %v4393_v29 = vsub.f32 %v3857_v9, %v4361_v38  ;;  %v4395_v48 = vmul.f32 0.015625, %v1245_v4 }
 0x2d8   :  { %v4365_v16 = vsub.f32 %v4006_v56, %v4354_v23  ;;  %v4369_v7 = vsub.f32 %v4001_v36, %v4354_v23  ;;  %v1442_v53 = vadd.f32 %v1378_v5, %v1377_v33  ;;  %v1434_v56 = vmul.f32 %v4349_v54, %v4349_v54 }
 0x2d9   :  { %5365 = vst [vmem:[#allocation93_spill] sm:$0xff] %v4377_v14  ;;  %5366 = vst [vmem:[#allocation94_spill] sm:$0xff] %v4389_v10  ;;  %v1435_v5 = vmul.f32 %v4373_v40, %v4373_v40  ;;  %v1437_v18 = vmul.f32 %v4389_v10, %v4389_v10  ;;  %v1438_v9 = vmul.f32 %v4393_v29, %v4393_v29 }
 0x2da   :  { %5362 = vst [vmem:[#allocation90_spill] sm:$0xff] %v4365_v16  ;;  %5363 = vst [vmem:[#allocation91_spill] sm:$0xff] %v4369_v7  ;;  %v1375_v15 = vmul.f32 %v4365_v16, %v4365_v16  ;;  %v1376_v36 = vmul.f32 %v4369_v7, %v4369_v7  ;;  %1524 = vadd.xlane.f32.xlu1 %v1523_v55  ;;  %1443 = vadd.xlane.f32.xlu0 %v1442_v53  ;;  %v1239_v55 = vpop.xlane.xlu1 %1238 }
 0x2db   :  { %5367 = vst [vmem:[#allocation95_spill] sm:$0xff] %v4393_v29  ;;  %v1526_v33 = vadd.f32 %v1434_v56, %v1433_v35  ;;  %v1436_v7 = vmul.f32 %v4377_v14, %v4377_v14  ;;  %v4407_v4 = vsub.f32 %v3881_v24, %v4395_v48  ;;  %v4411_v53 = vsub.f32 %v3867_v26, %v4395_v48 }
 0x2dc   :  { %v1439_v50 = vadd.f32 %v1376_v36, %v1375_v15  ;;  %v4413_v35 = vmul.f32 0.015625, %v1242_v20  ;;  %v4415_v15 = vmul.f32 0.015625, %v1239_v55 }
 0x2dd   :  { %5368 = vst [vmem:[#allocation96_spill] sm:$0xff] %v4407_v4  ;;  %5369 = vst [vmem:[#allocation97_spill] sm:$0xff] %v4411_v53  ;;  %v1529_v56 = vadd.f32 %v1436_v7, %v1435_v5  ;;  %v1415_v26 = vmul.f32 %v4407_v4, %v4407_v4  ;;  %v1416_v20 = vmul.f32 %v4411_v53, %v4411_v53 }
 0x2de   :  { %1527 = vadd.xlane.f32.xlu1 %v1526_v33  ;;  %1440 = vadd.xlane.f32.xlu0 %v1439_v50  ;;  %v1236_v36 = vpop.xlane.xlu1 %1235  ;;  %v1532_v50 = vadd.f32 %v1438_v9, %v1437_v18  ;;  %v4419_v33 = vsub.f32 %v3903_v58, %v4413_v35  ;;  %v4423_v24 = vsub.f32 %v3889_v22, %v4413_v35 }
 0x2df   :  { %v1575_v7 = vmul.f32 %v4010_v59, %v4010_v59  ;;  %v4433_v5 = vsub.f32 %v3928_v45, %v4415_v15  ;;  %v4437_v58 = vsub.f32 %v3914_v51, %v4415_v15  ;;  %v4439_v22 = vmul.f32 0.015625, %v1236_v36 }
 0x2e0   :  { %5370 = vst [vmem:[#allocation98_spill] sm:$0xff] %v4419_v33  ;;  %5371 = vst [vmem:[#allocation99_spill] sm:$0xff] %v4423_v24  ;;  %v1499_v55 = vadd.f32 %v1416_v20, %v1415_v26  ;;  %v1413_v18 = vmul.f32 %v4419_v33, %v4419_v33  ;;  %v1414_v9 = vmul.f32 %v4423_v24, %v4423_v24 }
 0x2e1   :  { %5372 = vst [vmem:[#allocation100_spill] sm:$0xff] %v4433_v5  ;;  %5373 = vst [vmem:[#allocation101_spill] sm:$0xff] %v4437_v58  ;;  %v1607_v59 = vmul.f32 3.0, %v1575_v7  ;;  %v1576_v45 = vmul.f32 %v4020_v0, %v4020_v0  ;;  %v1411_v51 = vmul.f32 %v4433_v5, %v4433_v5  ;;  %v1412_v36 = vmul.f32 %v4437_v58, %v4437_v58 }
 0x2e2   :  { %1530 = vadd.xlane.f32.xlu1 %v1529_v56  ;;  %v1233_v56 = vpop.xlane.xlu1 %1232  ;;  %v4453_v26 = vsub.f32 %v3952_v13, %v4439_v22  ;;  %v4457_v20 = vsub.f32 %v3938_v42, %v4439_v22  ;;  %v1577_v5 = vmul.f32 %v4034_v52, %v4034_v52  ;;  %v5376_v13 = vld [vmem:[#allocation55_spill] sm:$0xff]  ;;  %v5378_v42 = vld [vmem:[#allocation37_spill] sm:$0xff] }
 0x2e3   :  { %v4459_v7 = vmul.f32 0.015625, %v1233_v56  ;;  %v1608_v33 = vmul.f32 3.0, %v1576_v45  ;;  %v1493_v4 = vadd.f32 %v1412_v36, %v1411_v51  ;;  %v5380_v36 = vld [vmem:[#allocation33_spill] sm:$0xff] }
 0x2e4   :  { %5374 = vst [vmem:[#allocation102_spill] sm:$0xff] %v4453_v26  ;;  %5375 = vst [vmem:[#allocation103_spill] sm:$0xff] %v4457_v20  ;;  %v1609_v56 = vmul.f32 3.0, %v1577_v5 }
 0x2e5   :  { %v4465_v29 = vsub.f32 %v5376_v13, %v4459_v7  ;;  %v4469_v10 = vsub.f32 %v5378_v42, %v4459_v7 }
 0x2e6   :  { %1533 = vadd.xlane.f32.xlu1 %v1532_v50 }
 0x2e7   :  { %5377 = vst [vmem:[#allocation55_spill] sm:$0xff] %v4465_v29  ;;  %5379 = vst [vmem:[#allocation37_spill] sm:$0xff] %v4469_v10  ;;  %v1408_v13 = vmul.f32 %v4469_v10, %v4469_v10 }
 0x2ea   :  { %1500 = vadd.xlane.f32.xlu1 %v1499_v55  ;;  %v1496_v55 = vadd.f32 %v1414_v9, %v1413_v18  ;;  %v1410_v18 = vmul.f32 %v4457_v20, %v4457_v20 }
 0x2eb   :  { %v1465_v50 = vpop.xlane.xlu0 %1464 }
 0x2ec   :  { %v1543_v53 = vmul.f32 0.015625, %v1465_v50 }
 0x2ee   :  { %v1639_v50 = vsub.f32 %v1543_v53, %v1607_v59  ;;  %1497 = vadd.xlane.f32.xlu1 %v1496_v55  ;;  %v1409_v53 = vmul.f32 %v4453_v26, %v4453_v26  ;;  %v1578_v55 = vmul.f32 %v5380_v36, %v5380_v36 }
 0x2ef   :  { %v1468_v0 = vpop.xlane.xlu0 %1467 }
 0x2f0   :  { %v1671_v24 = vmax.f32 %v1639_v50, 0.0  ;;  %v1544_v58 = vmul.f32 0.015625, %v1468_v0  ;;  %v1490_v50 = vadd.f32 %v1410_v18, %v1409_v53  ;;  %v1407_v0 = vmul.f32 %v4465_v29, %v4465_v29 }
 0x2f2   :  { %v1703_v9 = vadd.f32 1e-05, %v1671_v24  ;;  %v1640_v52 = vsub.f32 %v1544_v58, %v1608_v33  ;;  %1494 = vadd.xlane.f32.xlu1 %v1493_v4  ;;  %v5381_v4 = vld [vmem:[#allocation52_spill] sm:$0xff]  ;;  %v1610_v58 = vmul.f32 3.0, %v1578_v55 }
 0x2f3   :  { %v1471_v59 = vpop.xlane.xlu0 %1470  ;;  %v1579_v24 = vmul.f32 %v5381_v4, %v5381_v4 }
 0x2f4   :  { %2618 = vrsqrt.f32 %v1703_v9  ;;  %v1672_v45 = vmax.f32 %v1640_v52, 0.0  ;;  %v1545_v51 = vmul.f32 0.015625, %v1471_v59  ;;  %v1487_v52 = vadd.f32 %v1408_v13, %v1407_v0  ;;  %v5383_v13 = vld [vmem:[#allocation56_spill] sm:$0xff] }
 0x2f5   :  { %v1611_v18 = vmul.f32 3.0, %v1579_v24 }
 0x2f6   :  { %v1704_v42 = vadd.f32 1e-05, %v1672_v45  ;;  %v1641_v20 = vsub.f32 %v1545_v51, %v1609_v56  ;;  %1491 = vadd.xlane.f32.xlu1 %v1490_v50  ;;  %v2507_v45 = vld [vmem:[%s5055_s5 + $0x1] ss:$8 sm:$0x3]  ;;  %v5382_v50 = vld [vmem:[#allocation27_spill] sm:$0xff] }
 0x2f7   :  { %v1474_v33 = vpop.xlane.xlu0 %1473  ;;  %v1580_v4 = vmul.f32 %v5382_v50, %v5382_v50 }
 0x2f8   :  { %2620 = vrsqrt.f32 %v1704_v42  ;;  %v1673_v5 = vmax.f32 %v1641_v20, 0.0  ;;  %v1546_v9 = vmul.f32 0.015625, %v1474_v33  ;;  %v2508_v20 = vld [vmem:[%s5055_s5 + $0x2] ss:$8 sm:$0x3]  ;;  %v4492_v42 = vrot.slane %v2507_v45, %v5383_v13 }
 0x2f9   :  { %v5384_v33 = vld [vmem:[#allocation57_spill] sm:$0xff] }
 0x2fa   :  { %v1705_v59 = vadd.f32 1e-05, %v1673_v5  ;;  %v1642_v53 = vsub.f32 %v1546_v9, %v1610_v58  ;;  %1488 = vadd.xlane.f32.xlu1 %v1487_v52  ;;  %v4495_v24 = vrot.slane %v2507_v45, %v5384_v33  ;;  %v1612_v9 = vmul.f32 3.0, %v1580_v4 }
 0x2fb   :  { %v1477_v36 = vpop.xlane.xlu0 %1476  ;;  %v4505_v45 = vrot.slane %v2508_v20, %v5384_v33 }
 0x2fc   :  { %2622 = vrsqrt.f32 %v1705_v59  ;;  %v1674_v56 = vmax.f32 %v1642_v53, 0.0  ;;  %v1547_v51 = vmul.f32 0.015625, %v1477_v36  ;;  %v4498_v53 = vrot.slane %v2508_v20, %v5383_v13  ;;  %v5385_v36 = vld [vmem:[#allocation47_spill] sm:$0xff] }
 0x2fd   :  { %v1581_v50 = vmul.f32 %v5385_v36, %v5385_v36  ;;  %5388 = vst [vmem:[#allocation33_spill] sm:$0xff] %v4505_v45  ;;  %v5389_v36 = vld [vmem:[#allocation58_spill] sm:$0xff] }
 0x2fe   :  { %v1706_v55 = vadd.f32 1e-05, %v1674_v56  ;;  %v1643_v0 = vsub.f32 %v1547_v51, %v1611_v18  ;;  %v5386_v56 = vld [vmem:[#allocation51_spill] sm:$0xff] }
 0x2ff   :  { %v1480_v5 = vpop.xlane.xlu0 %1479  ;;  %v5387_v51 = vld [vmem:[#allocation75_spill] sm:$0xff]  ;;  %v1613_v14 = vmul.f32 3.0, %v1581_v50 }
 0x300   :  { %2624 = vrsqrt.f32 %v1706_v55  ;;  %v1675_v58 = vmax.f32 %v1643_v0, 0.0  ;;  %v1548_v52 = vmul.f32 0.015625, %v1480_v5 }
 0x301   :  { %v2619_v59 = vpop.eup %2618 }
 0x302   :  { %v1775_v18 = vmul.f32 %v2619_v59, %v5386_v56  ;;  %v1776_v10 = vmul.f32 %v2619_v59, %v5387_v51  ;;  %v1707_v29 = vadd.f32 1e-05, %v1675_v58  ;;  %v1644_v26 = vsub.f32 %v1548_v52, %v1612_v9  ;;  %v5390_v58 = vld [vmem:[#allocation35_spill] sm:$0xff]  ;;  %v5391_v52 = vld [vmem:[#allocation54_spill] sm:$0xff] }
 0x303   :  { %v1483_v55 = vpop.xlane.xlu0 %1482  ;;  %v1582_v56 = vmul.f32 %v5389_v36, %v5389_v36 }
 0x304   :  { %v1852_v4 = vmul.f32 %v4492_v42, %v1775_v18  ;;  %v1853_v0 = vmul.f32 %v4495_v24, %v1776_v10  ;;  %2626 = vrsqrt.f32 %v1707_v29  ;;  %v1676_v13 = vmax.f32 %v1644_v26, 0.0 }
 0x305   :  { %v2621_v5 = vpop.eup %2620  ;;  %v1549_v40 = vmul.f32 0.015625, %v1483_v55  ;;  %v1614_v36 = vmul.f32 3.0, %v1582_v56 }
 0x306   :  { %v1929_v59 = vadd.f32 %v4498_v53, %v1852_v4  ;;  %v1777_v9 = vmul.f32 %v2621_v5, %v5390_v58  ;;  %v1778_v20 = vmul.f32 %v2621_v5, %v5391_v52  ;;  %v1708_v33 = vadd.f32 1e-05, %v1676_v13  ;;  %v5392_v58 = vld [vmem:[#allocation48_spill] sm:$0xff] }
 0x307   :  { %v1645_v51 = vsub.f32 %v1549_v40, %v1613_v14  ;;  %v1486_v16 = vpop.xlane.xlu0 %1485  ;;  %v1930_v18 = vadd.f32 %v4505_v45, %v1853_v0  ;;  %v5393_v13 = vld [vmem:[#allocation72_spill] sm:$0xff] }
 0x308   :  { %v2517_v10 = vmul.f32 -1.442695, %v1929_v59  ;;  %v1854_v29 = vmul.f32 %v4492_v42, %v1777_v9  ;;  %v1855_v26 = vmul.f32 %v4495_v24, %v1778_v20  ;;  %2628 = vrsqrt.f32 %v1708_v33 }
 0x309   :  { %v2623_v50 = vpop.eup %2622  ;;  %v1677_v55 = vmax.f32 %v1645_v51, 0.0  ;;  %v1550_v54 = vmul.f32 0.015625, %v1486_v16  ;;  %v5394_v51 = vld [vmem:[#allocation53_spill] sm:$0xff] }
 0x30a   :  { %2630 = vpow2.f32 %v2517_v10  ;;  %v1931_v4 = vadd.f32 %v4498_v53, %v1854_v29  ;;  %v1779_v5 = vmul.f32 %v2623_v50, %v5392_v58  ;;  %v1780_v40 = vmul.f32 %v2623_v50, %v5393_v13  ;;  %v5395_v29 = vld [vmem:[#allocation31_spill] sm:$0xff]  ;;  %v5396_v13 = vld [vmem:[#allocation29_spill] sm:$0xff] }
 0x30b   :  { %v1709_v14 = vadd.f32 1e-05, %v1677_v55  ;;  %v1646_v52 = vsub.f32 %v1550_v54, %v1614_v36  ;;  %v1932_v0 = vadd.f32 %v4505_v45, %v1855_v26 }
 0x30c   :  { %v2518_v59 = vmul.f32 -1.442695, %v1931_v4  ;;  %v1856_v9 = vmul.f32 %v4492_v42, %v1779_v5  ;;  %v1857_v20 = vmul.f32 %v4495_v24, %v1780_v40 }
 0x30d   :  { %v2625_v33 = vpop.eup %2624  ;;  %2632 = vrsqrt.f32 %v1709_v14  ;;  %v1678_v56 = vmax.f32 %v1646_v52, 0.0  ;;  %v5397_v14 = vld [vmem:[#allocation50_spill] sm:$0xff] }
 0x30e   :  { %2634 = vpow2.f32 %v2518_v59  ;;  %v1933_v16 = vadd.f32 %v4498_v53, %v1856_v9  ;;  %v1781_v10 = vmul.f32 %v2625_v33, %v5394_v51  ;;  %v1782_v58 = vmul.f32 %v2625_v33, %v5395_v29  ;;  %v5398_v51 = vld [vmem:[#allocation49_spill] sm:$0xff] }
 0x30f   :  { %v1710_v50 = vadd.f32 1e-05, %v1678_v56  ;;  %v1934_v54 = vadd.f32 %v4505_v45, %v1857_v20  ;;  %v5399_v29 = vld [vmem:[#allocation25_spill] sm:$0xff] }
 0x310   :  { %v2519_v55 = vmul.f32 -1.442695, %v1933_v16  ;;  %v1858_v26 = vmul.f32 %v4492_v42, %v1781_v10  ;;  %v1859_v36 = vmul.f32 %v4495_v24, %v1782_v58 }
 0x311   :  { %v2627_v4 = vpop.eup %2626  ;;  %2636 = vrsqrt.f32 %v1710_v50 }
 0x312   :  { %2638 = vpow2.f32 %v2519_v55  ;;  %v1935_v5 = vadd.f32 %v4498_v53, %v1858_v26  ;;  %v1783_v40 = vmul.f32 %v2627_v4, %v5396_v13  ;;  %v1784_v52 = vmul.f32 %v2627_v4, %v5397_v14 }
 0x313   :  { %v1936_v59 = vadd.f32 %v4505_v45, %v1859_v36 }
 0x314   :  { %v2520_v9 = vmul.f32 -1.442695, %v1935_v5  ;;  %v1860_v33 = vmul.f32 %v4492_v42, %v1783_v40  ;;  %v1861_v20 = vmul.f32 %v4495_v24, %v1784_v52 }
 0x315   :  { %v2629_v56 = vpop.eup %2628 }
 0x316   :  { %2640 = vpow2.f32 %v2520_v9  ;;  %v1937_v16 = vadd.f32 %v4498_v53, %v1860_v33  ;;  %v1785_v10 = vmul.f32 %v2629_v56, %v5398_v51  ;;  %v1786_v58 = vmul.f32 %v2629_v56, %v5399_v29  ;;  %v5400_v9 = vld [vmem:[#allocation23_spill] sm:$0xff]  ;;  %v5401_v56 = vld [vmem:[#allocation46_spill] sm:$0xff] }
 0x317   :  { %v2631_v50 = vpop.eup %2630  ;;  %v1938_v55 = vadd.f32 %v4505_v45, %v1861_v20  ;;  %2642 = vtanh.f32 %v1930_v18 }
 0x318   :  { %v2521_v26 = vmul.f32 -1.442695, %v1937_v16  ;;  %v1862_v4 = vmul.f32 %v4492_v42, %v1785_v10  ;;  %v1863_v36 = vmul.f32 %v4495_v24, %v1786_v58  ;;  %v2081_v5 = vadd.f32 1.0, %v2631_v50 }
 0x31a   :  { %v2633_v13 = vpop.eup %2632  ;;  %2644 = vpow2.f32 %v2521_v26  ;;  %v1939_v40 = vadd.f32 %v4498_v53, %v1862_v4  ;;  %v1940_v14 = vadd.f32 %v4505_v45, %v1863_v36  ;;  %v5402_v26 = vld [vmem:[#allocation59_spill] sm:$0xff]  ;;  %v5403_v36 = vld [vmem:[#allocation60_spill] sm:$0xff] }
 0x31b   :  { %v2635_v52 = vpop.eup %2634  ;;  %v1787_v33 = vmul.f32 %v2633_v13, %v5400_v9  ;;  %v1788_v51 = vmul.f32 %v2633_v13, %v5401_v56  ;;  %2646 = vrcp.f32 %v2081_v5 }
 0x31c   :  { %v2522_v20 = vmul.f32 -1.442695, %v1939_v40  ;;  %v2082_v16 = vadd.f32 1.0, %v2635_v52  ;;  %2648 = vtanh.f32 %v1932_v0 }
 0x31d   :  { %v1864_v10 = vmul.f32 %v4492_v42, %v1787_v33  ;;  %v1865_v29 = vmul.f32 %v4495_v24, %v1788_v51 }
 0x31e   :  { %v2637_v18 = vpop.eup %2636  ;;  %2650 = vpow2.f32 %v2522_v20 }
 0x31f   :  { %v2639_v58 = vpop.eup %2638  ;;  %v1941_v50 = vadd.f32 %v4498_v53, %v1864_v10  ;;  %v1789_v4 = vmul.f32 %v2637_v18, %v5402_v26  ;;  %v1790_v37 = vmul.f32 %v2637_v18, %v5403_v36  ;;  %v1942_v9 = vadd.f32 %v4505_v45, %v1865_v29  ;;  %v5406_v26 = vld [vmem:[#allocation6_spill] sm:$0xff] }
 0x320   :  { %v2083_v13 = vadd.f32 1.0, %v2639_v58  ;;  %2652 = vrcp.f32 %v2082_v16 }
 0x321   :  { %v2523_v5 = vmul.f32 -1.442695, %v1941_v50  ;;  %v1866_v40 = vmul.f32 %v4492_v42, %v1789_v4  ;;  %v1867_v52 = vmul.f32 %v4495_v24, %v1790_v37  ;;  %2654 = vtanh.f32 %v1934_v54  ;;  %v5405_v50 = vld [vmem:[#allocation22_spill] sm:$0xff] }
 0x322   :  { %2656 = vrcp.f32 %v2083_v13  ;;  %v2581_v4 = vpack.i.bf16 %v5406_v26, %v5405_v50 }
 0x323   :  { %v2641_v0 = vpop.eup %2640  ;;  %2658 = vpow2.f32 %v2523_v5  ;;  %v1943_v33 = vadd.f32 %v4498_v53, %v1866_v40  ;;  %v1944_v56 = vadd.f32 %v4505_v45, %v1867_v52 }
 0x324   :  { %v2084_v51 = vadd.f32 1.0, %v2641_v0  ;;  %2660 = vtanh.f32 %v1936_v59  ;;  %v2643_v10 = vpop.eup %2642  ;;  %v5408_v0 = vld [vmem:[#allocation24_spill] sm:$0xff] }
 0x325   :  { %v2524_v20 = vmul.f32 -1.442695, %v1943_v33 }
 0x326   :  { %2662 = vrcp.f32 %v2084_v51 }
 0x327   :  { %v2645_v29 = vpop.eup %2644  ;;  %2664 = vpow2.f32 %v2524_v20 }
 0x328   :  { %v2647_v16 = vpop.eup %2646  ;;  %v2085_v18 = vadd.f32 1.0, %v2645_v29  ;;  %2666 = vtanh.f32 %v1938_v55  ;;  %v5409_v55 = vld [vmem:[#allocation7_spill] sm:$0xff] }
 0x329   :  { %v4555_v58 = vmul.f32 %v2647_v16, %v2643_v10  ;;  %v2649_v37 = vpop.eup %2648  ;;  %v2583_v33 = vpack.i.bf16 %v5409_v55, %v5408_v0  ;;  %v5417_v0 = vld [vmem:[#allocation30_spill] sm:$0xff] }
 0x32a   :  { %2668 = vrcp.f32 %v2085_v18  ;;  %v5412_v18 = vld [vmem:[#allocation8_spill] sm:$0xff]  ;;  %v5418_v55 = vld [vmem:[#allocation10_spill] sm:$0xff] }
 0x32b   :  { %5404 = vst [vmem:[#allocation52_spill] sm:$0xff] %v4555_v58  ;;  %v2651_v54 = vpop.eup %2650  ;;  %2670 = vtanh.f32 %v1940_v14  ;;  %v5411_v14 = vld [vmem:[#allocation26_spill] sm:$0xff]  ;;  %v5433_v58 = vld [vmem:[#allocation16_spill] sm:$0xff] }
 0x32c   :  { %v2086_v36 = vadd.f32 1.0, %v2651_v54  ;;  %v2585_v54 = vpack.i.bf16 %v5412_v18, %v5411_v14 }
 0x32d   :  { %v2653_v13 = vpop.eup %2652  ;;  %2582 = vxpose.xlu1.b32.start [1/16] (narrow) %v2581_v4, 8 }
 0x32e   :  { %v2655_v5 = vpop.eup %2654  ;;  %2672 = vrcp.f32 %v2086_v36  ;;  %v4559_v59 = vmul.f32 %v2653_v13, %v2649_v37  ;;  %v5414_v36 = vld [vmem:[#allocation28_spill] sm:$0xff]  ;;  %v5415_v13 = vld [vmem:[#allocation9_spill] sm:$0xff] }
 0x32f   :  { %v2657_v40 = vpop.eup %2656  ;;  %2674 = vtanh.f32 %v1942_v9 }
 0x330   :  { %5407 = vst [vmem:[#allocation27_spill] sm:$0xff] %v4559_v59  ;;  %v2659_v52 = vpop.eup %2658  ;;  %v4563_v51 = vmul.f32 %v2657_v40, %v2655_v5  ;;  %v2587_v5 = vpack.i.bf16 %v5415_v13, %v5414_v36  ;;  %v5425_v13 = vld [vmem:[#allocation62_spill] sm:$0xff]  ;;  %v5442_v59 = vld [vmem:[#allocation19_spill] sm:$0xff] }
 0x331   :  { %v2087_v20 = vadd.f32 1.0, %v2659_v52  ;;  %v2661_v10 = vpop.eup %2660  ;;  %2584 = vxpose.xlu1.b32.cont [2/16] (narrow) %v2583_v33, 8  ;;  %v2589_v33 = vpack.i.bf16 %v5418_v55, %v5417_v0 }
 0x332   :  { %5410 = vst [vmem:[#allocation56_spill] sm:$0xff] %v4563_v51  ;;  %v5434_v51 = vld [vmem:[#allocation39_spill] sm:$0xff] }
 0x333   :  { %v2663_v29 = vpop.eup %2662  ;;  %2676 = vrcp.f32 %v2087_v20 }
 0x334   :  { %v2665_v16 = vpop.eup %2664  ;;  %v4567_v50 = vmul.f32 %v2663_v29, %v2661_v10  ;;  %2678 = vtanh.f32 %v1944_v56  ;;  %v5421_v56 = vld [vmem:[#allocation11_spill] sm:$0xff] }
 0x335   :  { %v2088_v37 = vadd.f32 1.0, %v2665_v16  ;;  %v2667_v26 = vpop.eup %2666  ;;  %2586 = vxpose.xlu1.b32.cont [3/16] (narrow) %v2585_v54, 8  ;;  %v5420_v16 = vld [vmem:[#allocation32_spill] sm:$0xff] }
 0x336   :  { %5413 = vst [vmem:[#allocation57_spill] sm:$0xff] %v4567_v50  ;;  %v2591_v14 = vpack.i.bf16 %v5421_v56, %v5420_v16 }
 0x337   :  { %v2669_v4 = vpop.eup %2668  ;;  %2680 = vrcp.f32 %v2088_v37 }
 0x338   :  { %v4571_v40 = vmul.f32 %v2669_v4, %v2667_v26  ;;  %v2671_v9 = vpop.eup %2670  ;;  %v5423_v26 = vld [vmem:[#allocation34_spill] sm:$0xff]  ;;  %v5424_v4 = vld [vmem:[#allocation12_spill] sm:$0xff] }
 0x339   :  { %2588 = vxpose.xlu1.b32.cont [4/16] (narrow) %v2587_v5, 8  ;;  %v2593_v36 = vpack.i.bf16 %v5424_v4, %v5423_v26  ;;  %v1588_v5 = vmul.f32 %v5425_v13, %v5425_v13  ;;  %v5435_v26 = vld [vmem:[#allocation15_spill] sm:$0xff]  ;;  %v5436_v13 = vld [vmem:[#allocation61_spill] sm:$0xff] }
 0x33a   :  { %5416 = vst [vmem:[#allocation47_spill] sm:$0xff] %v4571_v40  ;;  %v2599_v4 = vpack.i.bf16 %v5435_v26, %v5434_v51  ;;  %v1591_v51 = vmul.f32 %v4176_v49, %v4176_v49  ;;  %v1592_v26 = vmul.f32 %v4188_v3, %v4188_v3  ;;  %v5444_v40 = vld [vmem:[#allocation20_spill] sm:$0xff]  ;;  %v1594_v49 = vmul.f32 %v4265_v34, %v4265_v34 }
 0x33b   :  { %v2673_v52 = vpop.eup %2672  ;;  %v1595_v3 = vmul.f32 %v4274_v27, %v4274_v27  ;;  %v1597_v27 = vmul.f32 %v4352_v6, %v4352_v6  ;;  %v1598_v6 = vmul.f32 %v4361_v38, %v4361_v38 }
 0x33c   :  { %v4575_v20 = vmul.f32 %v2673_v52, %v2671_v9  ;;  %v2675_v10 = vpop.eup %2674  ;;  %v5427_v9 = vld [vmem:[#allocation36_spill] sm:$0xff]  ;;  %v5428_v52 = vld [vmem:[#allocation13_spill] sm:$0xff] }
 0x33d   :  { %2590 = vxpose.xlu1.b32.cont [5/16] (narrow) %v2589_v33, 8  ;;  %v2595_v55 = vpack.i.bf16 %v5428_v52, %v5427_v9  ;;  %v5429_v33 = vld [vmem:[#allocation63_spill] sm:$0xff]  ;;  %v1620_v9 = vmul.f32 3.0, %v1588_v5 }
 0x33e   :  { %5419 = vst [vmem:[#allocation51_spill] sm:$0xff] %v4575_v20  ;;  %v1590_v16 = vmul.f32 %v5429_v33, %v5429_v33  ;;  %v1574_v33 = vmul.f32 %v4154_v30, %v4154_v30  ;;  %v5439_v20 = vld [vmem:[#allocation42_spill] sm:$0xff] }
 0x340   :  { %v2677_v29 = vpop.eup %2676  ;;  %v1622_v45 = vmul.f32 3.0, %v1590_v16  ;;  %v1606_v5 = vmul.f32 3.0, %v1574_v33  ;;  %v1573_v16 = vmul.f32 %v4182_v62, %v4182_v62  ;;  %v4633_v62 = vmul.f32 3.0, %v1594_v49 }
 0x341   :  { %v4579_v18 = vmul.f32 %v2677_v29, %v2675_v10  ;;  %2592 = vxpose.xlu1.b32.cont [6/16] (narrow) %v2591_v14, 8  ;;  %v2679_v54 = vpop.eup %2678  ;;  %v5430_v10 = vld [vmem:[#allocation38_spill] sm:$0xff]  ;;  %v5432_v14 = vld [vmem:[#allocation40_spill] sm:$0xff]  ;;  %v4635_v33 = vmul.f32 3.0, %v1595_v3 }
 0x342   :  { %v5431_v29 = vld [vmem:[#allocation14_spill] sm:$0xff] }
 0x343   :  { %5422 = vst [vmem:[#allocation75_spill] sm:$0xff] %v4579_v18  ;;  %v2597_v56 = vpack.i.bf16 %v5431_v29, %v5430_v10  ;;  %v5440_v10 = vld [vmem:[#allocation18_spill] sm:$0xff]  ;;  %v5441_v18 = vld [vmem:[#allocation43_spill] sm:$0xff] }
 0x344   :  { %v2681_v37 = vpop.eup %2680 }
 0x345   :  { %v4585_v0 = vmul.f32 %v2681_v37, %v2679_v54  ;;  %2594 = vxpose.xlu1.b32.cont [7/16] (narrow) %v2593_v36, 8  ;;  %v1589_v54 = vmul.f32 %v5436_v13, %v5436_v13  ;;  %v5437_v37 = vld [vmem:[#allocation41_spill] sm:$0xff]  ;;  %v5443_v13 = vld [vmem:[#allocation44_spill] sm:$0xff] }
 0x346   :  { %v5438_v36 = vld [vmem:[#allocation17_spill] sm:$0xff] }
 0x347   :  { %5426 = vst [vmem:[#allocation58_spill] sm:$0xff] %v4585_v0  ;;  %v1504_v50 = vpop.xlane.xlu1 %1503  ;;  %v1621_v44 = vmul.f32 3.0, %v1589_v54  ;;  %v1623_v54 = vmul.f32 3.0, %v1591_v51 }
 0x348   :  { %v1556_v52 = vmul.f32 0.015625, %v1504_v50  ;;  %v5445_v50 = vld [vmem:[#allocation45_spill] sm:$0xff] }
 0x349   :  { %2596 = vxpose.xlu1.b32.cont [8/16] (narrow) %v2595_v55, 8  ;;  %v1593_v55 = vmul.f32 %v4224_v61, %v4224_v61  ;;  %v1596_v61 = vmul.f32 %v4319_v25, %v4319_v25 }
 0x34a   :  { %v1652_v30 = vsub.f32 %v1556_v52, %v1620_v9  ;;  %v4623_v9 = vmul.f32 3.0, %v1592_v26 }
 0x34b   :  { %v1507_v29 = vpop.xlane.xlu1 %1506  ;;  %v1462_v11 = vpop.xlane.xlu0 %1461 }
 0x34c   :  { %v1684_v0 = vmax.f32 %v1652_v30, 0.0  ;;  %v1557_v19 = vmul.f32 0.015625, %v1507_v29  ;;  %v1542_v46 = vmul.f32 0.015625, %v1462_v11  ;;  %v1572_v11 = vmul.f32 %v4210_v12, %v4210_v12 }
 0x34d   :  { %2598 = vxpose.xlu1.b32.cont [9/16] (narrow) %v2597_v56, 8  ;;  %v4631_v56 = vmul.f32 3.0, %v1593_v55  ;;  %v4641_v55 = vmul.f32 3.0, %v1597_v27  ;;  %v1571_v27 = vmul.f32 %v4238_v41, %v4238_v41 }
 0x34e   :  { %v1716_v52 = vadd.f32 1e-05, %v1684_v0  ;;  %v1653_v39 = vsub.f32 %v1557_v19, %v1621_v44  ;;  %v1638_v34 = vsub.f32 %v1542_v46, %v1606_v5  ;;  %v1605_v19 = vmul.f32 3.0, %v1573_v16 }
 0x34f   :  { %v1510_v30 = vpop.xlane.xlu1 %1509  ;;  %v1459_v29 = vpop.xlane.xlu0 %1458  ;;  %v4637_v44 = vmul.f32 3.0, %v1596_v61  ;;  %v1604_v1 = vmul.f32 3.0, %v1572_v11 }
 0x350   :  { %2682 = vrsqrt.f32 %v1716_v52  ;;  %v1685_v51 = vmax.f32 %v1653_v39, 0.0  ;;  %v1670_v25 = vmax.f32 %v1638_v34, 0.0  ;;  %v1558_v0 = vmul.f32 0.015625, %v1510_v30 }
 0x351   :  { %v1541_v46 = vmul.f32 0.015625, %v1459_v29  ;;  %2600 = vxpose.xlu1.b32.cont [10/16] (narrow) %v2599_v4, 8  ;;  %v1587_v39 = vmul.f32 %v4395_v48, %v4395_v48  ;;  %v1586_v4 = vmul.f32 %v4413_v35, %v4413_v35  ;;  %v4652_v30 = vmul.f32 3.0, %v1598_v6 }
 0x352   :  { %v1717_v26 = vadd.f32 1e-05, %v1685_v51  ;;  %v1702_v12 = vadd.f32 1e-05, %v1670_v25  ;;  %v1654_v5 = vsub.f32 %v1558_v0, %v1622_v45  ;;  %v5447_v45 = vpack.i.bf16 %v5433_v58, %v5432_v14 }
 0x353   :  { %v1637_v49 = vsub.f32 %v1541_v46, %v1605_v19  ;;  %v1513_v3 = vpop.xlane.xlu1 %1512  ;;  %v1456_v52 = vpop.xlane.xlu0 %1455  ;;  %v1585_v35 = vmul.f32 %v4415_v15, %v4415_v15  ;;  %v4656_v19 = vmul.f32 3.0, %v1587_v39  ;;  %v4658_v46 = vmul.f32 3.0, %v1586_v4 }
 0x354   :  { %2684 = vrsqrt.f32 %v1717_v26  ;;  %v1686_v16 = vmax.f32 %v1654_v5, 0.0  ;;  %v1559_v61 = vmul.f32 0.015625, %v1513_v3  ;;  %v1540_v34 = vmul.f32 0.015625, %v1456_v52 }
 0x355   :  { %2686 = vrsqrt.f32 %v1702_v12  ;;  %v1669_v38 = vmax.f32 %v1637_v49, 0.0  ;;  %2602 = vxpose.xlu1.b32.cont [11/16] (narrow) %v5447_v45, 8  ;;  %v1584_v58 = vmul.f32 %v4439_v22, %v4439_v22  ;;  %v5448_v15 = vpack.i.bf16 %v5438_v36, %v5437_v37 }
 0x356   :  { %v1718_v29 = vadd.f32 1e-05, %v1686_v16  ;;  %v1655_v48 = vsub.f32 %v1559_v61, %v1623_v54  ;;  %v1636_v11 = vsub.f32 %v1540_v34, %v1604_v1  ;;  %v1603_v54 = vmul.f32 3.0, %v1571_v27  ;;  %v5450_v27 = vld [vmem:[#allocation64_spill] sm:$0xff] }
 0x357   :  { %v1701_v51 = vadd.f32 1e-05, %v1669_v38  ;;  %v1516_v25 = vpop.xlane.xlu1 %1515  ;;  %v1453_v0 = vpop.xlane.xlu0 %1452  ;;  %v1570_v26 = vmul.f32 %v4267_v28, %v4267_v28  ;;  %v4668_v3 = vmul.f32 3.0, %v1585_v35  ;;  %v1569_v4 = vmul.f32 %v4296_v32, %v4296_v32 }
 0x358   :  { %2688 = vrsqrt.f32 %v1718_v29  ;;  %v1687_v41 = vmax.f32 %v1655_v48, 0.0  ;;  %v1668_v14 = vmax.f32 %v1636_v11, 0.0  ;;  %v1560_v6 = vmul.f32 0.015625, %v1516_v25  ;;  %v5451_v29 = vld [vmem:[#allocation65_spill] sm:$0xff] }
 0x359   :  { %2690 = vrsqrt.f32 %v1701_v51  ;;  %v1539_v1 = vmul.f32 0.015625, %v1453_v0  ;;  %2604 = vxpose.xlu1.b32.cont [12/16] (narrow) %v5448_v15, 8  ;;  %v1568_v16 = vmul.f32 %v4325_v43, %v4325_v43  ;;  %v4674_v37 = vmul.f32 3.0, %v1584_v58 }
 0x35a   :  { %v1719_v12 = vadd.f32 1e-05, %v1687_v41  ;;  %v1700_v5 = vadd.f32 1e-05, %v1668_v14  ;;  %v1656_v49 = vsub.f32 %v1560_v6, %v4623_v9  ;;  %v1602_v38 = vmul.f32 3.0, %v1570_v26 }
 0x35b   :  { %v1635_v22 = vsub.f32 %v1539_v1, %v1603_v54  ;;  %v1519_v52 = vpop.xlane.xlu1 %1518  ;;  %v1450_v39 = vpop.xlane.xlu0 %1449  ;;  %v5449_v45 = vpack.i.bf16 %v5440_v10, %v5439_v20  ;;  %v4681_v32 = vmul.f32 %v4459_v7, %v4459_v7  ;;  %v1601_v58 = vmul.f32 3.0, %v1569_v4  ;;  %v5455_v4 = vld [vmem:[#allocation70_spill] sm:$0xff] }
 0x35c   :  { %2692 = vrsqrt.f32 %v1719_v12  ;;  %v1688_v36 = vmax.f32 %v1656_v49, 0.0  ;;  %v1561_v28 = vmul.f32 0.015625, %v1519_v52  ;;  %v1538_v61 = vmul.f32 0.015625, %v1450_v39 }
 0x35d   :  { %v2683_v34 = vpop.eup %2682  ;;  %2694 = vrsqrt.f32 %v1700_v5  ;;  %v1667_v9 = vmax.f32 %v1635_v22, 0.0  ;;  %2606 = vxpose.xlu1.b32.cont [13/16] (narrow) %v5449_v45, 8  ;;  %v4686_v14 = vmul.f32 3.0, %v1568_v16  ;;  %v5453_v5 = vld [vmem:[#allocation66_spill] sm:$0xff]  ;;  %v5454_v22 = vld [vmem:[#allocation67_spill] sm:$0xff] }
 0x35e   :  { %v1801_v43 = vmul.f32 %v2683_v34, %v5450_v27  ;;  %v1802_v48 = vmul.f32 %v2683_v34, %v5451_v29  ;;  %v1720_v11 = vadd.f32 1e-05, %v1688_v36  ;;  %v1657_v35 = vsub.f32 %v1561_v28, %v4631_v56  ;;  %v5456_v36 = vld [vmem:[#allocation71_spill] sm:$0xff] }
 0x35f   :  { %v1699_v51 = vadd.f32 1e-05, %v1667_v9  ;;  %v1634_v25 = vsub.f32 %v1538_v61, %v1602_v38  ;;  %v1522_v0 = vpop.xlane.xlu1 %1521  ;;  %v1447_v41 = vpop.xlane.xlu0 %1446  ;;  %v5452_v56 = vpack.i.bf16 %v5442_v59, %v5441_v18 }
 0x360   :  { %v1878_v20 = vmul.f32 %v4492_v42, %v1801_v43  ;;  %v4690_v10 = vmul.f32 %v4495_v24, %v1802_v48  ;;  %2696 = vrsqrt.f32 %v1720_v11  ;;  %v1689_v7 = vmax.f32 %v1657_v35, 0.0  ;;  %v5458_v35 = vld [vmem:[#allocation68_spill] sm:$0xff] }
 0x361   :  { %v2685_v6 = vpop.eup %2684  ;;  %2698 = vrsqrt.f32 %v1699_v51  ;;  %v1666_v54 = vmax.f32 %v1634_v25, 0.0  ;;  %v1562_v1 = vmul.f32 0.015625, %v1522_v0  ;;  %v1537_v15 = vmul.f32 0.015625, %v1447_v41  ;;  %2608 = vxpose.xlu1.b32.cont [14/16] (narrow) %v5452_v56, 8  ;;  %v5459_v25 = vld [vmem:[#allocation69_spill] sm:$0xff] }
 0x362   :  { %v2687_v26 = vpop.eup %2686  ;;  %v4696_v12 = vadd.f32 %v4498_v53, %v1878_v20  ;;  %v1803_v49 = vmul.f32 %v2685_v6, %v5453_v5  ;;  %v1804_v52 = vmul.f32 %v2685_v6, %v5454_v22  ;;  %v1721_v39 = vadd.f32 1e-05, %v1689_v7 }
 0x363   :  { %v1773_v16 = vmul.f32 %v2687_v26, %v5455_v4  ;;  %v1774_v28 = vmul.f32 %v2687_v26, %v5456_v36  ;;  %v1698_v61 = vadd.f32 1e-05, %v1666_v54  ;;  %v1658_v34 = vsub.f32 %v1562_v1, %v4633_v62  ;;  %v1525_v9 = vpop.xlane.xlu1 %1524 }
 0x364   :  { %v1880_v59 = vmul.f32 %v4492_v42, %v1803_v49  ;;  %v4705_v18 = vmul.f32 %v4495_v24, %v1804_v52  ;;  %2700 = vrsqrt.f32 %v1721_v39  ;;  %v1633_v38 = vsub.f32 %v1537_v15, %v1601_v58  ;;  %v1444_v49 = vpop.xlane.xlu0 %1443 }
 0x365   :  { %v2689_v45 = vpop.eup %2688  ;;  %v1850_v27 = vmul.f32 %v4492_v42, %v1773_v16  ;;  %v4709_v43 = vmul.f32 %v4495_v24, %v1774_v28  ;;  %2702 = vrsqrt.f32 %v1698_v61  ;;  %v1690_v29 = vmax.f32 %v1658_v34, 0.0  ;;  %v5461_v28 = vld [vmem:[#allocation76_spill] sm:$0xff]  ;;  %v5462_v34 = vld [vmem:[#allocation77_spill] sm:$0xff] }
 0x366   :  { %v5457_v48 = vpack.i.bf16 %v5444_v40, %v5443_v13  ;;  %v2691_v62 = vpop.eup %2690  ;;  %v4715_v11 = vadd.f32 %v4498_v53, %v1880_v59  ;;  %v1805_v51 = vmul.f32 %v2689_v45, %v5458_v35  ;;  %v1806_v0 = vmul.f32 %v2689_v45, %v5459_v25  ;;  %v5463_v35 = vld [vmem:[#allocation73_spill] sm:$0xff]  ;;  %v5464_v25 = vld [vmem:[#allocation74_spill] sm:$0xff] }
 0x367   :  { %v1665_v58 = vmax.f32 %v1633_v38, 0.0  ;;  %v1927_v41 = vadd.f32 %v4498_v53, %v1850_v27  ;;  %v1771_v20 = vmul.f32 %v2691_v62, %v4192_v47  ;;  %v1772_v7 = vmul.f32 %v2691_v62, %v4196_v60  ;;  %v1528_v54 = vpop.xlane.xlu1 %1527 }
 0x368   :  { %2610 = vxpose.xlu1.b32.cont [15/16] (narrow) %v5457_v48, 8  ;;  %v1722_v6 = vadd.f32 1e-05, %v1690_v29  ;;  %v1882_v40 = vmul.f32 %v4492_v42, %v1805_v51  ;;  %v4724_v13 = vmul.f32 %v4495_v24, %v1806_v0  ;;  %v1563_v15 = vmul.f32 0.015625, %v1525_v9 }
 0x369   :  { %v1697_v1 = vadd.f32 1e-05, %v1665_v58  ;;  %v2693_v56 = vpop.eup %2692  ;;  %v1848_v26 = vmul.f32 %v4492_v42, %v1771_v20  ;;  %v4728_v5 = vmul.f32 %v4495_v24, %v1772_v7  ;;  %v1567_v47 = vmul.f32 %v4354_v23, %v4354_v23 }
 0x36a   :  { %2704 = vrsqrt.f32 %v1722_v6  ;;  %v5460_v60 = vpack.i.bf16 %v5446_v8, %v5445_v50  ;;  %v2695_v22 = vpop.eup %2694  ;;  %v4736_v52 = vadd.f32 %v4498_v53, %v1882_v40  ;;  %v1807_v39 = vmul.f32 %v2693_v56, %v4204_v21 }
 0x36b   :  { %v1808_v4 = vmul.f32 %v2693_v56, %v4208_v2  ;;  %2706 = vrsqrt.f32 %v1697_v1  ;;  %v2516_v16 = vmul.f32 -1.442695, %v1927_v41  ;;  %v1925_v36 = vadd.f32 %v4498_v53, %v1848_v26  ;;  %v1531_v9 = vpop.xlane.xlu1 %1530 }
 0x36c   :  { %2612 = vxpose.xlu1.b32.end [16/16] (narrow) %v5460_v60, 8  ;;  %v1769_v61 = vmul.f32 %v2695_v22, %v5461_v28  ;;  %v1770_v23 = vmul.f32 %v2695_v22, %v5462_v34  ;;  %v1884_v8 = vmul.f32 %v4492_v42, %v1807_v39  ;;  %v1659_v59 = vsub.f32 %v1563_v15, %v4635_v33  ;;  %v1441_v39 = vpop.xlane.xlu0 %1440  ;;  %v5466_v28 = vld [vmem:[#allocation79_spill] sm:$0xff] }
 0x36d   :  { %v4745_v50 = vmul.f32 %v4495_v24, %v1808_v4  ;;  %v1536_v38 = vmul.f32 0.015625, %v1444_v49  ;;  %v2697_v21 = vpop.eup %2696  ;;  %v1564_v27 = vmul.f32 0.015625, %v1528_v54  ;;  %v1599_v29 = vmul.f32 3.0, %v1567_v47 }
 0x36e   :  { %v1846_v2 = vmul.f32 %v4492_v42, %v1769_v61  ;;  %v4750_v45 = vmul.f32 %v4495_v24, %v1770_v23  ;;  %v2699_v48 = vpop.eup %2698  ;;  %v4753_v62 = vadd.f32 %v4498_v53, %v1884_v8  ;;  %v1809_v51 = vmul.f32 %v2697_v21, %v5463_v35 }
 0x36f   :  { %v1810_v0 = vmul.f32 %v2697_v21, %v5464_v25  ;;  %v1691_v58 = vmax.f32 %v1659_v59, 0.0  ;;  %2708 = vpow2.f32 %v2516_v16  ;;  %v1767_v41 = vmul.f32 %v2699_v48, %v4252_v57  ;;  %v1534_v7 = vpop.xlane.xlu1 %1533  ;;  %v5465_v16 = vld [vmem:[#allocation78_spill] sm:$0xff] }
 0x370   :  { %v1923_v33 = vadd.f32 %v4498_v53, %v1846_v2  ;;  %v1768_v20 = vmul.f32 %v2699_v48, %v4256_v17  ;;  %v1886_v6 = vmul.f32 %v4492_v42, %v1809_v51  ;;  %v1632_v1 = vsub.f32 %v1536_v38, %v4686_v14 }
 0x371   :  { %v4762_v54 = vmul.f32 %v4495_v24, %v1810_v0  ;;  %v1723_v40 = vadd.f32 1e-05, %v1691_v58  ;;  %v2701_v15 = vpop.eup %2700  ;;  %v2515_v56 = vmul.f32 -1.442695, %v1925_v36  ;;  %v1844_v26 = vmul.f32 %v4492_v42, %v1767_v41  ;;  %v5467_v0 = vld [vmem:[#allocation80_spill] sm:$0xff] }
 0x372   :  { %v4767_v49 = vmul.f32 %v4495_v24, %v1768_v20  ;;  %v1660_v57 = vsub.f32 %v1564_v27, %v4637_v44  ;;  %v2703_v47 = vpop.eup %2702  ;;  %v4771_v17 = vadd.f32 %v4498_v53, %v1886_v6  ;;  %v1811_v60 = vmul.f32 %v2701_v15, %v4248_v31  ;;  %v5469_v6 = vld [vmem:[#allocation84_spill] sm:$0xff] }
 0x373   :  { %v1812_v22 = vmul.f32 %v2701_v15, %v4262_v63  ;;  %2710 = vrsqrt.f32 %v1723_v40  ;;  %v2514_v14 = vmul.f32 -1.442695, %v1923_v33  ;;  %v1921_v4 = vadd.f32 %v4498_v53, %v1844_v26  ;;  %v1501_v34 = vpop.xlane.xlu1 %1500  ;;  %v5468_v33 = vld [vmem:[#allocation81_spill] sm:$0xff] }
 0x374   :  { %v1765_v36 = vmul.f32 %v2703_v47, %v5465_v16  ;;  %v1766_v61 = vmul.f32 %v2703_v47, %v5466_v28  ;;  %v1888_v44 = vmul.f32 %v4492_v42, %v1811_v60  ;;  %v1664_v8 = vmax.f32 %v1632_v1, 0.0  ;;  %v5470_v1 = vld [vmem:[#allocation85_spill] sm:$0xff] }
 0x375   :  { %v4780_v23 = vmul.f32 %v4495_v24, %v1812_v22  ;;  %v1692_v59 = vmax.f32 %v1660_v57, 0.0  ;;  %2712 = vpow2.f32 %v2515_v56  ;;  %v1535_v38 = vmul.f32 0.015625, %v1441_v39 }
 0x376   :  { %v1842_v31 = vmul.f32 %v4492_v42, %v1765_v36  ;;  %v4784_v63 = vmul.f32 %v4495_v24, %v1766_v61  ;;  %v4787_v2 = vadd.f32 %v4498_v53, %v1888_v44  ;;  %v1696_v27 = vadd.f32 1e-05, %v1664_v8 }
 0x377   :  { %v2705_v21 = vpop.eup %2704  ;;  %v1724_v48 = vadd.f32 1e-05, %v1692_v59  ;;  %v1565_v35 = vmul.f32 0.015625, %v1531_v9  ;;  %2714 = vpow2.f32 %v2514_v14  ;;  %v1498_v20 = vpop.xlane.xlu1 %1497  ;;  %v1631_v56 = vsub.f32 %v1535_v38, %v1599_v29 }
 0x378   :  { %v2707_v51 = vpop.eup %2706  ;;  %v1919_v25 = vadd.f32 %v4498_v53, %v1842_v31  ;;  %v1813_v58 = vmul.f32 %v2705_v21, %v5467_v0  ;;  %v1814_v41 = vmul.f32 %v2705_v21, %v5468_v33  ;;  %2716 = vrsqrt.f32 %v1696_v27  ;;  %v5471_v27 = vld [vmem:[#allocation33_spill] sm:$0xff]  ;;  %v5473_v33 = vld [vmem:[#allocation83_spill] sm:$0xff] }
 0x379   :  { %v1763_v40 = vmul.f32 %v2707_v51, %v5469_v6  ;;  %v1764_v15 = vmul.f32 %v2707_v51, %v5470_v1  ;;  %v2513_v26 = vmul.f32 -1.442695, %v1921_v4  ;;  %2718 = vrsqrt.f32 %v1724_v48 }
 0x37a   :  { %v1890_v57 = vmul.f32 %v4492_v42, %v1813_v58  ;;  %v1891_v9 = vmul.f32 %v4495_v24, %v1814_v41  ;;  %v1663_v22 = vmax.f32 %v1631_v56, 0.0  ;;  %v1661_v39 = vsub.f32 %v1565_v35, %v4641_v55 }
 0x37b   :  { %v1840_v47 = vmul.f32 %v4492_v42, %v1763_v40  ;;  %v4798_v60 = vmul.f32 %v4495_v24, %v1764_v15  ;;  %v2512_v14 = vmul.f32 -1.442695, %v1919_v25  ;;  %v1566_v36 = vmul.f32 0.015625, %v1534_v7  ;;  %v1495_v29 = vpop.xlane.xlu1 %1494 }
 0x37c   :  { %v1967_v16 = vadd.f32 %v4498_v53, %v1890_v57  ;;  %v1555_v28 = vmul.f32 0.015625, %v1501_v34  ;;  %v4802_v4 = vpop.eup %2708  ;;  %v1695_v44 = vadd.f32 1e-05, %v1663_v22  ;;  %v1693_v8 = vmax.f32 %v1661_v39, 0.0 }
 0x37d   :  { %v1917_v61 = vadd.f32 %v4498_v53, %v1840_v47  ;;  %v1554_v59 = vmul.f32 0.015625, %v1498_v20  ;;  %v1662_v31 = vsub.f32 %v1566_v36, %v4652_v30  ;;  %v1553_v21 = vmul.f32 0.015625, %v1495_v29  ;;  %v5472_v30 = vld [vmem:[#allocation82_spill] sm:$0xff] }
 0x37e   :  { %v1651_v38 = vsub.f32 %v1555_v28, %v4656_v19  ;;  %v4808_v55 = vadd.f32 %v5471_v27, %v1891_v9  ;;  %2720 = vrsqrt.f32 %v1695_v44  ;;  %v1725_v48 = vadd.f32 1e-05, %v1693_v8 }
 0x37f   :  { %v1650_v7 = vsub.f32 %v1554_v59, %v4658_v46  ;;  %v1615_v34 = vmul.f32 3.0, %v4681_v32  ;;  %2722 = vpow2.f32 %v2513_v26  ;;  %v1694_v51 = vmax.f32 %v1662_v31, 0.0  ;;  %v1492_v58 = vpop.xlane.xlu1 %1491  ;;  %v5475_v31 = vld [vmem:[#allocation87_spill] sm:$0xff] }
 0x380   :  { %v2711_v35 = vpop.eup %2710  ;;  %v1683_v25 = vmax.f32 %v1651_v38, 0.0  ;;  %v1649_v0 = vsub.f32 %v1553_v21, %v4668_v3  ;;  %2724 = vpow2.f32 %v2512_v14  ;;  %v1552_v26 = vmul.f32 0.015625, %v1492_v58 }
 0x381   :  { %v1815_v19 = vmul.f32 %v2711_v35, %v5472_v30  ;;  %v1816_v41 = vmul.f32 %v2711_v35, %v5473_v33  ;;  %v1682_v20 = vmax.f32 %v1650_v7, 0.0  ;;  %2726 = vrsqrt.f32 %v1725_v48  ;;  %v5476_v48 = vld [vmem:[#allocation88_spill] sm:$0xff] }
 0x382   :  { %v1726_v6 = vadd.f32 1e-05, %v1694_v51  ;;  %v1715_v40 = vadd.f32 1e-05, %v1683_v25  ;;  %v1681_v1 = vmax.f32 %v1649_v0, 0.0  ;;  %v4815_v46 = vpop.eup %2712  ;;  %v4821_v47 = vadd.f32 %v5471_v27, %v4780_v23  ;;  %v5474_v23 = vld [vmem:[#allocation86_spill] sm:$0xff] }
 0x383   :  { %v1892_v32 = vmul.f32 %v4492_v42, %v1815_v19  ;;  %v1893_v15 = vmul.f32 %v4495_v24, %v1816_v41  ;;  %v1714_v56 = vadd.f32 1e-05, %v1682_v20  ;;  %v2511_v3 = vmul.f32 -1.442695, %v1917_v61  ;;  %v1489_v9 = vpop.xlane.xlu1 %1488 }
 0x384   :  { %2728 = vrsqrt.f32 %v1726_v6  ;;  %v1713_v57 = vadd.f32 1e-05, %v1681_v1  ;;  %v4823_v22 = vpop.eup %2714  ;;  %v1648_v14 = vsub.f32 %v1552_v26, %v4674_v37  ;;  %v1551_v36 = vmul.f32 0.015625, %v1489_v9  ;;  %v5477_v37 = vld [vmem:[#allocation89_spill] sm:$0xff]  ;;  %v5479_v26 = vld [vmem:[#allocation91_spill] sm:$0xff] }
 0x385   :  { %v1969_v39 = vadd.f32 %v4498_v53, %v1892_v32  ;;  %2730 = vrsqrt.f32 %v1715_v40  ;;  %v2717_v28 = vpop.eup %2716  ;;  %v1970_v29 = vadd.f32 %v5471_v27, %v1893_v15  ;;  %v2536_v61 = vmul.f32 -1.442695, %v1967_v16  ;;  %v5478_v15 = vld [vmem:[#allocation90_spill] sm:$0xff] }
 0x386   :  { %2732 = vrsqrt.f32 %v1714_v56  ;;  %v4830_v44 = vadd.f32 %v5471_v27, %v4762_v54  ;;  %v2719_v8 = vpop.eup %2718  ;;  %v1761_v59 = vmul.f32 %v2717_v28, %v5474_v23  ;;  %v1762_v38 = vmul.f32 %v2717_v28, %v5475_v31  ;;  %v5481_v23 = vld [vmem:[#allocation93_spill] sm:$0xff] }
 0x387   :  { %2734 = vrsqrt.f32 %v1713_v57  ;;  %v1680_v21 = vmax.f32 %v1648_v14, 0.0  ;;  %v1817_v7 = vmul.f32 %v2719_v8, %v5476_v48  ;;  %v1818_v35 = vmul.f32 %v2719_v8, %v5477_v37 }
 0x388   :  { %v1647_v51 = vsub.f32 %v1551_v36, %v1615_v34  ;;  %v2537_v25 = vmul.f32 -1.442695, %v1969_v39  ;;  %2736 = vpow2.f32 %v2511_v3  ;;  %v1838_v16 = vmul.f32 %v4492_v42, %v1761_v59 }
 0x389   :  { %v4838_v0 = vmul.f32 %v4495_v24, %v1762_v38  ;;  %v1712_v54 = vadd.f32 1e-05, %v1680_v21  ;;  %v1894_v58 = vmul.f32 %v4492_v42, %v1817_v7  ;;  %v1895_v30 = vmul.f32 %v4495_v24, %v1818_v35  ;;  %v5483_v7 = vld [vmem:[#allocation95_spill] sm:$0xff] }
 0x38a   :  { %v1679_v19 = vmax.f32 %v1647_v51, 0.0  ;;  %2738 = vpow2.f32 %v2537_v25  ;;  %v1915_v33 = vadd.f32 %v4498_v53, %v1838_v16  ;;  %v4845_v34 = vadd.f32 %v5471_v27, %v4745_v50  ;;  %v5484_v51 = vld [vmem:[#allocation96_spill] sm:$0xff]  ;;  %v5485_v16 = vld [vmem:[#allocation97_spill] sm:$0xff] }
 0x38b   :  { %2740 = vrsqrt.f32 %v1712_v54  ;;  %v2721_v41 = vpop.eup %2720  ;;  %v1971_v20 = vadd.f32 %v4498_v53, %v1894_v58  ;;  %v1972_v40 = vadd.f32 %v5471_v27, %v1895_v30  ;;  %v2535_v9 = vmul.f32 -1.442695, %v4787_v2 }
 0x38c   :  { %v1711_v6 = vadd.f32 1e-05, %v1679_v19  ;;  %2742 = vpow2.f32 %v2536_v61  ;;  %v4849_v1 = vpop.eup %2722  ;;  %v2510_v32 = vmul.f32 -1.442695, %v1915_v33  ;;  %v1759_v56 = vmul.f32 %v2721_v41, %v5478_v15  ;;  %v5480_v61 = vld [vmem:[#allocation92_spill] sm:$0xff]  ;;  %v5486_v33 = vld [vmem:[#allocation98_spill] sm:$0xff] }
 0x38d   :  { %v1760_v3 = vmul.f32 %v2721_v41, %v5479_v26  ;;  %2744 = vtanh.f32 %v1970_v29  ;;  %v4853_v57 = vpop.eup %2724  ;;  %v2538_v50 = vmul.f32 -1.442695, %v1971_v20  ;;  %v4858_v39 = vadd.f32 %v5471_v27, %v4724_v13  ;;  %v5487_v15 = vld [vmem:[#allocation99_spill] sm:$0xff] }
 0x38e   :  { %2746 = vrsqrt.f32 %v1711_v6  ;;  %v2727_v14 = vpop.eup %2726  ;;  %v1836_v36 = vmul.f32 %v4492_v42, %v1759_v56  ;;  %v4867_v29 = vadd.f32 %v5471_v27, %v4709_v43  ;;  %v4874_v31 = vadd.f32 %v5471_v27, %v4705_v18  ;;  %v5482_v43 = vld [vmem:[#allocation94_spill] sm:$0xff] }
 0x38f   :  { %v4862_v28 = vmul.f32 %v4495_v24, %v1760_v3  ;;  %2748 = vtanh.f32 %v4808_v55  ;;  %v1819_v8 = vmul.f32 %v2727_v14, %v5480_v61  ;;  %v1820_v2 = vmul.f32 %v2727_v14, %v5481_v23 }
 0x390   :  { %2750 = vpow2.f32 %v2538_v50  ;;  %v1913_v13 = vadd.f32 %v4498_v53, %v1836_v36  ;;  %v5489_v36 = vld [vmem:[#allocation101_spill] sm:$0xff] }
 0x391   :  { %v2729_v59 = vpop.eup %2728  ;;  %2752 = vpow2.f32 %v2510_v32  ;;  %v1896_v55 = vmul.f32 %v4492_v42, %v1819_v8  ;;  %v1897_v21 = vmul.f32 %v4495_v24, %v1820_v2 }
 0x392   :  { %v2731_v38 = vpop.eup %2730  ;;  %v1821_v48 = vmul.f32 %v2729_v59, %v5482_v43  ;;  %v1822_v37 = vmul.f32 %v2729_v59, %v5483_v7  ;;  %2754 = vpow2.f32 %v2535_v9  ;;  %v2509_v20 = vmul.f32 -1.442695, %v1913_v13  ;;  %v5488_v9 = vld [vmem:[#allocation100_spill] sm:$0xff] }
 0x393   :  { %v2733_v35 = vpop.eup %2732  ;;  %v1799_v25 = vmul.f32 %v2731_v38, %v5484_v51  ;;  %v1800_v54 = vmul.f32 %v2731_v38, %v5485_v16  ;;  %v1973_v30 = vadd.f32 %v4498_v53, %v1896_v55  ;;  %v1974_v13 = vadd.f32 %v5471_v27, %v1897_v21 }
 0x394   :  { %v2735_v58 = vpop.eup %2734  ;;  %v1898_v18 = vmul.f32 %v4492_v42, %v1821_v48  ;;  %v1899_v19 = vmul.f32 %v4495_v24, %v1822_v37  ;;  %v1797_v41 = vmul.f32 %v2733_v35, %v5486_v33  ;;  %v1798_v56 = vmul.f32 %v2733_v35, %v5487_v15  ;;  %v5490_v35 = vld [vmem:[#allocation102_spill] sm:$0xff] }
 0x395   :  { %v1876_v6 = vmul.f32 %v4492_v42, %v1799_v25  ;;  %v1877_v32 = vmul.f32 %v4495_v24, %v1800_v54  ;;  %v4889_v26 = vpop.eup %2736  ;;  %v1795_v14 = vmul.f32 %v2735_v58, %v5488_v9  ;;  %v1796_v61 = vmul.f32 %v2735_v58, %v5489_v36  ;;  %v5491_v25 = vld [vmem:[#allocation103_spill] sm:$0xff] }
 0x396   :  { %v1975_v3 = vadd.f32 %v4498_v53, %v1898_v18  ;;  %v1874_v50 = vmul.f32 %v4492_v42, %v1797_v41  ;;  %v1875_v2 = vmul.f32 %v4495_v24, %v1798_v56  ;;  %v1976_v59 = vadd.f32 %v5471_v27, %v1899_v19 }
 0x397   :  { %v2739_v8 = vpop.eup %2738  ;;  %v4896_v23 = vadd.f32 %v4498_v53, %v1876_v6  ;;  %v1872_v43 = vmul.f32 %v4492_v42, %v1795_v14  ;;  %v1873_v48 = vmul.f32 %v4495_v24, %v1796_v61  ;;  %v2539_v54 = vmul.f32 -1.442695, %v1973_v30 }
 0x398   :  { %v2741_v38 = vpop.eup %2740  ;;  %v4902_v55 = vadd.f32 %v4498_v53, %v1874_v50  ;;  %v2540_v7 = vmul.f32 -1.442695, %v1975_v3  ;;  %2756 = vtanh.f32 %v1972_v40  ;;  %v2101_v18 = vadd.f32 1.0, %v2739_v8  ;;  %v5492_v40 = vld [vmem:[#allocation55_spill] sm:$0xff]  ;;  %v5493_v3 = vld [vmem:[#allocation37_spill] sm:$0xff] }
 0x399   :  { %v2743_v37 = vpop.eup %2742  ;;  %v1793_v51 = vmul.f32 %v2741_v38, %v5490_v35  ;;  %v1794_v16 = vmul.f32 %v2741_v38, %v5491_v25  ;;  %v4911_v21 = vadd.f32 %v4498_v53, %v1872_v43  ;;  %v4917_v15 = vadd.f32 %v5471_v27, %v4728_v5 }
 0x39a   :  { %v4908_v58 = vpop.eup %2744  ;;  %2758 = vpow2.f32 %v2540_v7  ;;  %v2100_v19 = vadd.f32 1.0, %v2743_v37  ;;  %v2534_v36 = vmul.f32 -1.442695, %v4771_v17  ;;  %v4927_v61 = vadd.f32 %v5471_v27, %v4690_v10 }
 0x39b   :  { %v2747_v33 = vpop.eup %2746  ;;  %v1870_v41 = vmul.f32 %v4492_v42, %v1793_v51  ;;  %v1871_v6 = vmul.f32 %v4495_v24, %v1794_v16  ;;  %2760 = vpow2.f32 %v2539_v54  ;;  %v4935_v43 = vadd.f32 %v5471_v27, %v4750_v45 }
 0x39c   :  { %v2749_v30 = vpop.eup %2748  ;;  %2762 = vpow2.f32 %v2509_v20  ;;  %v1791_v56 = vmul.f32 %v2747_v33, %v5492_v40  ;;  %v1792_v50 = vmul.f32 %v2747_v33, %v5493_v3  ;;  %v4938_v7 = vadd.f32 %v5471_v27, %v1877_v32 }
 0x39d   :  { %v2751_v9 = vpop.eup %2750  ;;  %v4922_v14 = vadd.f32 %v4498_v53, %v1870_v41  ;;  %2764 = vrcp.f32 %v2101_v18  ;;  %v2533_v37 = vmul.f32 -1.442695, %v4753_v62  ;;  %v2532_v45 = vmul.f32 -1.442695, %v4736_v52 }
 0x39e   :  { %v4929_v8 = vpop.eup %2752  ;;  %v1868_v5 = vmul.f32 %v4492_v42, %v1791_v56  ;;  %v1869_v20 = vmul.f32 %v4495_v24, %v1792_v50  ;;  %v2102_v38 = vadd.f32 1.0, %v2751_v9  ;;  %2766 = vrcp.f32 %v2100_v19 }
 0x39f   :  { %2768 = vtanh.f32 %v1976_v59  ;;  %v2755_v17 = vpop.eup %2754  ;;  %v4946_v42 = vadd.f32 %v5471_v27, %v4767_v49  ;;  %v4949_v59 = vadd.f32 %v5471_v27, %v1875_v2  ;;  %v4958_v62 = vadd.f32 %v5471_v27, %v1873_v48 }
 0x3a0   :  { %v4941_v10 = vadd.f32 %v4498_v53, %v1868_v5  ;;  %2770 = vrcp.f32 %v2102_v38  ;;  %v2099_v24 = vadd.f32 1.0, %v2755_v17  ;;  %v4955_v53 = vadd.f32 %v5471_v27, %v4784_v63 }
 0x3a1   :  { %2772 = vpow2.f32 %v2534_v36  ;;  %v4962_v49 = vadd.f32 %v5471_v27, %v4798_v60  ;;  %v2080_v32 = vadd.f32 1.0, %v4802_v4  ;;  %v4966_v2 = vadd.f32 %v5471_v27, %v1871_v6 }
 0x3a2   :  { %2774 = vtanh.f32 %v4821_v47  ;;  %v4970_v52 = vadd.f32 %v5471_v27, %v4838_v0  ;;  %v4973_v63 = vadd.f32 %v5471_v27, %v1869_v20  ;;  %v4977_v60 = vadd.f32 %v5471_v27, %v4862_v28 }
 0x3a3   :  { %2776 = vrcp.f32 %v2099_v24  ;;  %v2079_v16 = vadd.f32 1.0, %v4815_v46  ;;  %v2530_v28 = vmul.f32 -1.442695, %v4696_v12  ;;  %v2529_v50 = vmul.f32 -1.442695, %v4896_v23 }
 0x3a4   :  { %2778 = vpow2.f32 %v2533_v37 }
 0x3a5   :  { %2780 = vtanh.f32 %v1974_v13  ;;  %v2757_v47 = vpop.eup %2756  ;;  %v2531_v13 = vmul.f32 -1.442695, %v4715_v11 }
 0x3a6   :  { %2782 = vpow2.f32 %v2532_v45 }
 0x3a7   :  { %v2759_v48 = vpop.eup %2758  ;;  %2784 = vtanh.f32 %v4830_v44 }
 0x3a8   :  { %v2761_v4 = vpop.eup %2760  ;;  %v2104_v35 = vadd.f32 1.0, %v2759_v48  ;;  %2786 = vrcp.f32 %v2080_v32 }
 0x3a9   :  { %v4981_v51 = vpop.eup %2762  ;;  %v2103_v0 = vadd.f32 1.0, %v2761_v4  ;;  %2788 = vtanh.f32 %v4867_v29  ;;  %v5495_v4 = vld [vmem:[#allocation75_spill] sm:$0xff] }
 0x3aa   :  { %v2765_v25 = vpop.eup %2764  ;;  %2790 = vrcp.f32 %v2104_v35  ;;  %v2527_v35 = vmul.f32 -1.442695, %v4911_v21  ;;  %v2526_v21 = vmul.f32 -1.442695, %v4922_v14 }
 0x3ab   :  { %v2767_v27 = vpop.eup %2766  ;;  %2792 = vrcp.f32 %v2103_v0  ;;  %v4988_v44 = vmul.f32 %v2765_v25, %v4908_v58  ;;  %v2078_v58 = vadd.f32 1.0, %v4823_v22  ;;  %v2077_v22 = vadd.f32 1.0, %v4849_v1  ;;  %v5496_v0 = vld [vmem:[#allocation51_spill] sm:$0xff] }
 0x3ac   :  { %v4985_v54 = vpop.trf.xlu1  ;;  %v2769_v18 = vpop.eup %2768  ;;  %v4991_v11 = vmul.f32 %v2767_v27, %v2749_v30  ;;  %2794 = vpow2.f32 %v2531_v13  ;;  %v2076_v1 = vadd.f32 1.0, %v4853_v57 }
 0x3ad   :  { %v2614_v19 = vunpack.i.l.bf16 %v4985_v54  ;;  %v2771_v29 = vpop.eup %2770  ;;  %2796 = vtanh.f32 %v4845_v34 }
 0x3ae   :  { %v2773_v33 = vpop.eup %2772  ;;  %v2230_v46 = vmul.f32 %v2771_v29, %v2757_v47  ;;  %2798 = vrcp.f32 %v2079_v16  ;;  %v5494_v47 = vld [vmem:[#allocation58_spill] sm:$0xff]  ;;  %v2075_v16 = vadd.f32 1.0, %v4889_v26 }
 0x3af   :  { %2362 = vmatprep.mubr.f32.mxu1 %v2614_v19  ;;  %v2775_v41 = vpop.eup %2774  ;;  %v2098_v6 = vadd.f32 1.0, %v2773_v33  ;;  %2800 = vtanh.f32 %v4917_v15 }
 0x3b0   :  { %v2777_v12 = vpop.eup %2776  ;;  %2802 = vpow2.f32 %v2530_v28 }
 0x3b1   :  { %v2779_v30 = vpop.eup %2778  ;;  %v4997_v40 = vmul.f32 %v2777_v12, %v2775_v41  ;;  %2804 = vrcp.f32 %v2098_v6  ;;  %v5499_v41 = vld [vmem:[#allocation56_spill] sm:$0xff]  ;;  %v5500_v12 = vld [vmem:[#allocation27_spill] sm:$0xff] }
 0x3b2   :  { %v2781_v56 = vpop.eup %2780  ;;  %v2097_v3 = vadd.f32 1.0, %v2779_v30  ;;  %2806 = vtanh.f32 %v4858_v39  ;;  %v2528_v39 = vmul.f32 -1.442695, %v4902_v55 }
 0x3b3   :  { %v2783_v34 = vpop.eup %2782  ;;  %2808 = vrcp.f32 %v2078_v58 }
 0x3b4   :  { %v2785_v9 = vpop.eup %2784  ;;  %2810 = vrcp.f32 %v2097_v3  ;;  %v2096_v36 = vadd.f32 1.0, %v2783_v34  ;;  %v2073_v3 = vadd.f32 1.0, %v4981_v51 }
 0x3b5   :  { %v2787_v15 = vpop.eup %2786  ;;  %2812 = vtanh.f32 %v4935_v43 }
 0x3b6   :  { %v2789_v5 = vpop.eup %2788  ;;  %2814 = vrcp.f32 %v2096_v36 }
 0x3b7   :  { %v2791_v20 = vpop.eup %2790  ;;  %v5003_v38 = vmul.f32 %v2789_v5, %v2787_v15  ;;  %2816 = vpow2.f32 %v2529_v50 }
 0x3b8   :  { %v2793_v17 = vpop.eup %2792  ;;  %v2232_v37 = vmul.f32 %v2791_v20, %v2769_v18  ;;  %2818 = vtanh.f32 %v4874_v31 }
 0x3b9   :  { %v2795_v23 = vpop.eup %2794  ;;  %v2231_v24 = vmul.f32 %v2793_v17, %v2781_v56  ;;  %2820 = vrcp.f32 %v2077_v22 }
 0x3ba   :  { %v2797_v45 = vpop.eup %2796  ;;  %2541 = vmatprep.subr.mxu1 %v2232_v37  ;;  %v2095_v43 = vadd.f32 1.0, %v2795_v23  ;;  %2822 = vtanh.f32 %v4946_v42 }
 0x3bb   :  { %v2799_v32 = vpop.eup %2798  ;;  %2542 = vmatpush3.msra.mxu1 %v5494_v47  ;;  %2824 = vpow2.f32 %v2528_v39 }
 0x3bc   :  { %v2801_v48 = vpop.eup %2800  ;;  %2543 = vmatprep.subr.mxu1 %v2231_v24  ;;  %2826 = vrcp.f32 %v2095_v43 }
 0x3bd   :  { %v2803_v55 = vpop.eup %2802  ;;  %2544 = vmatpush3.msra.mxu1 %v5495_v4  ;;  %v2207_v31 = vmul.f32 %v2801_v48, %v2799_v32  ;;  %2828 = vtanh.f32 %v4927_v61  ;;  %v5497_v61 = vld [vmem:[#allocation47_spill] sm:$0xff] }
 0x3be   :  { %v2805_v13 = vpop.eup %2804  ;;  %2545 = vmatprep.subr.mxu1 %v2230_v46  ;;  %v2094_v42 = vadd.f32 1.0, %v2803_v55  ;;  %2830 = vrcp.f32 %v2076_v1  ;;  %v2074_v46 = vadd.f32 1.0, %v4929_v8 }
 0x3bf   :  { %v2807_v57 = vpop.eup %2806  ;;  %2546 = vmatpush3.msra.mxu1 %v5496_v0  ;;  %v2226_v25 = vmul.f32 %v2805_v13, %v2785_v9  ;;  %2832 = vtanh.f32 %v4955_v53  ;;  %v5498_v53 = vld [vmem:[#allocation57_spill] sm:$0xff] }
 0x3c0   :  { %v2809_v27 = vpop.eup %2808  ;;  %2547 = vmatprep.subr.mxu1 %v4988_v44  ;;  %2834 = vrcp.f32 %v2094_v42 }
 0x3c1   :  { %v2811_v28 = vpop.eup %2810  ;;  %2548 = vmatpush3.msra.mxu1 %v5497_v61  ;;  %2836 = vpow2.f32 %v2527_v35 }
 0x3c2   :  { %v2813_v18 = vpop.eup %2812  ;;  %2549 = vmatprep.subr.mxu1 %v4991_v11  ;;  %v2225_v19 = vmul.f32 %v2811_v28, %v2797_v45  ;;  %2838 = vtanh.f32 %v4938_v7  ;;  %v2525_v7 = vmul.f32 -1.442695, %v4941_v10 }
 0x3c3   :  { %v2815_v29 = vpop.eup %2814  ;;  %2550 = vmatpush3.msra.mxu1 %v5498_v53  ;;  %v2206_v26 = vmul.f32 %v2813_v18, %v2809_v27  ;;  %2840 = vrcp.f32 %v2075_v16 }
 0x3c4   :  { %v2817_v33 = vpop.eup %2816  ;;  %2551 = vmatprep.subr.mxu1 %v4997_v40  ;;  %v2224_v44 = vmul.f32 %v2815_v29, %v2807_v57  ;;  %2842 = vtanh.f32 %v4962_v49  ;;  %v5501_v40 = vld [vmem:[#allocation52_spill] sm:$0xff] }
 0x3c5   :  { %v2819_v14 = vpop.eup %2818  ;;  %2552 = vmatpush3.msra.mxu1 %v5499_v41  ;;  %v2093_v11 = vadd.f32 1.0, %v2817_v33  ;;  %2844 = vpow2.f32 %v2526_v21 }
 0x3c6   :  { %v2821_v6 = vpop.eup %2820  ;;  %2553 = vmatprep.subr.mxu1 %v2226_v25  ;;  %2846 = vtanh.f32 %v4949_v59 }
 0x3c7   :  { %v2823_v58 = vpop.eup %2822  ;;  %2554 = vmatpush3.msra.mxu1 %v5500_v12  ;;  %2848 = vrcp.f32 %v2093_v11  ;;  %v2388_v11 = vld [vmem:[%s5055_s5 + $0x3] ss:$0 sm:$0xff] }
 0x3c8   :  { %v2825_v30 = vpop.eup %2824  ;;  %2555 = vmatprep.subr.mxu1 %v2225_v19  ;;  %v2205_v49 = vmul.f32 %v2823_v58, %v2821_v6  ;;  %2850 = vrcp.f32 %v2074_v46  ;;  %v2393_v12 = vld [vmem:[%s5052_s2] sm:$0xff] }
 0x3c9   :  { %v2827_v8 = vpop.eup %2826  ;;  %2556 = vmatpush3.msra.mxu1 %v5501_v40  ;;  %v2092_v56 = vadd.f32 1.0, %v2825_v30  ;;  %2852 = vtanh.f32 %v4970_v52 }
 0x3ca   :  { %v2829_v34 = vpop.eup %2828  ;;  %2557 = vmatprep.subr.mxu1 %v2224_v44  ;;  %v2223_v59 = vmul.f32 %v2827_v8, %v2819_v14  ;;  %2854 = vpow2.f32 %v2525_v7  ;;  %v2389_v7 = vld [vmem:[%s5055_s5 + $0xb] ss:$0 sm:$0xff] }
 0x3cb   :  { %v2831_v10 = vpop.eup %2830  ;;  %2558 = vmatpush3.msra.mxu1 %v5003_v38  ;;  %2856 = vrcp.f32 %v2092_v56 }
 0x3cc   :  { %v2833_v50 = vpop.eup %2832  ;;  %2559 = vmatprep.subr.mxu1 %v2223_v59  ;;  %2858 = vrcp.f32 %v2073_v3 }
 0x3cd   :  { %v2835_v9 = vpop.eup %2834  ;;  %2560 = vmatpush3.msra.mxu1 %v2207_v31  ;;  %v2204_v36 = vmul.f32 %v2833_v50, %v2831_v10  ;;  %2860 = vtanh.f32 %v4977_v60 }
 0x3ce   :  { %v2837_v15 = vpop.eup %2836  ;;  %v2222_v22 = vmul.f32 %v2835_v9, %v2829_v34  ;;  %2862 = vtanh.f32 %v4958_v62 }
 0x3cf   :  { %v2839_v52 = vpop.eup %2838  ;;  %v2091_v51 = vadd.f32 1.0, %v2837_v15 }
 0x3d0   :  { %v2841_v5 = vpop.eup %2840  ;;  %2561 = vmatprep.subr.mxu1 %v2222_v22 }
 0x3d1   :  { %v2843_v20 = vpop.eup %2842  ;;  %2562 = vmatpush3.msra.mxu1 %v2206_v26  ;;  %2864 = vrcp.f32 %v2091_v51 }
 0x3d2   :  { %v2845_v38 = vpop.eup %2844  ;;  %v2203_v39 = vmul.f32 %v2843_v20, %v2841_v5  ;;  %2866 = vtanh.f32 %v4966_v2 }
 0x3d3   :  { %v2847_v17 = vpop.eup %2846  ;;  %v2090_v37 = vadd.f32 1.0, %v2845_v38 }
 0x3d4   :  { %v2849_v23 = vpop.eup %2848 }
 0x3d5   :  { %v2851_v24 = vpop.eup %2850  ;;  %v2221_v45 = vmul.f32 %v2849_v23, %v2839_v52  ;;  %2868 = vrcp.f32 %v2090_v37 }
 0x3d6   :  { %v2853_v60 = vpop.eup %2852  ;;  %2870 = vtanh.f32 %v4973_v63  ;;  %v2617_v63 = vunpack.i.h.bf16 %v4985_v54 }
 0x3d7   :  { %v2855_v43 = vpop.eup %2854  ;;  %2563 = vmatprep.subr.mxu1 %v2221_v45  ;;  %v2202_v1 = vmul.f32 %v2853_v60, %v2851_v24 }
 0x3d8   :  { %v2857_v32 = vpop.eup %2856  ;;  %2564 = vmatpush3.msra.mxu1 %v2205_v49  ;;  %v2089_v62 = vadd.f32 1.0, %v2855_v43 }
 0x3d9   :  { %v2220_v47 = vmul.f32 %v2857_v32, %v2847_v17  ;;  %v2859_v48 = vpop.eup %2858 }
 0x3da   :  { %2872 = vrcp.f32 %v2089_v62  ;;  %v2861_v55 = vpop.eup %2860 }
 0x3db   :  { %2565 = vmatprep.subr.mxu1 %v2220_v47  ;;  %v2201_v4 = vmul.f32 %v2861_v55, %v2859_v48  ;;  %v2863_v2 = vpop.eup %2862 }
 0x3dc   :  { %2566 = vmatpush3.msra.mxu1 %v2204_v36 }
 0x3de   :  { %v2865_v31 = vpop.eup %2864 }
 0x3df   :  { %v2219_v35 = vmul.f32 %v2865_v31, %v2863_v2  ;;  %v2867_v13 = vpop.eup %2866 }
 0x3e1   :  { %2567 = vmatprep.subr.mxu1 %v2219_v35 }
 0x3e2   :  { %v2869_v42 = vpop.eup %2868  ;;  %2568 = vmatpush3.msra.mxu1 %v2203_v39 }
 0x3e3   :  { %v2218_v57 = vmul.f32 %v2869_v42, %v2867_v13  ;;  %v2871_v0 = vpop.eup %2870 }
 0x3e5   :  { %2569 = vmatprep.subr.mxu1 %v2218_v57 }
 0x3e6   :  { %2570 = vmatpush3.msra.mxu1 %v2202_v1 }
 0x3e7   :  { %v2873_v25 = vpop.eup %2872 }
 0x3e8   :  { %v2217_v16 = vmul.f32 %v2873_v25, %v2871_v0 }
 0x3ea   :  { %2571 = vmatprep.subr.mxu1 %v2217_v16 }
 0x3eb   :  { %2572 = vmatpush3.msra.mxu1 %v2201_v4 }
 0x3ec   :  { %2363 = vmatmul.mubr.f32.vlgmr.msra.gmra.mxu1 %v2617_v63 }
 0x4ac   :  { %v2573_v27 = vpop.f32.mrf.mxu1 }
 0x4ae   :  { %v2574_v28 = vpop.f32.mrf.mxu1 }
 0x4af   :  { %v2575_v61 = vadd.f32 %v2574_v28, %v2573_v27 }
 0x4b1   :  { %2374 = vadd.xlane.f32.xlu0 %v2575_v61 }
 0x53a   :  { %v2375_v21 = vpop.xlane.xlu0 %2374 }
 0x53b   :  { %v2376_v18 = vmul.f32 0.03125, %v2375_v21 }
 0x53d   :  { %v2377_v19 = vsub.f32 %v2575_v61, %v2376_v18  ;;  %v2382_v53 = vmul.f32 %v2376_v18, %v2376_v18 }
 0x53f   :  { %v2378_v29 = vmul.f32 %v2377_v19, %v2377_v19  ;;  %v2383_v33 = vmul.f32 3.0, %v2382_v53 }
 0x541   :  { %2379 = vadd.xlane.f32.xlu0 %v2378_v29 }
 0x5ca   :  { %v2380_v26 = vpop.xlane.xlu0 %2379 }
 0x5cb   :  { %v2381_v44 = vmul.f32 0.03125, %v2380_v26 }
 0x5cd   :  { %v2384_v46 = vsub.f32 %v2381_v44, %v2383_v33 }
 0x5cf   :  { %v2385_v14 = vmax.f32 %v2384_v46, 0.0 }
 0x5d1   :  { %v2386_v54 = vadd.f32 1e-05, %v2385_v14 }
 0x5d3   :  { %2874 = vrsqrt.f32 %v2386_v54 }
 0x5e0   :  { %v2875_v41 = vpop.eup %2874 }
 0x5e1   :  { %v2390_v6 = vmul.f32 %v2875_v41, %v2377_v19 }
 0x5e3   :  { %v2391_v58 = vmul.f32 %v2390_v6, %v2388_v11 }
 0x5e5   :  { %v2392_v30 = vadd.f32 %v2391_v58, %v2389_v7 }
 0x5e7   :  { %v2394_v49 = vadd.f32 %v2393_v12, %v2392_v30 }
 0x5e9   :  { %2876 = vtanh.f32 %v2394_v49 }
 0x5f6   :  { %v2877_v8 = vpop.eup %2876 }
 0x5f7   :  { %2396 = vst [vmem:[#allocation3] sm:$0xff] %v2877_v8 }
 0x5f8   :  { %2889 = shalt.err (!%p2886_p4)
}
 0x5f9   :  { %2406 = dma.vmem_to_hbm [thread:$0]  %s2404_s8, 128, %s5056_s6, [#allocation4]  }
 0x5fa   :  { %2898 = dma.done.wait [#allocation4], 128  }
 0x5fb   :  { %2899 = vsyncadd [#allocation4], 4294967168 }
 0x5fc   :  { %2410 = vsyncpa [#allocation4], 1 }

</bundles_post_ra>
